<compile_context>
chip_gen: v7x
topology: tpu7x:2x2x1
jax: 0.10.0
libtpu: 0.0.40
codegen_flags: <defaults>
</compile_context>

<pallas_src>
import jax
import jax.numpy as jnp
from jax.experimental import pallas as pl
from jax.experimental.pallas import tpu as pltpu

RESHAPE_SIZE = 10 * 10 * 4     # 400 (fc1 in_features)
SPLIT_SIZE = 1024
HIDDEN = 2 * SPLIT_SIZE        # 2048 (fc1 out_features)
N_ACTIONS = 4
HIDDEN_CHUNK = 512             # in-kernel streaming chunk over the hidden dim
N_CHUNKS = HIDDEN // HIDDEN_CHUNK
MAX_TB = 512                   # max batch tile (fits scoped VMEM everywhere)


def dueling_head_kernel(x_ref, w1_ref, b1_ref, wq_ref, bq_ref, q_ref):
    # In-kernel bf16 cast of the activation tile (VPU, hidden under the MXU).
    x = x_ref[...].astype(jnp.bfloat16)                      # (TB, 400)
    q = jnp.zeros(q_ref.shape, jnp.float32)                  # (TB, 4)
    # Stream the hidden dim: never materialize the full (TB, 2048) f32 h.
    for c in range(N_CHUNKS):                                # fully unrolled
        lo = c * HIDDEN_CHUNK
        hi = lo + HIDDEN_CHUNK
        h = jnp.dot(x, w1_ref[:, lo:hi],                     # (TB, 512) f32 acc
                    preferred_element_type=jnp.float32)
        h = jnp.maximum(h + b1_ref[:, lo:hi], 0.0)
        # Second dot kept fully f32 (N=4 -> negligible cost, better accuracy).
        q = q + jnp.dot(h, wq_ref[lo:hi, :],
                        preferred_element_type=jnp.float32)
    q_ref[...] = q + bq_ref[...]


def prepare_params(w1, b1, wv, bv, wa, ba):
    """One-time parameter prep (call at init / after each param update, NOT
    per forward): fold value head + advantage head + mean-subtraction into a
    single [2048, 4] matmul, and cast the fc1 weight to bf16."""
    wq = jnp.concatenate(
        [jnp.tile(wv, (1, N_ACTIONS)),                        # value broadcast
         wa - jnp.mean(wa, axis=1, keepdims=True)],           # centered advantage
        axis=0)                                               # (2048, 4)
    bq = bv + ba - jnp.mean(ba, axis=1, keepdims=True)        # (1, 4)
    return (w1.astype(jnp.bfloat16),                          # (400, 2048)
            b1.astype(jnp.float32),                           # (1, 2048)
            wq.astype(jnp.float32),                           # (2048, 4) keep f32
            bq.astype(jnp.float32))                           # (1, 4)


def _choose_batch_tile(B):
    """Pick (TB, B_pad): 8-aligned batch tile, at least 2 grid programs when
    B >= 16 (so the batch axis can split across v7x's two TensorCores), and
    tail padding kept proportionally small; TB <= MAX_TB."""
    if B < 16:
        tb = ((B + 7) // 8) * 8
        return tb, tb
    n_prog = max(2, (B + MAX_TB - 1) // MAX_TB)
    tb = ((((B + n_prog - 1) // n_prog) + 7) // 8) * 8
    return tb, n_prog * tb


def dueling_head_fwd(x, w1_b, b1_f, wq_f, bq_f):
    """q = value + (advantage - mean(advantage, dim=1, keepdim=True)).
    Takes the pre-built params from prepare_params()."""
    B, K = x.shape
    assert K == RESHAPE_SIZE and w1_b.shape[0] == K, (
        f"fc1 expects {RESHAPE_SIZE} input features, got x:{K}, w1:{w1_b.shape}")

    TB, B_pad = _choose_batch_tile(B)
    x_p = jnp.pad(x, ((0, B_pad - B), (0, 0))) if B_pad != B else x

    grid = (B_pad // TB,)

    cost = pl.CostEstimate(
        flops=2 * B_pad * K * HIDDEN + 2 * B_pad * HIDDEN * N_ACTIONS,
        transcendentals=0,
        bytes_accessed=(x_p.size * 4 + w1_b.size * 2 + b1_f.size * 4
                        + wq_f.size * 4 + bq_f.size * 4 + B_pad * N_ACTIONS * 4),
    )

    q_pad = pl.pallas_call(
        dueling_head_kernel,
        out_shape=jax.ShapeDtypeStruct((B_pad, N_ACTIONS), jnp.float32),
        grid_spec=pl.GridSpec(
            grid=grid,
            in_specs=[
                # x tile: f32, full K (no padding), double-buffered across grid
                pl.BlockSpec((TB, K), lambda i: (i, 0)),
                # Constant-index weights: VMEM-resident, single-buffered.
                pl.BlockSpec((K, HIDDEN), lambda i: (0, 0),
                             pipeline_mode=pl.Buffered(1)),          # W1 (bf16)
                pl.BlockSpec((1, HIDDEN), lambda i: (0, 0),
                             pipeline_mode=pl.Buffered(1)),          # b1
                pl.BlockSpec((HIDDEN, N_ACTIONS), lambda i: (0, 0),
                             pipeline_mode=pl.Buffered(1)),          # W_q (f32)
                pl.BlockSpec((1, N_ACTIONS), lambda i: (0, 0),
                             pipeline_mode=pl.Buffered(1)),          # b_q
            ],
            out_specs=pl.BlockSpec((TB, N_ACTIONS), lambda i: (i, 0)),
        ),
        compiler_params=pltpu.CompilerParams(
            dimension_semantics=("parallel",),        # megacore split on v7x
            vmem_limit_bytes=32 * 1024 * 1024,
        ),
        cost_estimate=cost,
    )(x_p, w1_b, b1_f, wq_f, bq_f)

    # Padded batch rows give relu(b1)@wq != 0 — sliced off here; keep this slice.
    return q_pad[:B]


def init_params(key):
    """Deterministic synthetic parameters, stored as (in_features, out_features)."""
    k1, k2, k3, k4, k5, k6 = jax.random.split(key, 6)

    def uinit(k, shape, fan_in):
        bound = 1.0 / jnp.sqrt(fan_in)
        return jax.random.uniform(k, shape, jnp.float32, -bound, bound)

    w1 = uinit(k1, (RESHAPE_SIZE, HIDDEN), RESHAPE_SIZE)
    b1 = uinit(k2, (1, HIDDEN), RESHAPE_SIZE)
    wv = uinit(k3, (SPLIT_SIZE, 1), SPLIT_SIZE)
    bv = uinit(k4, (1, 1), SPLIT_SIZE)
    wa = uinit(k5, (SPLIT_SIZE, N_ACTIONS), SPLIT_SIZE)
    ba = uinit(k6, (1, N_ACTIONS), SPLIT_SIZE)
    return w1, b1, wv, bv, wa, ba


def reference(x, w1, b1, wv, bv, wa, ba):
    """fp32 reference matching the PyTorch forward exactly (unfused)."""
    h = jnp.maximum(x @ w1 + b1, 0.0)
    x1, x2 = h[:, :SPLIT_SIZE], h[:, SPLIT_SIZE:]
    value = x1 @ wv + bv
    adv = x2 @ wa + ba
    return value + (adv - jnp.mean(adv, axis=1, keepdims=True))


if __name__ == "__main__":
    key = jax.random.PRNGKey(0)
    kx, kp = jax.random.split(key)

    B = 2
    x = jax.random.normal(kx, (B, RESHAPE_SIZE), jnp.float32)
    params = init_params(kp)

    # One-time weight prep (hoisted out of the forward path).
    prepped = jax.block_until_ready(prepare_params(*params))

    q = dueling_head_fwd(x, *prepped)
    q = jax.block_until_ready(q)

    q_ref = reference(x, *params)
    assert q.shape == (B, N_ACTIONS)
    # fc1 uses bf16 MXU operands (f32 accumulation) -> slightly looser tolerance.
    assert jnp.allclose(q, q_ref, atol=2e-2, rtol=2e-2), (q, q_ref)

    print("KERNEL_OK")
</pallas_src>

<mosaic_0001>
module attributes {stable_mosaic.version = 11 : i64} {
  func.func @dueling_head_kernel(%arg0: i32, %arg1: memref<8x400xf32, #tpu.memory_space<vmem>>, %arg2: memref<400x2048xbf16, #tpu.memory_space<vmem>>, %arg3: memref<1x2048xf32, #tpu.memory_space<vmem>>, %arg4: memref<2048x4xf32, #tpu.memory_space<vmem>>, %arg5: memref<1x4xf32, #tpu.memory_space<vmem>>, %arg6: memref<8x4xf32, #tpu.memory_space<vmem>>) attributes {dimension_semantics = [#tpu.dimension_semantics<parallel>], iteration_bounds = array<i64: 1>, scalar_prefetch = 0 : i64, scratch_operands = 0 : i64, tpu.core_type = #tpu.core_type<tc>, window_params = [{transform_indices = @transform_0, window_bounds = array<i64: 8, 400>}, {pipeline_mode = #tpu.pipeline_mode<synchronous>, transform_indices = @transform_1, window_bounds = array<i64: 400, 2048>}, {pipeline_mode = #tpu.pipeline_mode<synchronous>, transform_indices = @transform_2, window_bounds = array<i64: 1, 2048>}, {pipeline_mode = #tpu.pipeline_mode<synchronous>, transform_indices = @transform_3, window_bounds = array<i64: 2048, 4>}, {pipeline_mode = #tpu.pipeline_mode<synchronous>, transform_indices = @transform_4, window_bounds = array<i64: 1, 4>}, {transform_indices = @transform_5, window_bounds = array<i64: 8, 4>}]} {
    %c0 = arith.constant 0 : index
    %c0_0 = arith.constant 0 : index
    %0 = vector.load %arg1[%c0, %c0_0] : memref<8x400xf32, #tpu.memory_space<vmem>>, vector<8x400xf32>
    %1 = arith.truncf %0 : vector<8x400xf32> to vector<8x400xbf16>
    %cst = arith.constant 0.000000e+00 : f32
    %2 = vector.broadcast %cst : f32 to vector<8x4xf32>
    %c0_1 = arith.constant 0 : index
    %c0_2 = arith.constant 0 : index
    %3 = vector.load %arg2[%c0_1, %c0_2] : memref<400x2048xbf16, #tpu.memory_space<vmem>>, vector<400x512xbf16>
    %cst_3 = arith.constant dense<0.000000e+00> : vector<8x512xf32>
    %4 = tpu.matmul %1, %3, %cst_3 {dimension_numbers = #tpu.dot_dimension_numbers<[1], [0], [0], [1], [0, 0, 1, 1], [], []>} : vector<8x400xbf16>, vector<400x512xbf16>, vector<8x512xf32> -> vector<8x512xf32>
    %c0_4 = arith.constant 0 : index
    %c0_5 = arith.constant 0 : index
    %5 = vector.load %arg3[%c0_4, %c0_5] : memref<1x2048xf32, #tpu.memory_space<vmem>>, vector<1x512xf32>
    %6 = vector.broadcast %5 : vector<1x512xf32> to vector<8x512xf32>
    %7 = arith.addf %4, %6 : vector<8x512xf32>
    %cst_6 = arith.constant 0.000000e+00 : f32
    %8 = vector.broadcast %cst_6 : f32 to vector<8x512xf32>
    %9 = arith.maximumf %7, %8 : vector<8x512xf32>
    %c0_7 = arith.constant 0 : index
    %c0_8 = arith.constant 0 : index
    %10 = vector.load %arg4[%c0_7, %c0_8] : memref<2048x4xf32, #tpu.memory_space<vmem>>, vector<512x4xf32>
    %cst_9 = arith.constant dense<0.000000e+00> : vector<8x4xf32>
    %11 = tpu.matmul %9, %10, %cst_9 {dimension_numbers = #tpu.dot_dimension_numbers<[1], [0], [0], [1], [0, 0, 1, 1], [], []>} : vector<8x512xf32>, vector<512x4xf32>, vector<8x4xf32> -> vector<8x4xf32>
    %12 = arith.addf %2, %11 : vector<8x4xf32>
    %c0_10 = arith.constant 0 : index
    %c512 = arith.constant 512 : index
    %13 = vector.load %arg2[%c0_10, %c512] : memref<400x2048xbf16, #tpu.memory_space<vmem>>, vector<400x512xbf16>
    %cst_11 = arith.constant dense<0.000000e+00> : vector<8x512xf32>
    %14 = tpu.matmul %1, %13, %cst_11 {dimension_numbers = #tpu.dot_dimension_numbers<[1], [0], [0], [1], [0, 0, 1, 1], [], []>} : vector<8x400xbf16>, vector<400x512xbf16>, vector<8x512xf32> -> vector<8x512xf32>
    %c0_12 = arith.constant 0 : index
    %c512_13 = arith.constant 512 : index
    %15 = vector.load %arg3[%c0_12, %c512_13] : memref<1x2048xf32, #tpu.memory_space<vmem>>, vector<1x512xf32>
    %16 = vector.broadcast %15 : vector<1x512xf32> to vector<8x512xf32>
    %17 = arith.addf %14, %16 : vector<8x512xf32>
    %cst_14 = arith.constant 0.000000e+00 : f32
    %18 = vector.broadcast %cst_14 : f32 to vector<8x512xf32>
    %19 = arith.maximumf %17, %18 : vector<8x512xf32>
    %c512_15 = arith.constant 512 : index
    %c0_16 = arith.constant 0 : index
    %20 = vector.load %arg4[%c512_15, %c0_16] : memref<2048x4xf32, #tpu.memory_space<vmem>>, vector<512x4xf32>
    %cst_17 = arith.constant dense<0.000000e+00> : vector<8x4xf32>
    %21 = tpu.matmul %19, %20, %cst_17 {dimension_numbers = #tpu.dot_dimension_numbers<[1], [0], [0], [1], [0, 0, 1, 1], [], []>} : vector<8x512xf32>, vector<512x4xf32>, vector<8x4xf32> -> vector<8x4xf32>
    %22 = arith.addf %12, %21 : vector<8x4xf32>
    %c0_18 = arith.constant 0 : index
    %c1024 = arith.constant 1024 : index
    %23 = vector.load %arg2[%c0_18, %c1024] : memref<400x2048xbf16, #tpu.memory_space<vmem>>, vector<400x512xbf16>
    %cst_19 = arith.constant dense<0.000000e+00> : vector<8x512xf32>
    %24 = tpu.matmul %1, %23, %cst_19 {dimension_numbers = #tpu.dot_dimension_numbers<[1], [0], [0], [1], [0, 0, 1, 1], [], []>} : vector<8x400xbf16>, vector<400x512xbf16>, vector<8x512xf32> -> vector<8x512xf32>
    %c0_20 = arith.constant 0 : index
    %c1024_21 = arith.constant 1024 : index
    %25 = vector.load %arg3[%c0_20, %c1024_21] : memref<1x2048xf32, #tpu.memory_space<vmem>>, vector<1x512xf32>
    %26 = vector.broadcast %25 : vector<1x512xf32> to vector<8x512xf32>
    %27 = arith.addf %24, %26 : vector<8x512xf32>
    %cst_22 = arith.constant 0.000000e+00 : f32
    %28 = vector.broadcast %cst_22 : f32 to vector<8x512xf32>
    %29 = arith.maximumf %27, %28 : vector<8x512xf32>
    %c1024_23 = arith.constant 1024 : index
    %c0_24 = arith.constant 0 : index
    %30 = vector.load %arg4[%c1024_23, %c0_24] : memref<2048x4xf32, #tpu.memory_space<vmem>>, vector<512x4xf32>
    %cst_25 = arith.constant dense<0.000000e+00> : vector<8x4xf32>
    %31 = tpu.matmul %29, %30, %cst_25 {dimension_numbers = #tpu.dot_dimension_numbers<[1], [0], [0], [1], [0, 0, 1, 1], [], []>} : vector<8x512xf32>, vector<512x4xf32>, vector<8x4xf32> -> vector<8x4xf32>
    %32 = arith.addf %22, %31 : vector<8x4xf32>
    %c0_26 = arith.constant 0 : index
    %c1536 = arith.constant 1536 : index
    %33 = vector.load %arg2[%c0_26, %c1536] : memref<400x2048xbf16, #tpu.memory_space<vmem>>, vector<400x512xbf16>
    %cst_27 = arith.constant dense<0.000000e+00> : vector<8x512xf32>
    %34 = tpu.matmul %1, %33, %cst_27 {dimension_numbers = #tpu.dot_dimension_numbers<[1], [0], [0], [1], [0, 0, 1, 1], [], []>} : vector<8x400xbf16>, vector<400x512xbf16>, vector<8x512xf32> -> vector<8x512xf32>
    %c0_28 = arith.constant 0 : index
    %c1536_29 = arith.constant 1536 : index
    %35 = vector.load %arg3[%c0_28, %c1536_29] : memref<1x2048xf32, #tpu.memory_space<vmem>>, vector<1x512xf32>
    %36 = vector.broadcast %35 : vector<1x512xf32> to vector<8x512xf32>
    %37 = arith.addf %34, %36 : vector<8x512xf32>
    %cst_30 = arith.constant 0.000000e+00 : f32
    %38 = vector.broadcast %cst_30 : f32 to vector<8x512xf32>
    %39 = arith.maximumf %37, %38 : vector<8x512xf32>
    %c1536_31 = arith.constant 1536 : index
    %c0_32 = arith.constant 0 : index
    %40 = vector.load %arg4[%c1536_31, %c0_32] : memref<2048x4xf32, #tpu.memory_space<vmem>>, vector<512x4xf32>
    %cst_33 = arith.constant dense<0.000000e+00> : vector<8x4xf32>
    %41 = tpu.matmul %39, %40, %cst_33 {dimension_numbers = #tpu.dot_dimension_numbers<[1], [0], [0], [1], [0, 0, 1, 1], [], []>} : vector<8x512xf32>, vector<512x4xf32>, vector<8x4xf32> -> vector<8x4xf32>
    %42 = arith.addf %32, %41 : vector<8x4xf32>
    %c0_34 = arith.constant 0 : index
    %c0_35 = arith.constant 0 : index
    %43 = vector.load %arg5[%c0_34, %c0_35] : memref<1x4xf32, #tpu.memory_space<vmem>>, vector<1x4xf32>
    %44 = vector.broadcast %43 : vector<1x4xf32> to vector<8x4xf32>
    %45 = arith.addf %42, %44 : vector<8x4xf32>
    %c0_36 = arith.constant 0 : index
    %c0_37 = arith.constant 0 : index
    %46 = vector.load %arg6[%c0_36, %c0_37] : memref<8x4xf32, #tpu.memory_space<vmem>>, vector<8x4xf32>
    tpu.vector_store %arg6[%c0_36, %c0_37], %45 {strides = array<i32>} : memref<8x4xf32, #tpu.memory_space<vmem>>, vector<8x4xf32>,
    return
  }
  func.func @transform_0(%arg0: i32) -> (i32, i32) {
    %c0_i32 = arith.constant 0 : i32
    %c0_i32_0 = arith.constant 0 : i32
    return %arg0, %c0_i32 : i32, i32
  }
  func.func @transform_1(%arg0: i32) -> (i32, i32) {
    %c0_i32 = arith.constant 0 : i32
    %c0_i32_0 = arith.constant 0 : i32
    %c0_i32_1 = arith.constant 0 : i32
    return %c0_i32, %c0_i32_0 : i32, i32
  }
  func.func @transform_2(%arg0: i32) -> (i32, i32) {
    %c0_i32 = arith.constant 0 : i32
    %c0_i32_0 = arith.constant 0 : i32
    %c0_i32_1 = arith.constant 0 : i32
    return %c0_i32, %c0_i32_0 : i32, i32
  }
  func.func @transform_3(%arg0: i32) -> (i32, i32) {
    %c0_i32 = arith.constant 0 : i32
    %c0_i32_0 = arith.constant 0 : i32
    %c0_i32_1 = arith.constant 0 : i32
    return %c0_i32, %c0_i32_0 : i32, i32
  }
  func.func @transform_4(%arg0: i32) -> (i32, i32) {
    %c0_i32 = arith.constant 0 : i32
    %c0_i32_0 = arith.constant 0 : i32
    %c0_i32_1 = arith.constant 0 : i32
    return %c0_i32, %c0_i32_0 : i32, i32
  }
  func.func @transform_5(%arg0: i32) -> (i32, i32) {
    %c0_i32 = arith.constant 0 : i32
    %c0_i32_0 = arith.constant 0 : i32
    return %arg0, %c0_i32 : i32, i32
  }
}

</mosaic_0001>

<bundles_post_ra>
// kernel: tpu_custom_call.1
= control target key start
LH: loop header
LB: loop body
LE: loop exit
PB: predicated region body
PF: predicated region fallthrough
CT: control target
= control target key end

     0   :  { %10 = vsyncpa [#allocation3], 0  ;;  %s6112_s0 = inlined_call_operand.hbm [shape: f32[8,400], index: 0, kind: input, shape index: {}]   ;;  %s6113_s1 = inlined_call_operand.hbm [shape: bf16[400,2048], index: 1, kind: input, shape index: {}]   ;;  %s6114_s2 = inlined_call_operand.hbm [shape: f32[1,2048], index: 2, kind: input, shape index: {}]   ;;  %s6115_s3 = inlined_call_operand.vmem [shape: f32[2048,4], index: 3, kind: input, shape index: {}]   ;;  %s6116_s4 = inlined_call_operand.hbm [shape: f32[1,4], index: 4, kind: input, shape index: {}]   ;;  %s6117_s5 = inlined_call_operand.vmem [shape: f32[8,4], index: 5, kind: output, shape index: {}]  }
   0x1   :  { %11 = vsyncpa [#allocation5], 0 }
   0x2   :  { %12 = vsyncpa [#allocation8], 0  ;;  %s5170_s18 = smov [#allocation4]   ;;  %s5076_s22 = scalar_lea.hbm %s6113_s1, 51200 }
   0x3   :  { %s28_s19 = sshll.u32 %s5170_s18, 4  ;;  %p5077_p0 = scmp.ne.s32.totalorder %s6113_s1, %s5076_s22  ;;  %s29_s19 = int_to_ptr.vmem [resolvable:$true] %s28_s19 }
   0x4   :  { %p5080_p1 = scmp.lt.u32.totalorder %s5076_s22, %s6113_s1 }
   0x6   :  { %p5082_p2 = pnand %p5080_p1, %p5077_p0 }
   0x8   :  { %5085 = shalt.err (!%p5082_p2)
}
   0x9   :  { %s5086_s27 = scalar_lea.vmem %s29_s19, 51200  ;;  %p5091_p4 = scmp.lt.s32.totalorder %s29_s19, %s29_s19 }
   0xa   :  { %p5087_p3 = scmp.ne.s32.totalorder %s29_s19, %s5086_s27  ;;  %p5092_p5 = scmp.lt.s32.totalorder %s5086_s27, %s5086_s27 }
   0xc   :  { %p5093_p6 = por %p5092_p5, %p5091_p4 }
   0xe   :  { %p5094_p7 = pnand %p5093_p6, %p5087_p3 }
  0x10   :  { %5097 = shalt.err (!%p5094_p7)
}
  0x11   :  { %s5171_s28 = smov 1024   ;;  %s5172_s29 = smov 64  }
  0x12   :  { %34 = dma.hbm_to_vmem [thread:$0]  %s6113_s1, 51200, %s29_s19, [#allocation5], %s5171_s28, %s5171_s28, %s5172_s29  }
  0x13   :  { %s5173_s7 = smov [#allocation2]   ;;  %s5174_s9 = smov [#allocation6]  }
  0x14   :  { %s19_s8 = sshll.u32 %s5173_s7, 4  ;;  %s41_s10 = sshll.u32 %s5174_s9, 4  ;;  %s20_s8 = int_to_ptr.vmem [resolvable:$true] %s19_s8  ;;  %s42_s10 = int_to_ptr.vmem [resolvable:$true] %s41_s10 }
  0x15   :  { %s5098_s13 = scalar_lea.hbm %s6112_s0, 512 }
  0x16   :  { %p5099_p8 = scmp.ne.s32.totalorder %s6112_s0, %s5098_s13  ;;  %p5102_p9 = scmp.lt.u32.totalorder %s5098_s13, %s6112_s0 }
  0x18   :  { %p5104_p10 = pnand %p5102_p9, %p5099_p8 }
  0x1a   :  { %5107 = shalt.err (!%p5104_p10)
}
  0x1b   :  { %s5108_s1 = scalar_lea.vmem %s20_s8, 512  ;;  %p5113_p12 = scmp.lt.s32.totalorder %s20_s8, %s20_s8 }
  0x1c   :  { %p5109_p11 = scmp.ne.s32.totalorder %s20_s8, %s5108_s1  ;;  %p5114_p13 = scmp.lt.s32.totalorder %s5108_s1, %s5108_s1 }
  0x1e   :  { %p5115_p0 = por %p5114_p13, %p5113_p12 }
  0x20   :  { %p5116_p1 = pnand %p5115_p0, %p5109_p11 }
  0x22   :  { %5119 = shalt.err (!%p5116_p1)
}
  0x23   :  { %22 = dma.hbm_to_vmem [thread:$0]  %s6112_s0, 512, %s20_s8, [#allocation3]  }
  0x24   :  { %s5120_s22 = scalar_lea.hbm %s6114_s2, 256 }
  0x25   :  { %p5121_p2 = scmp.ne.s32.totalorder %s6114_s2, %s5120_s22  ;;  %p5124_p3 = scmp.lt.u32.totalorder %s5120_s22, %s6114_s2 }
  0x27   :  { %p5126_p4 = pnand %p5124_p3, %p5121_p2 }
  0x29   :  { %5129 = shalt.err (!%p5126_p4)
}
  0x2a   :  { %s5130_s27 = scalar_lea.vmem %s42_s10, 256  ;;  %p5135_p6 = scmp.lt.s32.totalorder %s42_s10, %s42_s10 }
  0x2b   :  { %p5131_p5 = scmp.ne.s32.totalorder %s42_s10, %s5130_s27  ;;  %p5136_p7 = scmp.lt.s32.totalorder %s5130_s27, %s5130_s27 }
  0x2d   :  { %p5137_p8 = por %p5136_p7, %p5135_p6 }
  0x2f   :  { %p5138_p9 = pnand %p5137_p8, %p5131_p5 }
  0x31   :  { %5141 = shalt.err (!%p5138_p9)
}
  0x32   :  { %44 = dma.hbm_to_vmem [thread:$0]  %s6114_s2, 256, %s42_s10, [#allocation5]  }
  0x33   :  { %s5175_s29 = smov [#allocation7]   ;;  %s5142_s8 = scalar_lea.hbm %s6116_s4, 16 }
  0x34   :  { %s53_s30 = sshll.u32 %s5175_s29, 4  ;;  %p5143_p10 = scmp.ne.s32.totalorder %s6116_s4, %s5142_s8  ;;  %s54_s30 = int_to_ptr.vmem [resolvable:$true] %s53_s30 }
  0x35   :  { %p5146_p11 = scmp.lt.u32.totalorder %s5142_s8, %s6116_s4 }
  0x37   :  { %p5148_p12 = pnand %p5146_p11, %p5143_p10 }
  0x39   :  { %5151 = shalt.err (!%p5148_p12)
}
  0x3a   :  { %s5152_s14 = scalar_lea.vmem %s54_s30, 16  ;;  %s5156_s2 = scalar_lea.vmem %s54_s30, 32 }
  0x3b   :  { %p5153_p13 = scmp.ne.s32.totalorder %s54_s30, %s5152_s14  ;;  %p5157_p0 = scmp.lt.s32.totalorder %s54_s30, %s54_s30 }
  0x3c   :  { %p5158_p1 = scmp.lt.s32.totalorder %s5156_s2, %s5152_s14 }
  0x3e   :  { %p5159_p2 = por %p5158_p1, %p5157_p0 }
  0x40   :  { %p5160_p3 = pnand %p5159_p2, %p5153_p13 }
  0x42   :  { %5163 = shalt.err (!%p5160_p3)
}
  0x43   :  { %56 = dma.hbm_to_vmem [thread:$0]  %s6116_s4, 16, %s54_s30, [#allocation8]  }
  0x44   :  { %5164 = dma.done.wait [#allocation3], 512  }
  0x45   :  { %5165 = vsyncadd [#allocation3], 4294966784 }
  0x46   :  { %5166 = dma.done.wait [#allocation5], 51456  }
  0x47   :  { %5167 = vsyncadd [#allocation5], 4294915840 }
  0x48   :  { %5168 = dma.done.wait [#allocation8], 16  }
  0x49   :  { %5169 = vsyncadd [#allocation8], 4294967280  ;;  %v78_v0 = vld [vmem:[#allocation4] sm:$0xff]  ;;  %v79_v2 = vld [vmem:[#allocation4 + $0x8] sm:$0xff]  ;;  %vm700_vm0 = vcmask 130048   ;;  %vm4068_vm1 = vcmask 31744  }
  0x4a   :  { %v80_v1 = vld [vmem:[#allocation4 + $0x40] sm:$0xff]  ;;  %v81_v4 = vld [vmem:[#allocation4 + $0x48] sm:$0xff] }
  0x4b   :  { %v4078_v3 = vcombine.high %v78_v0, %v80_v1  ;;  %v4077_v5 = vcombine.low %v78_v0, %v80_v1  ;;  %v82_v6 = vld [vmem:[#allocation4 + $0x80] sm:$0xff]  ;;  %v4080_v8 = vcombine.high %v79_v2, %v81_v4  ;;  %v4079_v9 = vcombine.low %v79_v2, %v81_v4  ;;  %v83_v11 = vld [vmem:[#allocation4 + $0x88] sm:$0xff] }
  0x4c   :  { %v84_v7 = vld [vmem:[#allocation4 + $0xc0] sm:$0xff]  ;;  %v85_v12 = vld [vmem:[#allocation4 + $0xc8] sm:$0xff] }
  0x4d   :  { %v4082_v10 = vcombine.high %v82_v6, %v84_v7  ;;  %v86_v13 = vld [vmem:[#allocation4 + $0x100] sm:$0xff]  ;;  %704 = vmatprep.subr.bf16.mxu0 %v4078_v3  ;;  %v4084_v14 = vcombine.high %v83_v11, %v85_v12  ;;  %v87_v16 = vld [vmem:[#allocation4 + $0x108] sm:$0xff]  ;;  %786 = vmatprep.subr.bf16.mxu1 %v4080_v8  ;;  %v4081_v18 = vcombine.low %v82_v6, %v84_v7 }
  0x4e   :  { %v88_v15 = vld [vmem:[#allocation4 + $0x140] sm:$0xff]  ;;  %v89_v17 = vld [vmem:[#allocation4 + $0x148] sm:$0xff]  ;;  %705 = vmatpush1.bf16.msra.mxu0 %v4077_v5  ;;  %787 = vmatpush1.bf16.msra.mxu1 %v4079_v9  ;;  %v4083_v19 = vcombine.low %v83_v11, %v85_v12 }
  0x4f   :  { %706 = vmatprep.subr.bf16.mxu0 %v4082_v10  ;;  %v4086_v20 = vcombine.high %v86_v13, %v88_v15  ;;  %788 = vmatprep.subr.bf16.mxu1 %v4084_v14  ;;  %v4088_v21 = vcombine.high %v87_v16, %v89_v17  ;;  %v90_v22 = vld [vmem:[#allocation4 + $0x180] sm:$0xff]  ;;  %v91_v24 = vld [vmem:[#allocation4 + $0x188] sm:$0xff]  ;;  %v4085_v26 = vcombine.low %v86_v13, %v88_v15 }
  0x50   :  { %v92_v23 = vld [vmem:[#allocation4 + $0x1c0] sm:$0xff]  ;;  %v93_v25 = vld [vmem:[#allocation4 + $0x1c8] sm:$0xff]  ;;  %v4087_v27 = vcombine.low %v87_v16, %v89_v17 }
  0x51   :  { %v4090_v28 = vcombine.high %v90_v22, %v92_v23  ;;  %v4092_v29 = vcombine.high %v91_v24, %v93_v25  ;;  %v94_v30 = vld [vmem:[#allocation4 + $0x200] sm:$0xff]  ;;  %v95_v32 = vld [vmem:[#allocation4 + $0x208] sm:$0xff]  ;;  %v4089_v34 = vcombine.low %v90_v22, %v92_v23  ;;  %v4091_v35 = vcombine.low %v91_v24, %v93_v25 }
  0x52   :  { %707 = vmatpush1.bf16.msra.mxu0 %v4081_v18  ;;  %789 = vmatpush1.bf16.msra.mxu1 %v4083_v19  ;;  %v96_v31 = vld [vmem:[#allocation4 + $0x240] sm:$0xff]  ;;  %v97_v33 = vld [vmem:[#allocation4 + $0x248] sm:$0xff] }
  0x53   :  { %708 = vmatprep.subr.bf16.mxu0 %v4086_v20  ;;  %790 = vmatprep.subr.bf16.mxu1 %v4088_v21  ;;  %v4094_v36 = vcombine.high %v94_v30, %v96_v31  ;;  %v4096_v37 = vcombine.high %v95_v32, %v97_v33  ;;  %v98_v38 = vld [vmem:[#allocation4 + $0x280] sm:$0xff]  ;;  %v99_v40 = vld [vmem:[#allocation4 + $0x288] sm:$0xff]  ;;  %v4093_v42 = vcombine.low %v94_v30, %v96_v31 }
  0x54   :  { %v100_v39 = vld [vmem:[#allocation4 + $0x2c0] sm:$0xff]  ;;  %v101_v41 = vld [vmem:[#allocation4 + $0x2c8] sm:$0xff]  ;;  %v4095_v43 = vcombine.low %v95_v32, %v97_v33 }
  0x55   :  { %v4098_v44 = vcombine.high %v98_v38, %v100_v39  ;;  %v4100_v45 = vcombine.high %v99_v40, %v101_v41  ;;  %v102_v46 = vld [vmem:[#allocation4 + $0x300] sm:$0xff]  ;;  %v103_v48 = vld [vmem:[#allocation4 + $0x308] sm:$0xff]  ;;  %v4097_v50 = vcombine.low %v98_v38, %v100_v39  ;;  %v4099_v51 = vcombine.low %v99_v40, %v101_v41 }
  0x56   :  { %709 = vmatpush1.bf16.msra.mxu0 %v4085_v26  ;;  %791 = vmatpush1.bf16.msra.mxu1 %v4087_v27  ;;  %v104_v47 = vld [vmem:[#allocation4 + $0x340] sm:$0xff]  ;;  %v105_v49 = vld [vmem:[#allocation4 + $0x348] sm:$0xff] }
  0x57   :  { %710 = vmatprep.subr.bf16.mxu0 %v4090_v28  ;;  %792 = vmatprep.subr.bf16.mxu1 %v4092_v29  ;;  %v4102_v52 = vcombine.high %v102_v46, %v104_v47  ;;  %v71_v53 = vld [vmem:[#allocation2 + $0x8] sm:$0xff]  ;;  %v4104_v54 = vcombine.high %v103_v48, %v105_v49  ;;  %v106_v55 = vld [vmem:[#allocation4 + $0x380] sm:$0xff]  ;;  %v4101_v60 = vcombine.low %v102_v46, %v104_v47 }
  0x58   :  { %v108_v56 = vld [vmem:[#allocation4 + $0x3c0] sm:$0xff]  ;;  %v5254_v57 = vpack.c.bf16 %v71_v53, %v71_v53  ;;  %v107_v58 = vld [vmem:[#allocation4 + $0x388] sm:$0xff]  ;;  %v4103_v61 = vcombine.low %v103_v48, %v105_v49 }
  0x59   :  { %v109_v59 = vld [vmem:[#allocation4 + $0x3c8] sm:$0xff]  ;;  %v4106_v62 = vcombine.high %v106_v55, %v108_v56  ;;  %v110_v0 = vld [vmem:[#allocation4 + $0x400] sm:$0xff]  ;;  %v4105_v4 = vcombine.low %v106_v55, %v108_v56 }
  0x5a   :  { %711 = vmatpush1.bf16.msra.mxu0 %v4089_v34  ;;  %793 = vmatpush1.bf16.msra.mxu1 %v4091_v35  ;;  %v4108_v63 = vcombine.high %v107_v58, %v109_v59  ;;  %v112_v1 = vld [vmem:[#allocation4 + $0x440] sm:$0xff]  ;;  %v111_v2 = vld [vmem:[#allocation4 + $0x408] sm:$0xff]  ;;  %v4107_v5 = vcombine.low %v107_v58, %v109_v59 }
  0x5b   :  { %712 = vmatprep.subr.bf16.mxu0 %v4094_v36  ;;  %794 = vmatprep.subr.bf16.mxu1 %v4096_v37  ;;  %v113_v3 = vld [vmem:[#allocation4 + $0x448] sm:$0xff]  ;;  %v4110_v6 = vcombine.high %v110_v0, %v112_v1  ;;  %v114_v8 = vld [vmem:[#allocation4 + $0x480] sm:$0xff]  ;;  %v4109_v12 = vcombine.low %v110_v0, %v112_v1 }
  0x5c   :  { %736 = vmatprep.mubr.bf16.mxu0 %v5254_v57  ;;  %818 = vmatprep.mubr.bf16.mxu1 %v5254_v57  ;;  %v4112_v7 = vcombine.high %v111_v2, %v113_v3  ;;  %v116_v9 = vld [vmem:[#allocation4 + $0x4c0] sm:$0xff]  ;;  %v115_v10 = vld [vmem:[#allocation4 + $0x488] sm:$0xff]  ;;  %v4111_v13 = vcombine.low %v111_v2, %v113_v3 }
  0x5d   :  { %v117_v11 = vld [vmem:[#allocation4 + $0x4c8] sm:$0xff]  ;;  %v4114_v14 = vcombine.high %v114_v8, %v116_v9  ;;  %v118_v16 = vld [vmem:[#allocation4 + $0x500] sm:$0xff]  ;;  %v4113_v20 = vcombine.low %v114_v8, %v116_v9 }
  0x5e   :  { %713 = vmatpush1.bf16.msra.mxu0 %v4093_v42  ;;  %795 = vmatpush1.bf16.msra.mxu1 %v4095_v43  ;;  %v4116_v15 = vcombine.high %v115_v10, %v117_v11  ;;  %v120_v17 = vld [vmem:[#allocation4 + $0x540] sm:$0xff]  ;;  %v119_v18 = vld [vmem:[#allocation4 + $0x508] sm:$0xff]  ;;  %v4115_v21 = vcombine.low %v115_v10, %v117_v11 }
  0x5f   :  { %714 = vmatprep.subr.bf16.mxu0 %v4098_v44  ;;  %796 = vmatprep.subr.bf16.mxu1 %v4100_v45  ;;  %v121_v19 = vld [vmem:[#allocation4 + $0x548] sm:$0xff]  ;;  %v4118_v22 = vcombine.high %v118_v16, %v120_v17  ;;  %v122_v24 = vld [vmem:[#allocation4 + $0x580] sm:$0xff]  ;;  %v4117_v28 = vcombine.low %v118_v16, %v120_v17 }
  0x60   :  { %v4120_v23 = vcombine.high %v119_v18, %v121_v19  ;;  %v124_v25 = vld [vmem:[#allocation4 + $0x5c0] sm:$0xff]  ;;  %v123_v26 = vld [vmem:[#allocation4 + $0x588] sm:$0xff]  ;;  %v4119_v29 = vcombine.low %v119_v18, %v121_v19 }
  0x61   :  { %v125_v27 = vld [vmem:[#allocation4 + $0x5c8] sm:$0xff]  ;;  %v4122_v30 = vcombine.high %v122_v24, %v124_v25  ;;  %v126_v32 = vld [vmem:[#allocation4 + $0x600] sm:$0xff]  ;;  %v4121_v36 = vcombine.low %v122_v24, %v124_v25 }
  0x62   :  { %715 = vmatpush1.bf16.msra.mxu0 %v4097_v50  ;;  %797 = vmatpush1.bf16.msra.mxu1 %v4099_v51  ;;  %v4124_v31 = vcombine.high %v123_v26, %v125_v27  ;;  %v128_v33 = vld [vmem:[#allocation4 + $0x640] sm:$0xff]  ;;  %v127_v34 = vld [vmem:[#allocation4 + $0x608] sm:$0xff]  ;;  %v4123_v37 = vcombine.low %v123_v26, %v125_v27 }
  0x63   :  { %716 = vmatprep.subr.bf16.mxu0 %v4102_v52  ;;  %798 = vmatprep.subr.bf16.mxu1 %v4104_v54  ;;  %v129_v35 = vld [vmem:[#allocation4 + $0x648] sm:$0xff]  ;;  %v4126_v38 = vcombine.high %v126_v32, %v128_v33  ;;  %v130_v40 = vld [vmem:[#allocation4 + $0x680] sm:$0xff]  ;;  %v4125_v44 = vcombine.low %v126_v32, %v128_v33 }
  0x64   :  { %v4128_v39 = vcombine.high %v127_v34, %v129_v35  ;;  %v132_v41 = vld [vmem:[#allocation4 + $0x6c0] sm:$0xff]  ;;  %v131_v42 = vld [vmem:[#allocation4 + $0x688] sm:$0xff]  ;;  %v4127_v45 = vcombine.low %v127_v34, %v129_v35 }
  0x65   :  { %v133_v43 = vld [vmem:[#allocation4 + $0x6c8] sm:$0xff]  ;;  %v4130_v46 = vcombine.high %v130_v40, %v132_v41  ;;  %v134_v48 = vld [vmem:[#allocation4 + $0x700] sm:$0xff]  ;;  %v4129_v52 = vcombine.low %v130_v40, %v132_v41 }
  0x66   :  { %717 = vmatpush1.bf16.msra.mxu0 %v4101_v60  ;;  %799 = vmatpush1.bf16.msra.mxu1 %v4103_v61  ;;  %v4132_v47 = vcombine.high %v131_v42, %v133_v43  ;;  %v136_v49 = vld [vmem:[#allocation4 + $0x740] sm:$0xff]  ;;  %v135_v50 = vld [vmem:[#allocation4 + $0x708] sm:$0xff]  ;;  %v4131_v53 = vcombine.low %v131_v42, %v133_v43 }
  0x67   :  { %718 = vmatprep.subr.bf16.mxu0 %v4106_v62  ;;  %800 = vmatprep.subr.bf16.mxu1 %v4108_v63  ;;  %v137_v51 = vld [vmem:[#allocation4 + $0x748] sm:$0xff]  ;;  %v4134_v54 = vcombine.high %v134_v48, %v136_v49  ;;  %v138_v56 = vld [vmem:[#allocation4 + $0x780] sm:$0xff]  ;;  %v4133_v61 = vcombine.low %v134_v48, %v136_v49 }
  0x68   :  { %v4136_v55 = vcombine.high %v135_v50, %v137_v51  ;;  %v140_v58 = vld [vmem:[#allocation4 + $0x7c0] sm:$0xff]  ;;  %v139_v59 = vld [vmem:[#allocation4 + $0x788] sm:$0xff]  ;;  %v4135_v62 = vcombine.low %v135_v50, %v137_v51 }
  0x69   :  { %v141_v60 = vld [vmem:[#allocation4 + $0x7c8] sm:$0xff]  ;;  %v4138_v63 = vcombine.high %v138_v56, %v140_v58  ;;  %v142_v1 = vld [vmem:[#allocation4 + $0x800] sm:$0xff] }
  0x6a   :  { %719 = vmatpush1.bf16.msra.mxu0 %v4105_v4  ;;  %801 = vmatpush1.bf16.msra.mxu1 %v4107_v5  ;;  %v4140_v0 = vcombine.high %v139_v59, %v141_v60  ;;  %v144_v2 = vld [vmem:[#allocation4 + $0x840] sm:$0xff]  ;;  %v143_v3 = vld [vmem:[#allocation4 + $0x808] sm:$0xff]  ;;  %v4137_v5 = vcombine.low %v138_v56, %v140_v58 }
  0x6b   :  { %720 = vmatprep.subr.bf16.mxu0 %v4110_v6  ;;  %802 = vmatprep.subr.bf16.mxu1 %v4112_v7  ;;  %v145_v4 = vld [vmem:[#allocation4 + $0x848] sm:$0xff]  ;;  %v70_v6 = vld [vmem:[#allocation2] sm:$0xff]  ;;  %v4139_v7 = vcombine.low %v139_v59, %v141_v60  ;;  %v4142_v8 = vcombine.high %v142_v1, %v144_v2  ;;  %v4141_v16 = vcombine.low %v142_v1, %v144_v2 }
  0x6c   :  { %v4144_v9 = vcombine.high %v143_v3, %v145_v4  ;;  %v146_v10 = vld [vmem:[#allocation4 + $0x880] sm:$0xff]  ;;  %v4143_v17 = vcombine.low %v143_v3, %v145_v4  ;;  %v153_v24 = vld [vmem:[#allocation4 + $0x948] sm:$0xff] }
  0x6d   :  { %v148_v11 = vld [vmem:[#allocation4 + $0x8c0] sm:$0xff]  ;;  %v157_v32 = vld [vmem:[#allocation4 + $0x9c8] sm:$0xff] }
  0x6e   :  { %721 = vmatpush1.bf16.msra.mxu0 %v4109_v12  ;;  %803 = vmatpush1.bf16.msra.mxu1 %v4111_v13  ;;  %v5258_v12 = vpack.c.bf16 %v70_v6, %v70_v6  ;;  %v147_v13 = vld [vmem:[#allocation4 + $0x888] sm:$0xff]  ;;  %v4146_v18 = vcombine.high %v146_v10, %v148_v11  ;;  %v4145_v25 = vcombine.low %v146_v10, %v148_v11  ;;  %v174_v6 = vld [vmem:[#allocation4 + $0xc00] sm:$0xff] }
  0x6f   :  { %722 = vmatprep.subr.bf16.mxu0 %v4114_v14  ;;  %804 = vmatprep.subr.bf16.mxu1 %v4116_v15  ;;  %v149_v14 = vld [vmem:[#allocation4 + $0x8c8] sm:$0xff]  ;;  %v73_v15 = vld [vmem:[#allocation2 + $0x18] sm:$0xff] }
  0x70   :  { %v4148_v19 = vcombine.high %v147_v13, %v149_v14  ;;  %v4147_v26 = vcombine.low %v147_v13, %v149_v14  ;;  %v161_v40 = vld [vmem:[#allocation4 + $0xa48] sm:$0xff] }
  0x71   :  { %v165_v48 = vld [vmem:[#allocation4 + $0xac8] sm:$0xff] }
  0x72   :  { %723 = vmatpush1.bf16.msra.mxu0 %v4113_v20  ;;  %805 = vmatpush1.bf16.msra.mxu1 %v4115_v21  ;;  %v150_v20 = vld [vmem:[#allocation4 + $0x900] sm:$0xff]  ;;  %v169_v56 = vld [vmem:[#allocation4 + $0xb48] sm:$0xff] }
  0x73   :  { %724 = vmatprep.subr.bf16.mxu0 %v4118_v22  ;;  %806 = vmatprep.subr.bf16.mxu1 %v4120_v23  ;;  %v152_v21 = vld [vmem:[#allocation4 + $0x940] sm:$0xff]  ;;  %v5260_v22 = vpack.c.bf16 %v73_v15, %v73_v15  ;;  %v151_v23 = vld [vmem:[#allocation4 + $0x908] sm:$0xff]  ;;  %v936_v15 = vld [vmem:[#allocation4 + $0x10] sm:$0xff] }
  0x74   :  { %v4150_v27 = vcombine.high %v150_v20, %v152_v21  ;;  %v4149_v33 = vcombine.low %v150_v20, %v152_v21  ;;  %v4151_v34 = vcombine.low %v151_v23, %v153_v24  ;;  %v173_v1 = vld [vmem:[#allocation4 + $0xbc8] sm:$0xff]  ;;  %v72_v20 = vld [vmem:[#allocation2 + $0x10] sm:$0xff] }
  0x76   :  { %725 = vmatpush1.bf16.msra.mxu0 %v4117_v28  ;;  %807 = vmatpush1.bf16.msra.mxu1 %v4119_v29  ;;  %v4152_v28 = vcombine.high %v151_v23, %v153_v24  ;;  %v154_v29 = vld [vmem:[#allocation4 + $0x980] sm:$0xff] }
  0x77   :  { %726 = vmatprep.subr.bf16.mxu0 %v4122_v30  ;;  %808 = vmatprep.subr.bf16.mxu1 %v4124_v31  ;;  %v156_v30 = vld [vmem:[#allocation4 + $0x9c0] sm:$0xff]  ;;  %v155_v31 = vld [vmem:[#allocation4 + $0x988] sm:$0xff] }
  0x78   :  { %v4154_v35 = vcombine.high %v154_v29, %v156_v30  ;;  %v4153_v41 = vcombine.low %v154_v29, %v156_v30  ;;  %v4155_v42 = vcombine.low %v155_v31, %v157_v32  ;;  %v943_v29 = vld [vmem:[#allocation4 + $0xd8] sm:$0xff] }
  0x7a   :  { %727 = vmatpush1.bf16.msra.mxu0 %v4121_v36  ;;  %809 = vmatpush1.bf16.msra.mxu1 %v4123_v37  ;;  %v4156_v36 = vcombine.high %v155_v31, %v157_v32  ;;  %v158_v37 = vld [vmem:[#allocation4 + $0xa00] sm:$0xff] }
  0x7b   :  { %728 = vmatprep.subr.bf16.mxu0 %v4126_v38  ;;  %810 = vmatprep.subr.bf16.mxu1 %v4128_v39  ;;  %v160_v38 = vld [vmem:[#allocation4 + $0xa40] sm:$0xff]  ;;  %v159_v39 = vld [vmem:[#allocation4 + $0xa08] sm:$0xff] }
  0x7c   :  { %v4158_v43 = vcombine.high %v158_v37, %v160_v38  ;;  %v4157_v49 = vcombine.low %v158_v37, %v160_v38  ;;  %v4159_v50 = vcombine.low %v159_v39, %v161_v40  ;;  %v947_v37 = vld [vmem:[#allocation4 + $0x158] sm:$0xff] }
  0x7e   :  { %729 = vmatpush1.bf16.msra.mxu0 %v4125_v44  ;;  %811 = vmatpush1.bf16.msra.mxu1 %v4127_v45  ;;  %v4160_v44 = vcombine.high %v159_v39, %v161_v40  ;;  %v162_v45 = vld [vmem:[#allocation4 + $0xa80] sm:$0xff] }
  0x7f   :  { %730 = vmatprep.subr.bf16.mxu0 %v4130_v46  ;;  %812 = vmatprep.subr.bf16.mxu1 %v4132_v47  ;;  %v164_v46 = vld [vmem:[#allocation4 + $0xac0] sm:$0xff]  ;;  %v163_v47 = vld [vmem:[#allocation4 + $0xa88] sm:$0xff] }
  0x80   :  { %v4162_v51 = vcombine.high %v162_v45, %v164_v46  ;;  %v4161_v58 = vcombine.low %v162_v45, %v164_v46  ;;  %v4163_v59 = vcombine.low %v163_v47, %v165_v48  ;;  %v951_v45 = vld [vmem:[#allocation4 + $0x1d8] sm:$0xff] }
  0x82   :  { %731 = vmatpush1.bf16.msra.mxu0 %v4129_v52  ;;  %813 = vmatpush1.bf16.msra.mxu1 %v4131_v53  ;;  %v4164_v52 = vcombine.high %v163_v47, %v165_v48  ;;  %v166_v53 = vld [vmem:[#allocation4 + $0xb00] sm:$0xff] }
  0x83   :  { %732 = vmatprep.subr.bf16.mxu0 %v4134_v54  ;;  %814 = vmatprep.subr.bf16.mxu1 %v4136_v55  ;;  %v168_v54 = vld [vmem:[#allocation4 + $0xb40] sm:$0xff]  ;;  %v167_v55 = vld [vmem:[#allocation4 + $0xb08] sm:$0xff] }
  0x84   :  { %v4166_v60 = vcombine.high %v166_v53, %v168_v54  ;;  %v4165_v2 = vcombine.low %v166_v53, %v168_v54  ;;  %v4167_v3 = vcombine.low %v167_v55, %v169_v56  ;;  %v955_v53 = vld [vmem:[#allocation4 + $0x258] sm:$0xff] }
  0x86   :  { %733 = vmatpush1.bf16.msra.mxu0 %v4133_v61  ;;  %815 = vmatpush1.bf16.msra.mxu1 %v4135_v62  ;;  %v4168_v61 = vcombine.high %v167_v55, %v169_v56  ;;  %v170_v62 = vld [vmem:[#allocation4 + $0xb80] sm:$0xff] }
  0x87   :  { %734 = vmatprep.subr.bf16.mxu0 %v4138_v63  ;;  %816 = vmatprep.subr.bf16.mxu1 %v4140_v0  ;;  %v172_v63 = vld [vmem:[#allocation4 + $0xbc0] sm:$0xff]  ;;  %v171_v0 = vld [vmem:[#allocation4 + $0xb88] sm:$0xff] }
  0x88   :  { %v4170_v4 = vcombine.high %v170_v62, %v172_v63  ;;  %v4169_v10 = vcombine.low %v170_v62, %v172_v63  ;;  %v4171_v11 = vcombine.low %v171_v0, %v173_v1  ;;  %v959_v62 = vld [vmem:[#allocation4 + $0x2d8] sm:$0xff] }
  0x8a   :  { %735 = vmatpush1.bf16.msra.mxu0 %v4137_v5  ;;  %817 = vmatpush1.bf16.msra.mxu1 %v4139_v7  ;;  %v4172_v5 = vcombine.high %v171_v0, %v173_v1  ;;  %v176_v7 = vld [vmem:[#allocation4 + $0xc40] sm:$0xff] }
  0x8b   :  { %745 = vmatprep.subr.bf16.mxu0 %v4142_v8  ;;  %827 = vmatprep.subr.bf16.mxu1 %v4144_v9  ;;  %v175_v8 = vld [vmem:[#allocation4 + $0xc08] sm:$0xff]  ;;  %v4174_v13 = vcombine.high %v174_v6, %v176_v7 }
  0x8c   :  { %v177_v9 = vld [vmem:[#allocation4 + $0xc48] sm:$0xff] }
  0x8d   :  { %737 = vmatmul.mubr.bf16.vlgmr.msra.gmra.mrb[0].mxu0 %v5258_v12  ;;  %819 = vmatmul.mubr.bf16.vlgmr.msra.gmra.mrb[0].mxu1 %v5258_v12  ;;  %v4176_v14 = vcombine.high %v175_v8, %v177_v9  ;;  %v4175_v21 = vcombine.low %v175_v8, %v177_v9 }
  0x8e   :  { %746 = vmatpush1.bf16.msra.mxu0 %v4141_v16  ;;  %828 = vmatpush1.bf16.msra.mxu1 %v4143_v17  ;;  %v938_v16 = vld [vmem:[#allocation4 + $0x50] sm:$0xff]  ;;  %v937_v17 = vld [vmem:[#allocation4 + $0x18] sm:$0xff] }
  0x8f   :  { %747 = vmatprep.subr.bf16.mxu0 %v4146_v18  ;;  %829 = vmatprep.subr.bf16.mxu1 %v4148_v19  ;;  %v939_v18 = vld [vmem:[#allocation4 + $0x58] sm:$0xff]  ;;  %v4173_v19 = vcombine.low %v174_v6, %v176_v7  ;;  %v4180_v23 = vcombine.high %v936_v15, %v938_v16  ;;  %v4179_v30 = vcombine.low %v936_v15, %v938_v16 }
  0x90   :  { %4177 = vmatprep.mubr.msk.bf16.mxu0 %vm700_vm0, %v5260_v22  ;;  %4178 = vmatprep.mubr.msk.bf16.mxu1 %vm700_vm0, %v5260_v22  ;;  %v4182_v24 = vcombine.high %v937_v17, %v939_v18  ;;  %v4181_v31 = vcombine.low %v937_v17, %v939_v18  ;;  %v963_v6 = vld [vmem:[#allocation4 + $0x358] sm:$0xff] }
  0x91   :  { %v967_v15 = vld [vmem:[#allocation4 + $0x3d8] sm:$0xff] }
  0x92   :  { %748 = vmatpush1.bf16.msra.mxu0 %v4145_v25  ;;  %830 = vmatpush1.bf16.msra.mxu1 %v4147_v26  ;;  %v940_v25 = vld [vmem:[#allocation4 + $0x90] sm:$0xff] }
  0x93   :  { %749 = vmatprep.subr.bf16.mxu0 %v4150_v27  ;;  %831 = vmatprep.subr.bf16.mxu1 %v4152_v28  ;;  %v942_v26 = vld [vmem:[#allocation4 + $0xd0] sm:$0xff]  ;;  %v5268_v27 = vpack.c.bf16 %v72_v20, %v72_v20  ;;  %v941_v28 = vld [vmem:[#allocation4 + $0x98] sm:$0xff] }
  0x94   :  { %v4184_v32 = vcombine.high %v940_v25, %v942_v26  ;;  %v4183_v38 = vcombine.low %v940_v25, %v942_v26  ;;  %v4185_v39 = vcombine.low %v941_v28, %v943_v29  ;;  %v968_v20 = vld [vmem:[#allocation4 + $0x410] sm:$0xff] }
  0x96   :  { %750 = vmatpush1.bf16.msra.mxu0 %v4149_v33  ;;  %832 = vmatpush1.bf16.msra.mxu1 %v4151_v34  ;;  %v4186_v33 = vcombine.high %v941_v28, %v943_v29  ;;  %v944_v34 = vld [vmem:[#allocation4 + $0x110] sm:$0xff] }
  0x97   :  { %751 = vmatprep.subr.bf16.mxu0 %v4154_v35  ;;  %833 = vmatprep.subr.bf16.mxu1 %v4156_v36  ;;  %v946_v35 = vld [vmem:[#allocation4 + $0x150] sm:$0xff]  ;;  %v945_v36 = vld [vmem:[#allocation4 + $0x118] sm:$0xff] }
  0x98   :  { %v4188_v40 = vcombine.high %v944_v34, %v946_v35  ;;  %v4187_v46 = vcombine.low %v944_v34, %v946_v35  ;;  %v4189_v47 = vcombine.low %v945_v36, %v947_v37 }
  0x9a   :  { %752 = vmatpush1.bf16.msra.mxu0 %v4153_v41  ;;  %834 = vmatpush1.bf16.msra.mxu1 %v4155_v42  ;;  %v4190_v41 = vcombine.high %v945_v36, %v947_v37  ;;  %v948_v42 = vld [vmem:[#allocation4 + $0x190] sm:$0xff] }
  0x9b   :  { %753 = vmatprep.subr.bf16.mxu0 %v4158_v43  ;;  %835 = vmatprep.subr.bf16.mxu1 %v4160_v44  ;;  %v950_v43 = vld [vmem:[#allocation4 + $0x1d0] sm:$0xff]  ;;  %v949_v44 = vld [vmem:[#allocation4 + $0x198] sm:$0xff] }
  0x9c   :  { %v4192_v48 = vcombine.high %v948_v42, %v950_v43  ;;  %v4191_v54 = vcombine.low %v948_v42, %v950_v43  ;;  %v4193_v55 = vcombine.low %v949_v44, %v951_v45 }
  0x9e   :  { %754 = vmatpush1.bf16.msra.mxu0 %v4157_v49  ;;  %836 = vmatpush1.bf16.msra.mxu1 %v4159_v50  ;;  %v4194_v49 = vcombine.high %v949_v44, %v951_v45  ;;  %v952_v50 = vld [vmem:[#allocation4 + $0x210] sm:$0xff] }
  0x9f   :  { %755 = vmatprep.subr.bf16.mxu0 %v4162_v51  ;;  %837 = vmatprep.subr.bf16.mxu1 %v4164_v52  ;;  %v954_v51 = vld [vmem:[#allocation4 + $0x250] sm:$0xff]  ;;  %v953_v52 = vld [vmem:[#allocation4 + $0x218] sm:$0xff] }
  0xa0   :  { %v4196_v56 = vcombine.high %v952_v50, %v954_v51  ;;  %v4195_v63 = vcombine.low %v952_v50, %v954_v51  ;;  %v4197_v0 = vcombine.low %v953_v52, %v955_v53 }
  0xa2   :  { %756 = vmatpush1.bf16.msra.mxu0 %v4161_v58  ;;  %838 = vmatpush1.bf16.msra.mxu1 %v4163_v59  ;;  %v4198_v58 = vcombine.high %v953_v52, %v955_v53  ;;  %v956_v59 = vld [vmem:[#allocation4 + $0x290] sm:$0xff] }
  0xa3   :  { %757 = vmatprep.subr.bf16.mxu0 %v4166_v60  ;;  %839 = vmatprep.subr.bf16.mxu1 %v4168_v61  ;;  %v958_v60 = vld [vmem:[#allocation4 + $0x2d0] sm:$0xff]  ;;  %v957_v61 = vld [vmem:[#allocation4 + $0x298] sm:$0xff] }
  0xa4   :  { %v4200_v1 = vcombine.high %v956_v59, %v958_v60  ;;  %v4199_v7 = vcombine.low %v956_v59, %v958_v60  ;;  %v4201_v8 = vcombine.low %v957_v61, %v959_v62 }
  0xa6   :  { %758 = vmatpush1.bf16.msra.mxu0 %v4165_v2  ;;  %840 = vmatpush1.bf16.msra.mxu1 %v4167_v3  ;;  %v4202_v2 = vcombine.high %v957_v61, %v959_v62  ;;  %v960_v3 = vld [vmem:[#allocation4 + $0x310] sm:$0xff] }
  0xa7   :  { %759 = vmatprep.subr.bf16.mxu0 %v4170_v4  ;;  %841 = vmatprep.subr.bf16.mxu1 %v4172_v5  ;;  %v962_v4 = vld [vmem:[#allocation4 + $0x350] sm:$0xff]  ;;  %v961_v5 = vld [vmem:[#allocation4 + $0x318] sm:$0xff] }
  0xa8   :  { %v4204_v9 = vcombine.high %v960_v3, %v962_v4  ;;  %v4203_v16 = vcombine.low %v960_v3, %v962_v4  ;;  %v4205_v17 = vcombine.low %v961_v5, %v963_v6 }
  0xaa   :  { %760 = vmatpush1.bf16.msra.mxu0 %v4169_v10  ;;  %842 = vmatpush1.bf16.msra.mxu1 %v4171_v11  ;;  %v4206_v10 = vcombine.high %v961_v5, %v963_v6  ;;  %v964_v11 = vld [vmem:[#allocation4 + $0x390] sm:$0xff] }
  0xab   :  { %761 = vmatprep.subr.bf16.mxu0 %v4174_v13  ;;  %843 = vmatprep.subr.bf16.mxu1 %v4176_v14  ;;  %v966_v13 = vld [vmem:[#allocation4 + $0x3d0] sm:$0xff]  ;;  %v965_v14 = vld [vmem:[#allocation4 + $0x398] sm:$0xff] }
  0xac   :  { %v4208_v18 = vcombine.high %v964_v11, %v966_v13  ;;  %v4207_v25 = vcombine.low %v964_v11, %v966_v13  ;;  %v4209_v26 = vcombine.low %v965_v14, %v967_v15 }
  0xae   :  { %762 = vmatpush1.bf16.msra.mxu0 %v4173_v19  ;;  %844 = vmatpush1.bf16.msra.mxu1 %v4175_v21  ;;  %v4210_v19 = vcombine.high %v965_v14, %v967_v15  ;;  %v970_v21 = vld [vmem:[#allocation4 + $0x450] sm:$0xff] }
  0xaf   :  { %1558 = vmatprep.subr.bf16.mxu0 %v4180_v23  ;;  %1640 = vmatprep.subr.bf16.mxu1 %v4182_v24  ;;  %v969_v23 = vld [vmem:[#allocation4 + $0x418] sm:$0xff]  ;;  %v4212_v28 = vcombine.high %v968_v20, %v970_v21  ;;  %v4211_v34 = vcombine.low %v968_v20, %v970_v21 }
  0xb0   :  { %v971_v24 = vld [vmem:[#allocation4 + $0x458] sm:$0xff] }
  0xb1   :  { %778 = vmatmul.mubr.bf16.vlgmr.msra.gmra.mrb[0].mxu0 %v5268_v27  ;;  %860 = vmatmul.mubr.bf16.vlgmr.msra.gmra.mrb[0].mxu1 %v5268_v27  ;;  %v4214_v29 = vcombine.high %v969_v23, %v971_v24  ;;  %v4213_v35 = vcombine.low %v969_v23, %v971_v24 }
  0xb2   :  { %1559 = vmatpush1.bf16.msra.mxu0 %v4179_v30  ;;  %1641 = vmatpush1.bf16.msra.mxu1 %v4181_v31  ;;  %v972_v30 = vld [vmem:[#allocation4 + $0x490] sm:$0xff] }
  0xb3   :  { %1560 = vmatprep.subr.bf16.mxu0 %v4184_v32  ;;  %1642 = vmatprep.subr.bf16.mxu1 %v4186_v33  ;;  %v974_v31 = vld [vmem:[#allocation4 + $0x4d0] sm:$0xff]  ;;  %v973_v32 = vld [vmem:[#allocation4 + $0x498] sm:$0xff] }
  0xb4   :  { %1590 = vmatprep.mubr.bf16.mxu0 %v5254_v57  ;;  %1672 = vmatprep.mubr.bf16.mxu1 %v5254_v57  ;;  %v975_v33 = vld [vmem:[#allocation4 + $0x4d8] sm:$0xff]  ;;  %v4216_v36 = vcombine.high %v972_v30, %v974_v31  ;;  %v4215_v42 = vcombine.low %v972_v30, %v974_v31 }
  0xb5   :  { %v4218_v37 = vcombine.high %v973_v32, %v975_v33  ;;  %v4217_v43 = vcombine.low %v973_v32, %v975_v33 }
  0xb6   :  { %1561 = vmatpush1.bf16.msra.mxu0 %v4183_v38  ;;  %1643 = vmatpush1.bf16.msra.mxu1 %v4185_v39  ;;  %v976_v38 = vld [vmem:[#allocation4 + $0x510] sm:$0xff] }
  0xb7   :  { %1562 = vmatprep.subr.bf16.mxu0 %v4188_v40  ;;  %1644 = vmatprep.subr.bf16.mxu1 %v4190_v41  ;;  %v978_v39 = vld [vmem:[#allocation4 + $0x550] sm:$0xff]  ;;  %v977_v40 = vld [vmem:[#allocation4 + $0x518] sm:$0xff] }
  0xb8   :  { %v979_v41 = vld [vmem:[#allocation4 + $0x558] sm:$0xff]  ;;  %v4220_v44 = vcombine.high %v976_v38, %v978_v39  ;;  %v4219_v50 = vcombine.low %v976_v38, %v978_v39 }
  0xb9   :  { %v4222_v45 = vcombine.high %v977_v40, %v979_v41  ;;  %v4221_v51 = vcombine.low %v977_v40, %v979_v41 }
  0xba   :  { %1563 = vmatpush1.bf16.msra.mxu0 %v4187_v46  ;;  %1645 = vmatpush1.bf16.msra.mxu1 %v4189_v47  ;;  %v980_v46 = vld [vmem:[#allocation4 + $0x590] sm:$0xff] }
  0xbb   :  { %1564 = vmatprep.subr.bf16.mxu0 %v4192_v48  ;;  %1646 = vmatprep.subr.bf16.mxu1 %v4194_v49  ;;  %v982_v47 = vld [vmem:[#allocation4 + $0x5d0] sm:$0xff]  ;;  %v981_v48 = vld [vmem:[#allocation4 + $0x598] sm:$0xff] }
  0xbc   :  { %v983_v49 = vld [vmem:[#allocation4 + $0x5d8] sm:$0xff]  ;;  %v4224_v52 = vcombine.high %v980_v46, %v982_v47  ;;  %v4223_v59 = vcombine.low %v980_v46, %v982_v47 }
  0xbd   :  { %v4226_v53 = vcombine.high %v981_v48, %v983_v49  ;;  %v4225_v60 = vcombine.low %v981_v48, %v983_v49 }
  0xbe   :  { %1565 = vmatpush1.bf16.msra.mxu0 %v4191_v54  ;;  %1647 = vmatpush1.bf16.msra.mxu1 %v4193_v55  ;;  %v984_v54 = vld [vmem:[#allocation4 + $0x610] sm:$0xff] }
  0xbf   :  { %1566 = vmatprep.subr.bf16.mxu0 %v4196_v56  ;;  %1648 = vmatprep.subr.bf16.mxu1 %v4198_v58  ;;  %v986_v55 = vld [vmem:[#allocation4 + $0x650] sm:$0xff]  ;;  %v985_v56 = vld [vmem:[#allocation4 + $0x618] sm:$0xff] }
  0xc0   :  { %v987_v58 = vld [vmem:[#allocation4 + $0x658] sm:$0xff]  ;;  %v4228_v61 = vcombine.high %v984_v54, %v986_v55  ;;  %v4227_v3 = vcombine.low %v984_v54, %v986_v55 }
  0xc1   :  { %v4230_v62 = vcombine.high %v985_v56, %v987_v58  ;;  %v4229_v4 = vcombine.low %v985_v56, %v987_v58 }
  0xc2   :  { %1567 = vmatpush1.bf16.msra.mxu0 %v4195_v63  ;;  %1649 = vmatpush1.bf16.msra.mxu1 %v4197_v0  ;;  %v988_v63 = vld [vmem:[#allocation4 + $0x690] sm:$0xff] }
  0xc3   :  { %1568 = vmatprep.subr.bf16.mxu0 %v4200_v1  ;;  %1650 = vmatprep.subr.bf16.mxu1 %v4202_v2  ;;  %v990_v0 = vld [vmem:[#allocation4 + $0x6d0] sm:$0xff]  ;;  %v989_v1 = vld [vmem:[#allocation4 + $0x698] sm:$0xff] }
  0xc4   :  { %v991_v2 = vld [vmem:[#allocation4 + $0x6d8] sm:$0xff]  ;;  %v4232_v5 = vcombine.high %v988_v63, %v990_v0  ;;  %v4231_v11 = vcombine.low %v988_v63, %v990_v0 }
  0xc5   :  { %v4234_v6 = vcombine.high %v989_v1, %v991_v2  ;;  %v4233_v13 = vcombine.low %v989_v1, %v991_v2 }
  0xc6   :  { %1569 = vmatpush1.bf16.msra.mxu0 %v4199_v7  ;;  %1651 = vmatpush1.bf16.msra.mxu1 %v4201_v8  ;;  %v992_v7 = vld [vmem:[#allocation4 + $0x710] sm:$0xff] }
  0xc7   :  { %1570 = vmatprep.subr.bf16.mxu0 %v4204_v9  ;;  %1652 = vmatprep.subr.bf16.mxu1 %v4206_v10  ;;  %v994_v8 = vld [vmem:[#allocation4 + $0x750] sm:$0xff]  ;;  %v993_v9 = vld [vmem:[#allocation4 + $0x718] sm:$0xff] }
  0xc8   :  { %v995_v10 = vld [vmem:[#allocation4 + $0x758] sm:$0xff]  ;;  %v4236_v14 = vcombine.high %v992_v7, %v994_v8  ;;  %v4235_v20 = vcombine.low %v992_v7, %v994_v8 }
  0xc9   :  { %v4238_v15 = vcombine.high %v993_v9, %v995_v10  ;;  %v4237_v21 = vcombine.low %v993_v9, %v995_v10 }
  0xca   :  { %1571 = vmatpush1.bf16.msra.mxu0 %v4203_v16  ;;  %1653 = vmatpush1.bf16.msra.mxu1 %v4205_v17  ;;  %v996_v16 = vld [vmem:[#allocation4 + $0x790] sm:$0xff] }
  0xcb   :  { %1572 = vmatprep.subr.bf16.mxu0 %v4208_v18  ;;  %1654 = vmatprep.subr.bf16.mxu1 %v4210_v19  ;;  %v998_v17 = vld [vmem:[#allocation4 + $0x7d0] sm:$0xff]  ;;  %v997_v18 = vld [vmem:[#allocation4 + $0x798] sm:$0xff] }
  0xcc   :  { %v999_v19 = vld [vmem:[#allocation4 + $0x7d8] sm:$0xff]  ;;  %v4240_v23 = vcombine.high %v996_v16, %v998_v17  ;;  %v4239_v30 = vcombine.low %v996_v16, %v998_v17 }
  0xcd   :  { %v4242_v24 = vcombine.high %v997_v18, %v999_v19  ;;  %v4241_v31 = vcombine.low %v997_v18, %v999_v19 }
  0xce   :  { %1573 = vmatpush1.bf16.msra.mxu0 %v4207_v25  ;;  %1655 = vmatpush1.bf16.msra.mxu1 %v4209_v26  ;;  %v1000_v25 = vld [vmem:[#allocation4 + $0x810] sm:$0xff] }
  0xcf   :  { %1574 = vmatprep.subr.bf16.mxu0 %v4212_v28  ;;  %1656 = vmatprep.subr.bf16.mxu1 %v4214_v29  ;;  %v1002_v26 = vld [vmem:[#allocation4 + $0x850] sm:$0xff]  ;;  %v1001_v28 = vld [vmem:[#allocation4 + $0x818] sm:$0xff] }
  0xd0   :  { %v1003_v29 = vld [vmem:[#allocation4 + $0x858] sm:$0xff]  ;;  %v4244_v32 = vcombine.high %v1000_v25, %v1002_v26  ;;  %v4243_v38 = vcombine.low %v1000_v25, %v1002_v26 }
  0xd1   :  { %v4246_v33 = vcombine.high %v1001_v28, %v1003_v29  ;;  %v4245_v39 = vcombine.low %v1001_v28, %v1003_v29 }
  0xd2   :  { %1575 = vmatpush1.bf16.msra.mxu0 %v4211_v34  ;;  %1657 = vmatpush1.bf16.msra.mxu1 %v4213_v35  ;;  %v1004_v34 = vld [vmem:[#allocation4 + $0x890] sm:$0xff] }
  0xd3   :  { %1576 = vmatprep.subr.bf16.mxu0 %v4216_v36  ;;  %1658 = vmatprep.subr.bf16.mxu1 %v4218_v37  ;;  %v1006_v35 = vld [vmem:[#allocation4 + $0x8d0] sm:$0xff]  ;;  %v1005_v36 = vld [vmem:[#allocation4 + $0x898] sm:$0xff] }
  0xd4   :  { %v1007_v37 = vld [vmem:[#allocation4 + $0x8d8] sm:$0xff]  ;;  %v4248_v40 = vcombine.high %v1004_v34, %v1006_v35  ;;  %v4247_v46 = vcombine.low %v1004_v34, %v1006_v35 }
  0xd5   :  { %v4250_v41 = vcombine.high %v1005_v36, %v1007_v37  ;;  %v4249_v47 = vcombine.low %v1005_v36, %v1007_v37 }
  0xd6   :  { %1577 = vmatpush1.bf16.msra.mxu0 %v4215_v42  ;;  %1659 = vmatpush1.bf16.msra.mxu1 %v4217_v43  ;;  %v1008_v42 = vld [vmem:[#allocation4 + $0x910] sm:$0xff] }
  0xd7   :  { %1578 = vmatprep.subr.bf16.mxu0 %v4220_v44  ;;  %1660 = vmatprep.subr.bf16.mxu1 %v4222_v45  ;;  %v1010_v43 = vld [vmem:[#allocation4 + $0x950] sm:$0xff]  ;;  %v1009_v44 = vld [vmem:[#allocation4 + $0x918] sm:$0xff] }
  0xd8   :  { %v1011_v45 = vld [vmem:[#allocation4 + $0x958] sm:$0xff]  ;;  %v4252_v48 = vcombine.high %v1008_v42, %v1010_v43  ;;  %v4251_v54 = vcombine.low %v1008_v42, %v1010_v43 }
  0xd9   :  { %v4254_v49 = vcombine.high %v1009_v44, %v1011_v45  ;;  %v4253_v55 = vcombine.low %v1009_v44, %v1011_v45  ;;  %v1726_v45 = vld [vmem:[%s6115_s3 + $0x200] sm:$0xff] }
  0xda   :  { %1579 = vmatpush1.bf16.msra.mxu0 %v4219_v50  ;;  %1661 = vmatpush1.bf16.msra.mxu1 %v4221_v51  ;;  %v1012_v50 = vld [vmem:[#allocation4 + $0x990] sm:$0xff] }
  0xdb   :  { %1580 = vmatprep.subr.bf16.mxu0 %v4224_v52  ;;  %1662 = vmatprep.subr.bf16.mxu1 %v4226_v53  ;;  %v1014_v51 = vld [vmem:[#allocation4 + $0x9d0] sm:$0xff]  ;;  %v1013_v52 = vld [vmem:[#allocation4 + $0x998] sm:$0xff] }
  0xdc   :  { %v1015_v53 = vld [vmem:[#allocation4 + $0x9d8] sm:$0xff]  ;;  %v4256_v56 = vcombine.high %v1012_v50, %v1014_v51  ;;  %v4255_v63 = vcombine.low %v1012_v50, %v1014_v51  ;;  %v1744_v50 = vld [vmem:[%s6115_s3 + $0x290] sm:$0xff] }
  0xdd   :  { %v4258_v58 = vcombine.high %v1013_v52, %v1015_v53  ;;  %v4257_v0 = vcombine.low %v1013_v52, %v1015_v53  ;;  %v1745_v51 = vld [vmem:[%s6115_s3 + $0x298] sm:$0xff]  ;;  %v1776_v52 = vld [vmem:[%s6115_s3 + $0x390] sm:$0xff] }
  0xde   :  { %1581 = vmatpush1.bf16.msra.mxu0 %v4223_v59  ;;  %1663 = vmatpush1.bf16.msra.mxu1 %v4225_v60  ;;  %v1016_v59 = vld [vmem:[#allocation4 + $0xa10] sm:$0xff]  ;;  %v1777_v53 = vld [vmem:[%s6115_s3 + $0x398] sm:$0xff] }
  0xdf   :  { %1582 = vmatprep.subr.bf16.mxu0 %v4228_v61  ;;  %1664 = vmatprep.subr.bf16.mxu1 %v4230_v62  ;;  %v1018_v60 = vld [vmem:[#allocation4 + $0xa50] sm:$0xff]  ;;  %v1017_v61 = vld [vmem:[#allocation4 + $0xa18] sm:$0xff] }
  0xe0   :  { %v1019_v62 = vld [vmem:[#allocation4 + $0xa58] sm:$0xff]  ;;  %v4260_v1 = vcombine.high %v1016_v59, %v1018_v60  ;;  %v4259_v7 = vcombine.low %v1016_v59, %v1018_v60  ;;  %v1760_v60 = vld [vmem:[%s6115_s3 + $0x310] sm:$0xff] }
  0xe1   :  { %v4262_v2 = vcombine.high %v1017_v61, %v1019_v62  ;;  %v4261_v8 = vcombine.low %v1017_v61, %v1019_v62  ;;  %v1729_v59 = vld [vmem:[%s6115_s3 + $0x218] sm:$0xff]  ;;  %v4802_v61 = vpack.c.bf16 %v1777_v53, %v1776_v52  ;;  %v1786_v52 = vld [vmem:[%s6115_s3 + $0x3e0] sm:$0xff]  ;;  %v1787_v53 = vld [vmem:[%s6115_s3 + $0x3e8] sm:$0xff] }
  0xe2   :  { %1583 = vmatpush1.bf16.msra.mxu0 %v4227_v3  ;;  %1665 = vmatpush1.bf16.msra.mxu1 %v4229_v4  ;;  %v1020_v3 = vld [vmem:[#allocation4 + $0xa90] sm:$0xff]  ;;  %v1761_v62 = vld [vmem:[%s6115_s3 + $0x318] sm:$0xff] }
  0xe3   :  { %1584 = vmatprep.subr.bf16.mxu0 %v4232_v5  ;;  %1666 = vmatprep.subr.bf16.mxu1 %v4234_v6  ;;  %v1022_v4 = vld [vmem:[#allocation4 + $0xad0] sm:$0xff]  ;;  %v1021_v5 = vld [vmem:[#allocation4 + $0xa98] sm:$0xff] }
  0xe4   :  { %v1023_v6 = vld [vmem:[#allocation4 + $0xad8] sm:$0xff]  ;;  %v4264_v9 = vcombine.high %v1020_v3, %v1022_v4  ;;  %v4263_v16 = vcombine.low %v1020_v3, %v1022_v4  ;;  %v4804_v4 = vpack.c.bf16 %v1761_v62, %v1760_v60  ;;  %v4822_v60 = vpack.c.bf16 %v1787_v53, %v1786_v52  ;;  %v1771_v62 = vld [vmem:[%s6115_s3 + $0x368] sm:$0xff] }
  0xe5   :  { %v4266_v10 = vcombine.high %v1021_v5, %v1023_v6  ;;  %v4265_v17 = vcombine.low %v1021_v5, %v1023_v6  ;;  %v1730_v6 = vld [vmem:[%s6115_s3 + $0x220] sm:$0xff] }
  0xe6   :  { %1585 = vmatpush1.bf16.msra.mxu0 %v4231_v11  ;;  %1667 = vmatpush1.bf16.msra.mxu1 %v4233_v13  ;;  %v1024_v11 = vld [vmem:[#allocation4 + $0xb10] sm:$0xff] }
  0xe7   :  { %1586 = vmatprep.subr.bf16.mxu0 %v4236_v14  ;;  %1668 = vmatprep.subr.bf16.mxu1 %v4238_v15  ;;  %v1026_v13 = vld [vmem:[#allocation4 + $0xb50] sm:$0xff]  ;;  %v1025_v14 = vld [vmem:[#allocation4 + $0xb18] sm:$0xff] }
  0xe8   :  { %v1027_v15 = vld [vmem:[#allocation4 + $0xb58] sm:$0xff]  ;;  %v4268_v18 = vcombine.high %v1024_v11, %v1026_v13  ;;  %v4267_v25 = vcombine.low %v1024_v11, %v1026_v13  ;;  %v1748_v11 = vld [vmem:[%s6115_s3 + $0x2b0] sm:$0xff] }
  0xe9   :  { %v4270_v19 = vcombine.high %v1025_v14, %v1027_v15  ;;  %v4269_v26 = vcombine.low %v1025_v14, %v1027_v15  ;;  %v1749_v13 = vld [vmem:[%s6115_s3 + $0x2b8] sm:$0xff]  ;;  %v1780_v14 = vld [vmem:[%s6115_s3 + $0x3b0] sm:$0xff] }
  0xea   :  { %1587 = vmatpush1.bf16.msra.mxu0 %v4235_v20  ;;  %1669 = vmatpush1.bf16.msra.mxu1 %v4237_v21  ;;  %v1028_v20 = vld [vmem:[#allocation4 + $0xb90] sm:$0xff]  ;;  %v1781_v15 = vld [vmem:[%s6115_s3 + $0x3b8] sm:$0xff] }
  0xeb   :  { %1588 = vmatprep.subr.bf16.mxu0 %v4240_v23  ;;  %1670 = vmatprep.subr.bf16.mxu1 %v4242_v24  ;;  %v1030_v21 = vld [vmem:[#allocation4 + $0xbd0] sm:$0xff]  ;;  %v1029_v23 = vld [vmem:[#allocation4 + $0xb98] sm:$0xff] }
  0xec   :  { %v1031_v24 = vld [vmem:[#allocation4 + $0xbd8] sm:$0xff]  ;;  %v4272_v28 = vcombine.high %v1028_v20, %v1030_v21  ;;  %v4271_v34 = vcombine.low %v1028_v20, %v1030_v21  ;;  %v1764_v21 = vld [vmem:[%s6115_s3 + $0x330] sm:$0xff] }
  0xed   :  { %v4274_v29 = vcombine.high %v1029_v23, %v1031_v24  ;;  %v4273_v35 = vcombine.low %v1029_v23, %v1031_v24  ;;  %v1733_v20 = vld [vmem:[%s6115_s3 + $0x238] sm:$0xff]  ;;  %v4810_v23 = vpack.c.bf16 %v1781_v15, %v1780_v14  ;;  %v888_v14 = vld [vmem:[%s6115_s3 + $0x80] sm:$0xff]  ;;  %v889_v15 = vld [vmem:[%s6115_s3 + $0x88] sm:$0xff] }
  0xee   :  { %1589 = vmatpush1.bf16.msra.mxu0 %v4239_v30  ;;  %1671 = vmatpush1.bf16.msra.mxu1 %v4241_v31  ;;  %v1032_v30 = vld [vmem:[#allocation4 + $0xc10] sm:$0xff]  ;;  %v1765_v24 = vld [vmem:[%s6115_s3 + $0x338] sm:$0xff] }
  0xef   :  { %1599 = vmatprep.subr.bf16.mxu0 %v4244_v32  ;;  %1681 = vmatprep.subr.bf16.mxu1 %v4246_v33  ;;  %v1034_v31 = vld [vmem:[#allocation4 + $0xc50] sm:$0xff]  ;;  %v1033_v32 = vld [vmem:[#allocation4 + $0xc18] sm:$0xff] }
  0xf0   :  { %v1035_v33 = vld [vmem:[#allocation4 + $0xc58] sm:$0xff]  ;;  %v4276_v36 = vcombine.high %v1032_v30, %v1034_v31  ;;  %v4275_v42 = vcombine.low %v1032_v30, %v1034_v31  ;;  %v4812_v31 = vpack.c.bf16 %v1765_v24, %v1764_v21 }
  0xf1   :  { %1591 = vmatmul.mubr.bf16.vlgmr.msra.gmra.mrb[4].mxu0 %v5258_v12  ;;  %1673 = vmatmul.mubr.bf16.vlgmr.msra.gmra.mrb[4].mxu1 %v5258_v12  ;;  %v4278_v37 = vcombine.high %v1033_v32, %v1035_v33  ;;  %v4277_v43 = vcombine.low %v1033_v32, %v1035_v33  ;;  %v1734_v33 = vld [vmem:[%s6115_s3 + $0x240] sm:$0xff] }
  0xf2   :  { %1600 = vmatpush1.bf16.msra.mxu0 %v4243_v38  ;;  %1682 = vmatpush1.bf16.msra.mxu1 %v4245_v39  ;;  %v1742_v38 = vld [vmem:[%s6115_s3 + $0x280] sm:$0xff]  ;;  %v1743_v39 = vld [vmem:[%s6115_s3 + $0x288] sm:$0xff] }
  0xf3   :  { %1601 = vmatprep.subr.bf16.mxu0 %v4248_v40  ;;  %1683 = vmatprep.subr.bf16.mxu1 %v4250_v41  ;;  %v1774_v40 = vld [vmem:[%s6115_s3 + $0x380] sm:$0xff]  ;;  %v1775_v41 = vld [vmem:[%s6115_s3 + $0x388] sm:$0xff]  ;;  %v4766_v44 = vpack.c.bf16 %v1743_v39, %v1742_v38  ;;  %v1752_v38 = vld [vmem:[%s6115_s3 + $0x2d0] sm:$0xff] }
  0xf4   :  { %4279 = vmatprep.mubr.msk.bf16.mxu0 %vm700_vm0, %v5260_v22  ;;  %4280 = vmatprep.mubr.msk.bf16.mxu1 %vm700_vm0, %v5260_v22  ;;  %v1753_v39 = vld [vmem:[%s6115_s3 + $0x2d8] sm:$0xff] }
  0xf6   :  { %1602 = vmatpush1.bf16.msra.mxu0 %v4247_v46  ;;  %1684 = vmatpush1.bf16.msra.mxu1 %v4249_v47  ;;  %v1727_v46 = vld [vmem:[%s6115_s3 + $0x208] sm:$0xff]  ;;  %v1758_v47 = vld [vmem:[%s6115_s3 + $0x300] sm:$0xff] }
  0xf7   :  { %1603 = vmatprep.subr.bf16.mxu0 %v4252_v48  ;;  %1685 = vmatprep.subr.bf16.mxu1 %v4254_v49  ;;  %v4798_v48 = vpack.c.bf16 %v1775_v41, %v1774_v40  ;;  %v1759_v49 = vld [vmem:[%s6115_s3 + $0x308] sm:$0xff]  ;;  %v1784_v40 = vld [vmem:[%s6115_s3 + $0x3d0] sm:$0xff]  ;;  %v1785_v41 = vld [vmem:[%s6115_s3 + $0x3d8] sm:$0xff] }
  0xfa   :  { %1604 = vmatpush1.bf16.msra.mxu0 %v4251_v54  ;;  %1686 = vmatpush1.bf16.msra.mxu1 %v4253_v55  ;;  %v4768_v54 = vpack.c.bf16 %v1727_v46, %v1726_v45  ;;  %v4800_v55 = vpack.c.bf16 %v1759_v49, %v1758_v47  ;;  %v1736_v45 = vld [vmem:[%s6115_s3 + $0x250] sm:$0xff]  ;;  %v1737_v46 = vld [vmem:[%s6115_s3 + $0x258] sm:$0xff] }
  0xfb   :  { %1605 = vmatprep.subr.bf16.mxu0 %v4256_v56  ;;  %1687 = vmatprep.subr.bf16.mxu1 %v4258_v58  ;;  %v4770_v56 = vpack.c.bf16 %v1745_v51, %v1744_v50  ;;  %v1728_v58 = vld [vmem:[%s6115_s3 + $0x210] sm:$0xff]  ;;  %v1769_v49 = vld [vmem:[%s6115_s3 + $0x358] sm:$0xff]  ;;  %v1754_v50 = vld [vmem:[%s6115_s3 + $0x2e0] sm:$0xff] }
  0xfc   :  { %v4772_v3 = vpack.c.bf16 %v1729_v59, %v1728_v58  ;;  %v1768_v47 = vld [vmem:[%s6115_s3 + $0x350] sm:$0xff]  ;;  %v1755_v51 = vld [vmem:[%s6115_s3 + $0x2e8] sm:$0xff]  ;;  %v1738_v58 = vld [vmem:[%s6115_s3 + $0x260] sm:$0xff] }
  0xfd   :  { %v1739_v59 = vld [vmem:[%s6115_s3 + $0x268] sm:$0xff] }
  0xfe   :  { %1606 = vmatpush1.bf16.msra.mxu0 %v4255_v63  ;;  %1688 = vmatpush1.bf16.msra.mxu1 %v4257_v0  ;;  %v1746_v63 = vld [vmem:[%s6115_s3 + $0x2a0] sm:$0xff]  ;;  %v1747_v0 = vld [vmem:[%s6115_s3 + $0x2a8] sm:$0xff] }
  0xff   :  { %1607 = vmatprep.subr.bf16.mxu0 %v4260_v1  ;;  %1689 = vmatprep.subr.bf16.mxu1 %v4262_v2  ;;  %v1778_v1 = vld [vmem:[%s6115_s3 + $0x3a0] sm:$0xff]  ;;  %v1779_v2 = vld [vmem:[%s6115_s3 + $0x3a8] sm:$0xff]  ;;  %v4774_v5 = vpack.c.bf16 %v1747_v0, %v1746_v63  ;;  %v4792_v63 = vpack.c.bf16 %v1739_v59, %v1738_v58 }
 0x102   :  { %1608 = vmatpush1.bf16.msra.mxu0 %v4259_v7  ;;  %1690 = vmatpush1.bf16.msra.mxu1 %v4261_v8  ;;  %v1731_v7 = vld [vmem:[%s6115_s3 + $0x228] sm:$0xff]  ;;  %v1762_v8 = vld [vmem:[%s6115_s3 + $0x320] sm:$0xff] }
 0x103   :  { %1609 = vmatprep.subr.bf16.mxu0 %v4264_v9  ;;  %1691 = vmatprep.subr.bf16.mxu1 %v4266_v10  ;;  %v4806_v9 = vpack.c.bf16 %v1779_v2, %v1778_v1  ;;  %v1763_v10 = vld [vmem:[%s6115_s3 + $0x328] sm:$0xff]  ;;  %v1756_v1 = vld [vmem:[%s6115_s3 + $0x2f0] sm:$0xff]  ;;  %v1757_v2 = vld [vmem:[%s6115_s3 + $0x2f8] sm:$0xff] }
 0x106   :  { %1610 = vmatpush1.bf16.msra.mxu0 %v4263_v16  ;;  %1692 = vmatpush1.bf16.msra.mxu1 %v4265_v17  ;;  %v4776_v16 = vpack.c.bf16 %v1731_v7, %v1730_v6  ;;  %v4808_v17 = vpack.c.bf16 %v1763_v10, %v1762_v8  ;;  %v1740_v6 = vld [vmem:[%s6115_s3 + $0x270] sm:$0xff]  ;;  %v1741_v7 = vld [vmem:[%s6115_s3 + $0x278] sm:$0xff] }
 0x107   :  { %1611 = vmatprep.subr.bf16.mxu0 %v4268_v18  ;;  %1693 = vmatprep.subr.bf16.mxu1 %v4270_v19  ;;  %v4778_v18 = vpack.c.bf16 %v1749_v13, %v1748_v11  ;;  %v1732_v19 = vld [vmem:[%s6115_s3 + $0x230] sm:$0xff]  ;;  %v1773_v11 = vld [vmem:[%s6115_s3 + $0x378] sm:$0xff] }
 0x108   :  { %v4780_v30 = vpack.c.bf16 %v1733_v20, %v1732_v19  ;;  %v1772_v10 = vld [vmem:[%s6115_s3 + $0x370] sm:$0xff] }
 0x109   :  { %v4828_v13 = vpack.c.bf16 %v1773_v11, %v1772_v10  ;;  %v906_v10 = vld [vmem:[%s6115_s3 + $0x110] sm:$0xff] }
 0x10a   :  { %1612 = vmatpush1.bf16.msra.mxu0 %v4267_v25  ;;  %1694 = vmatpush1.bf16.msra.mxu1 %v4269_v26  ;;  %v1750_v25 = vld [vmem:[%s6115_s3 + $0x2c0] sm:$0xff]  ;;  %v1751_v26 = vld [vmem:[%s6115_s3 + $0x2c8] sm:$0xff] }
 0x10b   :  { %1613 = vmatprep.subr.bf16.mxu0 %v4272_v28  ;;  %1695 = vmatprep.subr.bf16.mxu1 %v4274_v29  ;;  %v1782_v28 = vld [vmem:[%s6115_s3 + $0x3c0] sm:$0xff]  ;;  %v1783_v29 = vld [vmem:[%s6115_s3 + $0x3c8] sm:$0xff]  ;;  %v4782_v32 = vpack.c.bf16 %v1751_v26, %v1750_v25 }
 0x10e   :  { %1614 = vmatpush1.bf16.msra.mxu0 %v4271_v34  ;;  %1696 = vmatpush1.bf16.msra.mxu1 %v4273_v35  ;;  %v1735_v34 = vld [vmem:[%s6115_s3 + $0x248] sm:$0xff]  ;;  %v1766_v35 = vld [vmem:[%s6115_s3 + $0x340] sm:$0xff] }
 0x10f   :  { %1615 = vmatprep.subr.bf16.mxu0 %v4276_v36  ;;  %1697 = vmatprep.subr.bf16.mxu1 %v4278_v37  ;;  %v4814_v36 = vpack.c.bf16 %v1783_v29, %v1782_v28  ;;  %v1767_v37 = vld [vmem:[%s6115_s3 + $0x348] sm:$0xff] }
 0x112   :  { %1616 = vmatpush1.bf16.msra.mxu0 %v4275_v42  ;;  %1698 = vmatpush1.bf16.msra.mxu1 %v4277_v43  ;;  %v4784_v42 = vpack.c.bf16 %v1735_v34, %v1734_v33  ;;  %v4816_v43 = vpack.c.bf16 %v1767_v37, %v1766_v35  ;;  %v5494_v35 = vld [vmem:[#allocation6] sm:$0xf] }
 0x113   :  { %4767 = vmatprep.subr.bf16.mxu0 %v4766_v44  ;;  %4799 = vmatprep.subr.bf16.mxu1 %v4798_v48  ;;  %v4786_v44 = vpack.c.bf16 %v1753_v39, %v1752_v38  ;;  %v4818_v48 = vpack.c.bf16 %v1785_v41, %v1784_v40 }
 0x115   :  { %1632 = vmatmul.mubr.bf16.vlgmr.msra.gmra.mrb[4].mxu0 %v5268_v27  ;;  %1714 = vmatmul.mubr.bf16.vlgmr.msra.gmra.mrb[4].mxu1 %v5268_v27 }
 0x116   :  { %4769 = vmatpush3.bf16.msra.mxu0 %v4768_v54  ;;  %4801 = vmatpush3.bf16.msra.mxu1 %v4800_v55  ;;  %v4788_v54 = vpack.c.bf16 %v1737_v46, %v1736_v45  ;;  %v4820_v55 = vpack.c.bf16 %v1769_v49, %v1768_v47  ;;  %v873_v49 = vld [vmem:[%s6115_s3 + $0x8] sm:$0xff] }
 0x117   :  { %4771 = vmatprep.subr.bf16.mxu0 %v4770_v56  ;;  %4803 = vmatprep.subr.bf16.mxu1 %v4802_v61  ;;  %v4790_v56 = vpack.c.bf16 %v1755_v51, %v1754_v50  ;;  %v1770_v61 = vld [vmem:[%s6115_s3 + $0x360] sm:$0xff] }
 0x118   :  { %v4824_v0 = vpack.c.bf16 %v1771_v62, %v1770_v61  ;;  %v890_v61 = vld [vmem:[%s6115_s3 + $0x90] sm:$0xff]  ;;  %v891_v62 = vld [vmem:[%s6115_s3 + $0x98] sm:$0xff] }
 0x11a   :  { %4773 = vmatpush3.bf16.msra.mxu0 %v4772_v3  ;;  %4805 = vmatpush3.bf16.msra.mxu1 %v4804_v4  ;;  %v1788_v3 = vld [vmem:[%s6115_s3 + $0x3f0] sm:$0xff]  ;;  %v4794_v4 = vpack.c.bf16 %v1757_v2, %v1756_v1 }
 0x11b   :  { %4775 = vmatprep.subr.bf16.mxu0 %v4774_v5  ;;  %4807 = vmatprep.subr.bf16.mxu1 %v4806_v9  ;;  %v1789_v5 = vld [vmem:[%s6115_s3 + $0x3f8] sm:$0xff]  ;;  %v4796_v9 = vpack.c.bf16 %v1741_v7, %v1740_v6 }
 0x11c   :  { %v4826_v8 = vpack.c.bf16 %v1789_v5, %v1788_v3  ;;  %v922_v3 = vld [vmem:[%s6115_s3 + $0x190] sm:$0xff] }
 0x11e   :  { %4777 = vmatpush3.bf16.msra.mxu0 %v4776_v16  ;;  %4809 = vmatpush3.bf16.msra.mxu1 %v4808_v17  ;;  %v920_v16 = vld [vmem:[%s6115_s3 + $0x180] sm:$0xff]  ;;  %v4830_v17 = vpack.c.bf16 %v889_v15, %v888_v14  ;;  %v907_v14 = vld [vmem:[%s6115_s3 + $0x118] sm:$0xff] }
 0x11f   :  { %4779 = vmatprep.subr.bf16.mxu0 %v4778_v18  ;;  %4811 = vmatprep.subr.bf16.mxu1 %v4810_v23  ;;  %v921_v18 = vld [vmem:[%s6115_s3 + $0x188] sm:$0xff]  ;;  %v892_v15 = vld [vmem:[%s6115_s3 + $0xa0] sm:$0xff] }
 0x120   :  { %v4862_v19 = vpack.c.bf16 %v921_v18, %v920_v16  ;;  %v893_v16 = vld [vmem:[%s6115_s3 + $0xa8] sm:$0xff] }
 0x122   :  { %4781 = vmatpush3.bf16.msra.mxu0 %v4780_v30  ;;  %4813 = vmatpush3.bf16.msra.mxu1 %v4812_v31  ;;  %v180_v30 = vlaneseq }
 0x123   :  { %4783 = vmatprep.subr.bf16.mxu0 %v4782_v32  ;;  %4815 = vmatprep.subr.bf16.mxu1 %v4814_v36  ;;  %v1036_v32 = vld [vmem:[#allocation6 + $0x4] sm:$0xf] }
 0x124   :  { %v181_v31 = vshrl.u32 %v180_v30, 7  ;;  %v877_v30 = vld [vmem:[%s6115_s3 + $0x28] sm:$0xff] }
 0x126   :  { %4785 = vmatpush3.bf16.msra.mxu0 %v4784_v42  ;;  %4817 = vmatpush3.bf16.msra.mxu1 %v4816_v43  ;;  %v5490_v33 = vsub.s32 0, %v181_v31  ;;  %v5492_v34 = vsub.s32 1, %v181_v31  ;;  %v5496_v36 = vsub.s32 2, %v181_v31  ;;  %v5498_v37 = vsub.s32 3, %v181_v31  ;;  %v908_v31 = vld [vmem:[%s6115_s3 + $0x120] sm:$0xff] }
 0x127   :  { %4787 = vmatprep.subr.bf16.mxu0 %v4786_v44  ;;  %4819 = vmatprep.subr.bf16.mxu1 %v4818_v48  ;;  %v872_v48 = vld [vmem:[%s6115_s3] sm:$0xff] }
 0x128   :  { %v1041_v38 = vrot.slane %v1036_v32, %v5490_v33  ;;  %v1049_v39 = vrot.slane %v1036_v32, %v5496_v36  ;;  %v1045_v40 = vrot.slane %v1036_v32, %v5492_v34  ;;  %v187_v41 = vrot.slane %v5494_v35, %v5492_v34 }
 0x129   :  { %v1053_v42 = vrot.slane %v1036_v32, %v5498_v37  ;;  %v195_v43 = vrot.slane %v5494_v35, %v5498_v37  ;;  %v4832_v2 = vpack.c.bf16 %v873_v49, %v872_v48  ;;  %v910_v48 = vld [vmem:[%s6115_s3 + $0x130] sm:$0xff] }
 0x12a   :  { %4789 = vmatpush3.bf16.msra.mxu0 %v4788_v54  ;;  %4821 = vmatpush3.bf16.msra.mxu1 %v4820_v55  ;;  %v904_v54 = vld [vmem:[%s6115_s3 + $0x100] sm:$0xff]  ;;  %v905_v55 = vld [vmem:[%s6115_s3 + $0x108] sm:$0xff] }
 0x12b   :  { %4791 = vmatprep.subr.bf16.mxu0 %v4790_v56  ;;  %4823 = vmatprep.subr.bf16.mxu1 %v4822_v60  ;;  %v4864_v7 = vpack.c.bf16 %v905_v55, %v904_v54  ;;  %v929_v54 = vld [vmem:[%s6115_s3 + $0x1c8] sm:$0xff] }
 0x12e   :  { %4793 = vmatpush3.bf16.msra.mxu0 %v4792_v63  ;;  %4825 = vmatpush3.bf16.msra.mxu1 %v4824_v0 }
 0x12f   :  { %4795 = vmatprep.subr.bf16.mxu0 %v4794_v4  ;;  %4827 = vmatprep.subr.bf16.mxu1 %v4826_v8  ;;  %v923_v4 = vld [vmem:[%s6115_s3 + $0x198] sm:$0xff]  ;;  %v874_v8 = vld [vmem:[%s6115_s3 + $0x10] sm:$0xff] }
 0x130   :  { %v4866_v18 = vpack.c.bf16 %v923_v4, %v922_v3  ;;  %v931_v3 = vld [vmem:[%s6115_s3 + $0x1d8] sm:$0xff] }
 0x132   :  { %4797 = vmatpush3.bf16.msra.mxu0 %v4796_v9  ;;  %4829 = vmatpush3.bf16.msra.mxu1 %v4828_v13  ;;  %v875_v9 = vld [vmem:[%s6115_s3 + $0x18] sm:$0xff]  ;;  %v4834_v13 = vpack.c.bf16 %v891_v62, %v890_v61  ;;  %v912_v61 = vld [vmem:[%s6115_s3 + $0x140] sm:$0xff] }
 0x133   :  { %4831 = vmatprep.subr.bf16.mxu0 %v4830_v17  ;;  %4863 = vmatprep.subr.bf16.mxu1 %v4862_v19  ;;  %v924_v19 = vld [vmem:[%s6115_s3 + $0x1a0] sm:$0xff] }
 0x184   :  { %v5486_v20 = vpop.f32.mrb[0].mxu0  ;;  %v5488_v21 = vpop.f32.mrb[0].mxu1 }
 0x185   :  { %v781_v23 = vpop.f32.mrb[1].mxu0  ;;  %v863_v24 = vpop.f32.mrb[1].mxu1 }
 0x186   :  { %v783_v25 = vpop.f32.mrb[2].mxu0  ;;  %v865_v26 = vpop.f32.mrb[2].mxu1  ;;  %v5023_v56 = vadd.f32 %v781_v23, %v187_v41  ;;  %v5025_v63 = vadd.f32 %v863_v24, %v195_v43  ;;  %v925_v23 = vld [vmem:[%s6115_s3 + $0x1a8] sm:$0xff]  ;;  %v926_v41 = vld [vmem:[%s6115_s3 + $0x1b0] sm:$0xff] }
 0x187   :  { %v784_v28 = vpop.f32.mrb[3].mxu0  ;;  %v866_v29 = vpop.f32.mrb[3].mxu1  ;;  %v4836_v25 = vpack.c.bf16 %v875_v9, %v874_v8  ;;  %v4868_v26 = vpack.c.bf16 %v907_v14, %v906_v10  ;;  %v4870_v32 = vpack.c.bf16 %v925_v23, %v924_v19  ;;  %v883_v8 = vld [vmem:[%s6115_s3 + $0x58] sm:$0xff]  ;;  %v914_v9 = vld [vmem:[%s6115_s3 + $0x150] sm:$0xff]  ;;  %v901_v14 = vld [vmem:[%s6115_s3 + $0xe8] sm:$0xff] }
 0x188   :  { %v869_v17 = vmax.f32 %v5023_v56, 0.0  ;;  %v871_v24 = vmax.f32 %v5025_v63, 0.0  ;;  %v4838_v28 = vpack.c.bf16 %v893_v16, %v892_v15  ;;  %v876_v29 = vld [vmem:[%s6115_s3 + $0x20] sm:$0xff]  ;;  %v913_v63 = vld [vmem:[%s6115_s3 + $0x148] sm:$0xff] }
 0x189   :  { %v4840_v43 = vpack.c.bf16 %v877_v30, %v876_v29  ;;  %v932_v15 = vld [vmem:[%s6115_s3 + $0x1e0] sm:$0xff]  ;;  %v933_v16 = vld [vmem:[%s6115_s3 + $0x1e8] sm:$0xff]  ;;  %v902_v29 = vld [vmem:[%s6115_s3 + $0xf0] sm:$0xff] }
 0x18a   :  { %v884_v23 = vld [vmem:[%s6115_s3 + $0x60] sm:$0xff]  ;;  %v903_v30 = vld [vmem:[%s6115_s3 + $0xf8] sm:$0xff] }
 0x1e8   :  { %v1633_v44 = vpop.f32.mrb[4].mxu0  ;;  %v1715_v46 = vpop.f32.mrb[4].mxu1 }
 0x1e9   :  { %v5026_v45 = vadd.f32 %v1633_v44, %v1041_v38  ;;  %v1635_v47 = vpop.f32.mrb[5].mxu0  ;;  %v5028_v50 = vadd.f32 %v1715_v46, %v1049_v39  ;;  %v1717_v52 = vpop.f32.mrb[5].mxu1  ;;  %v909_v38 = vld [vmem:[%s6115_s3 + $0x128] sm:$0xff]  ;;  %v894_v39 = vld [vmem:[%s6115_s3 + $0xb0] sm:$0xff] }
 0x1ea   :  { %v5027_v51 = vadd.f32 %v1635_v47, %v1045_v40  ;;  %v1637_v53 = vpop.f32.mrb[6].mxu0  ;;  %v5029_v58 = vadd.f32 %v1717_v52, %v1053_v42  ;;  %v1719_v59 = vpop.f32.mrb[6].mxu1  ;;  %v895_v40 = vld [vmem:[%s6115_s3 + $0xb8] sm:$0xff]  ;;  %v4872_v44 = vpack.c.bf16 %v909_v38, %v908_v31  ;;  %v878_v46 = vld [vmem:[%s6115_s3 + $0x30] sm:$0xff]  ;;  %v897_v52 = vld [vmem:[%s6115_s3 + $0xc8] sm:$0xff] }
 0x1eb   :  { %v1638_v60 = vpop.f32.mrb[7].mxu0  ;;  %v1720_v1 = vpop.f32.mrb[7].mxu1  ;;  %v1722_v5 = vmax.f32 %v5026_v45, 0.0  ;;  %v1724_v11 = vmax.f32 %v5028_v50, 0.0  ;;  %v927_v42 = vld [vmem:[%s6115_s3 + $0x1b8] sm:$0xff]  ;;  %v4842_v45 = vpack.c.bf16 %v895_v40, %v894_v39  ;;  %v928_v53 = vld [vmem:[%s6115_s3 + $0x1c0] sm:$0xff]  ;;  %v183_v39 = vrot.slane %v5494_v35, %v5490_v33 }
 0x1ec   :  { %v1723_v0 = vmax.f32 %v5027_v51, 0.0  ;;  %v1725_v6 = vmax.f32 %v5029_v58, 0.0  ;;  %v879_v47 = vld [vmem:[%s6115_s3 + $0x38] sm:$0xff]  ;;  %v4874_v49 = vpack.c.bf16 %v927_v42, %v926_v41  ;;  %v896_v51 = vld [vmem:[%s6115_s3 + $0xc0] sm:$0xff]  ;;  %v881_v60 = vld [vmem:[%s6115_s3 + $0x48] sm:$0xff]  ;;  %v4878_v62 = vpack.c.bf16 %v929_v54, %v928_v53 }
 0x1ed   :  { %v911_v50 = vld [vmem:[%s6115_s3 + $0x138] sm:$0xff]  ;;  %v4844_v55 = vpack.c.bf16 %v879_v47, %v878_v46  ;;  %v4846_v58 = vpack.c.bf16 %v897_v52, %v896_v51  ;;  %v880_v59 = vld [vmem:[%s6115_s3 + $0x40] sm:$0xff]  ;;  %v934_v31 = vld [vmem:[%s6115_s3 + $0x1f0] sm:$0xff]  ;;  %v4858_v41 = vpack.c.bf16 %v903_v30, %v902_v29  ;;  %v5022_v53 = vadd.f32 %v5486_v20, %v183_v39 }
 0x1ee   :  { %1854 = vmatprep.mubr.f32.mxu0 %v1723_v0  ;;  %1924 = vmatprep.mubr.f32.mxu1 %v1725_v6  ;;  %v4876_v56 = vpack.c.bf16 %v911_v50, %v910_v48  ;;  %v898_v0 = vld [vmem:[%s6115_s3 + $0xd0] sm:$0xff]  ;;  %v899_v1 = vld [vmem:[%s6115_s3 + $0xd8] sm:$0xff]  ;;  %v4848_v4 = vpack.c.bf16 %v881_v60, %v880_v59  ;;  %v2070_v48 = vld [vmem:[#allocation4 + $0x20] sm:$0xff] }
 0x1ef   :  { %1855 = vmatmul.mubr.f32.vlgmr.msra.gmra.mrb[8].mxu0 %v1722_v5  ;;  %1925 = vmatmul.mubr.f32.vlgmr.msra.gmra.mrb[8].mxu1 %v1724_v11  ;;  %v4880_v5 = vpack.c.bf16 %v913_v63, %v912_v61  ;;  %v4850_v6 = vpack.c.bf16 %v899_v1, %v898_v0  ;;  %v915_v11 = vld [vmem:[%s6115_s3 + $0x158] sm:$0xff]  ;;  %v886_v42 = vld [vmem:[%s6115_s3 + $0x70] sm:$0xff]  ;;  %v2071_v50 = vld [vmem:[#allocation4 + $0x28] sm:$0xff]  ;;  %v868_v63 = vmax.f32 %v5022_v53, 0.0 }
 0x1f0   :  { %4833 = vmatpush3.bf16.msra.mxu0 %v4832_v2  ;;  %4865 = vmatpush3.bf16.msra.mxu1 %v4864_v7  ;;  %v930_v2 = vld [vmem:[%s6115_s3 + $0x1d0] sm:$0xff]  ;;  %v919_v47 = vld [vmem:[%s6115_s3 + $0x178] sm:$0xff]  ;;  %v2073_v51 = vld [vmem:[#allocation4 + $0x68] sm:$0xff] }
 0x1f1   :  { %1994 = vmatprep.mubr.f32.mxu0 %v869_v17  ;;  %2064 = vmatprep.mubr.f32.mxu1 %v871_v24  ;;  %v882_v7 = vld [vmem:[%s6115_s3 + $0x50] sm:$0xff]  ;;  %v4882_v10 = vpack.c.bf16 %v931_v3, %v930_v2  ;;  %v885_v24 = vld [vmem:[%s6115_s3 + $0x68] sm:$0xff]  ;;  %v2076_v59 = vld [vmem:[#allocation4 + $0xe0] sm:$0xff]  ;;  %v4283_v0 = vcombine.low %v2071_v50, %v2073_v51 }
 0x1f2   :  { %4835 = vmatprep.subr.bf16.mxu0 %v4834_v13  ;;  %4867 = vmatprep.subr.bf16.mxu1 %v4866_v18  ;;  %v900_v13 = vld [vmem:[%s6115_s3 + $0xe0] sm:$0xff]  ;;  %v4852_v17 = vpack.c.bf16 %v883_v8, %v882_v7  ;;  %v4884_v18 = vpack.c.bf16 %v915_v11, %v914_v9  ;;  %v4856_v38 = vpack.c.bf16 %v885_v24, %v884_v23  ;;  %v2075_v60 = vld [vmem:[#allocation4 + $0xa8] sm:$0xff] }
 0x1f3   :  { %v4854_v19 = vpack.c.bf16 %v901_v14, %v900_v13  ;;  %v2077_v61 = vld [vmem:[#allocation4 + $0xe8] sm:$0xff]  ;;  %v2078_v3 = vld [vmem:[#allocation4 + $0x120] sm:$0xff] }
 0x1f4   :  { %4837 = vmatpush3.bf16.msra.mxu0 %v4836_v25  ;;  %4869 = vmatpush3.bf16.msra.mxu1 %v4868_v26  ;;  %v916_v25 = vld [vmem:[%s6115_s3 + $0x160] sm:$0xff]  ;;  %v4886_v26 = vpack.c.bf16 %v933_v16, %v932_v15  ;;  %v4288_v2 = vcombine.high %v2075_v60, %v2077_v61  ;;  %v4287_v7 = vcombine.low %v2075_v60, %v2077_v61  ;;  %v2083_v13 = vld [vmem:[#allocation4 + $0x1a8] sm:$0xff] }
 0x1f5   :  { %4839 = vmatprep.subr.bf16.mxu0 %v4838_v28  ;;  %4871 = vmatprep.subr.bf16.mxu1 %v4870_v32  ;;  %v917_v28 = vld [vmem:[%s6115_s3 + $0x168] sm:$0xff]  ;;  %v935_v32 = vld [vmem:[%s6115_s3 + $0x1f8] sm:$0xff]  ;;  %v2084_v11 = vld [vmem:[#allocation4 + $0x1e0] sm:$0xff] }
 0x1f6   :  { %v4888_v40 = vpack.c.bf16 %v917_v28, %v916_v25  ;;  %v4890_v46 = vpack.c.bf16 %v935_v32, %v934_v31  ;;  %v2085_v14 = vld [vmem:[#allocation4 + $0x1e8] sm:$0xff]  ;;  %v2088_v23 = vld [vmem:[#allocation4 + $0x260] sm:$0xff] }
 0x1f7   :  { %v2087_v24 = vld [vmem:[#allocation4 + $0x228] sm:$0xff]  ;;  %v4295_v28 = vcombine.low %v2083_v13, %v2085_v14  ;;  %v2090_v31 = vld [vmem:[#allocation4 + $0x2a0] sm:$0xff] }
 0x1f8   :  { %4841 = vmatpush3.bf16.msra.mxu0 %v4840_v43  ;;  %4873 = vmatpush3.bf16.msra.mxu1 %v4872_v44  ;;  %v887_v43 = vld [vmem:[%s6115_s3 + $0x78] sm:$0xff]  ;;  %v918_v44 = vld [vmem:[%s6115_s3 + $0x170] sm:$0xff]  ;;  %v2089_v25 = vld [vmem:[#allocation4 + $0x268] sm:$0xff] }
 0x1f9   :  { %4843 = vmatprep.subr.bf16.mxu0 %v4842_v45  ;;  %4875 = vmatprep.subr.bf16.mxu1 %v4874_v49  ;;  %v191_v45 = vrot.slane %v5494_v35, %v5496_v36  ;;  %v2072_v49 = vld [vmem:[#allocation4 + $0x60] sm:$0xff]  ;;  %v4860_v52 = vpack.c.bf16 %v887_v43, %v886_v42  ;;  %v4892_v54 = vpack.c.bf16 %v919_v47, %v918_v44  ;;  %v2093_v39 = vld [vmem:[#allocation4 + $0x2e8] sm:$0xff] }
 0x1fa   :  { %v4300_v30 = vcombine.high %v2087_v24, %v2089_v25  ;;  %v2092_v32 = vld [vmem:[#allocation4 + $0x2e0] sm:$0xff]  ;;  %v2097_v47 = vld [vmem:[#allocation4 + $0x368] sm:$0xff] }
 0x1fb   :  { %v5024_v35 = vadd.f32 %v5488_v21, %v191_v45  ;;  %v2079_v21 = vld [vmem:[#allocation4 + $0x128] sm:$0xff]  ;;  %v4302_v42 = vcombine.high %v2090_v31, %v2092_v32  ;;  %v2094_v44 = vld [vmem:[#allocation4 + $0x320] sm:$0xff] }
 0x1fc   :  { %4845 = vmatpush3.bf16.msra.mxu0 %v4844_v55  ;;  %4877 = vmatpush3.bf16.msra.mxu1 %v4876_v56  ;;  %v4282_v55 = vcombine.high %v2070_v48, %v2072_v49  ;;  %v4284_v56 = vcombine.high %v2071_v50, %v2073_v51  ;;  %v2096_v45 = vld [vmem:[#allocation4 + $0x360] sm:$0xff] }
 0x1fd   :  { %4847 = vmatprep.subr.bf16.mxu0 %v4846_v58  ;;  %4879 = vmatprep.subr.bf16.mxu1 %v4878_v62  ;;  %v2074_v58 = vld [vmem:[#allocation4 + $0xa0] sm:$0xff]  ;;  %v4281_v62 = vcombine.low %v2070_v48, %v2072_v49  ;;  %v870_v20 = vmax.f32 %v5024_v35, 0.0  ;;  %v4301_v48 = vcombine.low %v2090_v31, %v2092_v32  ;;  %v4306_v50 = vcombine.high %v2094_v44, %v2096_v45 }
 0x1fe   :  { %v4286_v1 = vcombine.high %v2074_v58, %v2076_v59  ;;  %v2100_v53 = vld [vmem:[#allocation4 + $0x3e0] sm:$0xff]  ;;  %v4305_v35 = vcombine.low %v2094_v44, %v2096_v45 }
 0x1ff   :  { %v2102_v60 = vld [vmem:[#allocation4 + $0x420] sm:$0xff] }
 0x200   :  { %4849 = vmatpush3.bf16.msra.mxu0 %v4848_v4  ;;  %4881 = vmatpush3.bf16.msra.mxu1 %v4880_v5  ;;  %v2080_v4 = vld [vmem:[#allocation4 + $0x160] sm:$0xff]  ;;  %v2081_v5 = vld [vmem:[#allocation4 + $0x168] sm:$0xff] }
 0x201   :  { %4851 = vmatprep.subr.bf16.mxu0 %v4850_v6  ;;  %4883 = vmatprep.subr.bf16.mxu1 %v4882_v10  ;;  %v4285_v6 = vcombine.low %v2074_v58, %v2076_v59  ;;  %v4290_v8 = vcombine.high %v2078_v3, %v2080_v4  ;;  %v4292_v9 = vcombine.high %v2079_v21, %v2081_v5  ;;  %v2082_v10 = vld [vmem:[#allocation4 + $0x1a0] sm:$0xff] }
 0x202   :  { %v4289_v15 = vcombine.low %v2078_v3, %v2080_v4  ;;  %v4291_v16 = vcombine.low %v2079_v21, %v2081_v5  ;;  %v2104_v61 = vld [vmem:[#allocation4 + $0x460] sm:$0xff]  ;;  %v2107_v21 = vld [vmem:[#allocation4 + $0x4a8] sm:$0xff] }
 0x203   :  { %v2106_v3 = vld [vmem:[#allocation4 + $0x4a0] sm:$0xff]  ;;  %v2109_v5 = vld [vmem:[#allocation4 + $0x4e8] sm:$0xff] }
 0x204   :  { %4853 = vmatpush3.bf16.msra.mxu0 %v4852_v17  ;;  %4885 = vmatpush3.bf16.msra.mxu1 %v4884_v18  ;;  %v4294_v17 = vcombine.high %v2082_v10, %v2084_v11  ;;  %v4296_v18 = vcombine.high %v2083_v13, %v2085_v14  ;;  %v2108_v4 = vld [vmem:[#allocation4 + $0x4e0] sm:$0xff]  ;;  %v2111_v13 = vld [vmem:[#allocation4 + $0x528] sm:$0xff] }
 0x205   :  { %4855 = vmatprep.subr.bf16.mxu0 %v4854_v19  ;;  %4887 = vmatprep.subr.bf16.mxu1 %v4886_v26  ;;  %v2086_v19 = vld [vmem:[#allocation4 + $0x220] sm:$0xff]  ;;  %v4293_v26 = vcombine.low %v2082_v10, %v2084_v11  ;;  %v2113_v14 = vld [vmem:[#allocation4 + $0x568] sm:$0xff] }
 0x206   :  { %v4298_v29 = vcombine.high %v2086_v19, %v2088_v23  ;;  %v2110_v10 = vld [vmem:[#allocation4 + $0x520] sm:$0xff] }
 0x207   :  { %v2112_v11 = vld [vmem:[#allocation4 + $0x560] sm:$0xff] }
 0x208   :  { %4857 = vmatpush3.bf16.msra.mxu0 %v4856_v38  ;;  %4889 = vmatpush3.bf16.msra.mxu1 %v4888_v40  ;;  %v2091_v38 = vld [vmem:[#allocation4 + $0x2a8] sm:$0xff]  ;;  %v4297_v40 = vcombine.low %v2086_v19, %v2088_v23  ;;  %v2114_v19 = vld [vmem:[#allocation4 + $0x5a0] sm:$0xff] }
 0x209   :  { %4859 = vmatprep.subr.bf16.mxu0 %v4858_v41  ;;  %4891 = vmatprep.subr.bf16.mxu1 %v4890_v46  ;;  %v4299_v41 = vcombine.low %v2087_v24, %v2089_v25  ;;  %v4304_v43 = vcombine.high %v2091_v38, %v2093_v39  ;;  %v2095_v46 = vld [vmem:[#allocation4 + $0x328] sm:$0xff]  ;;  %v4303_v49 = vcombine.low %v2091_v38, %v2093_v39  ;;  %v2116_v23 = vld [vmem:[#allocation4 + $0x5e0] sm:$0xff] }
 0x20a   :  { %v4308_v51 = vcombine.high %v2095_v46, %v2097_v47  ;;  %v2115_v24 = vld [vmem:[#allocation4 + $0x5a8] sm:$0xff]  ;;  %v2118_v31 = vld [vmem:[#allocation4 + $0x620] sm:$0xff] }
 0x20b   :  { %v2117_v25 = vld [vmem:[#allocation4 + $0x5e8] sm:$0xff]  ;;  %v2120_v32 = vld [vmem:[#allocation4 + $0x660] sm:$0xff] }
 0x20c   :  { %4861 = vmatpush3.bf16.msra.mxu0 %v4860_v52  ;;  %4893 = vmatpush3.bf16.msra.mxu1 %v4892_v54  ;;  %v2098_v52 = vld [vmem:[#allocation4 + $0x3a0] sm:$0xff]  ;;  %v2099_v54 = vld [vmem:[#allocation4 + $0x3a8] sm:$0xff] }
 0x20d   :  { %2692 = vmatprep.subr.bf16.mxu0 %v4282_v55  ;;  %2774 = vmatprep.subr.bf16.mxu1 %v4284_v56  ;;  %v2101_v55 = vld [vmem:[#allocation4 + $0x3e8] sm:$0xff]  ;;  %v4307_v56 = vcombine.low %v2095_v46, %v2097_v47  ;;  %v4310_v58 = vcombine.high %v2098_v52, %v2100_v53  ;;  %v2122_v44 = vld [vmem:[#allocation4 + $0x6a0] sm:$0xff] }
 0x20e   :  { %v4312_v59 = vcombine.high %v2099_v54, %v2101_v55  ;;  %v2119_v38 = vld [vmem:[#allocation4 + $0x628] sm:$0xff]  ;;  %v2124_v45 = vld [vmem:[#allocation4 + $0x6e0] sm:$0xff] }
 0x20f   :  { %1995 = vmatmul.mubr.f32.vlgmr.msra.gmra.mrb[10].mxu0 %v868_v63  ;;  %2065 = vmatmul.mubr.f32.vlgmr.msra.gmra.mrb[10].mxu1 %v870_v20  ;;  %v2105_v63 = vld [vmem:[#allocation4 + $0x468] sm:$0xff]  ;;  %v4314_v20 = vcombine.high %v2102_v60, %v2104_v61 }
 0x210   :  { %2693 = vmatpush1.bf16.msra.mxu0 %v4281_v62  ;;  %2775 = vmatpush1.bf16.msra.mxu1 %v4283_v0  ;;  %v2103_v62 = vld [vmem:[#allocation4 + $0x428] sm:$0xff]  ;;  %v4309_v0 = vcombine.low %v2098_v52, %v2100_v53  ;;  %v2126_v52 = vld [vmem:[#allocation4 + $0x720] sm:$0xff] }
 0x211   :  { %2694 = vmatprep.subr.bf16.mxu0 %v4286_v1  ;;  %2776 = vmatprep.subr.bf16.mxu1 %v4288_v2  ;;  %v4311_v1 = vcombine.low %v2099_v54, %v2101_v55  ;;  %v4316_v2 = vcombine.high %v2103_v62, %v2105_v63  ;;  %v2121_v39 = vld [vmem:[#allocation4 + $0x668] sm:$0xff]  ;;  %v2128_v53 = vld [vmem:[#allocation4 + $0x760] sm:$0xff] }
 0x212   :  { %2724 = vmatprep.mubr.bf16.mxu0 %v5254_v57  ;;  %2806 = vmatprep.mubr.bf16.mxu1 %v5254_v57  ;;  %v2123_v46 = vld [vmem:[#allocation4 + $0x6a8] sm:$0xff] }
 0x213   :  { %v2125_v47 = vld [vmem:[#allocation4 + $0x6e8] sm:$0xff] }
 0x214   :  { %2695 = vmatpush1.bf16.msra.mxu0 %v4285_v6  ;;  %2777 = vmatpush1.bf16.msra.mxu1 %v4287_v7  ;;  %v4313_v6 = vcombine.low %v2102_v60, %v2104_v61  ;;  %v4315_v7 = vcombine.low %v2103_v62, %v2105_v63  ;;  %v2127_v54 = vld [vmem:[#allocation4 + $0x728] sm:$0xff]  ;;  %v2130_v60 = vld [vmem:[#allocation4 + $0x7a0] sm:$0xff] }
 0x215   :  { %2696 = vmatprep.subr.bf16.mxu0 %v4290_v8  ;;  %2778 = vmatprep.subr.bf16.mxu1 %v4292_v9  ;;  %v4318_v8 = vcombine.high %v2106_v3, %v2108_v4  ;;  %v4320_v9 = vcombine.high %v2107_v21, %v2109_v5  ;;  %v2129_v55 = vld [vmem:[#allocation4 + $0x768] sm:$0xff]  ;;  %v2132_v61 = vld [vmem:[#allocation4 + $0x7e0] sm:$0xff] }
 0x216   :  { %v2131_v62 = vld [vmem:[#allocation4 + $0x7a8] sm:$0xff] }
 0x217   :  { %v2133_v63 = vld [vmem:[#allocation4 + $0x7e8] sm:$0xff] }
 0x218   :  { %2697 = vmatpush1.bf16.msra.mxu0 %v4289_v15  ;;  %2779 = vmatpush1.bf16.msra.mxu1 %v4291_v16  ;;  %v4317_v15 = vcombine.low %v2106_v3, %v2108_v4  ;;  %v4319_v16 = vcombine.low %v2107_v21, %v2109_v5  ;;  %v2134_v3 = vld [vmem:[#allocation4 + $0x820] sm:$0xff]  ;;  %v2135_v21 = vld [vmem:[#allocation4 + $0x828] sm:$0xff] }
 0x219   :  { %2698 = vmatprep.subr.bf16.mxu0 %v4294_v17  ;;  %2780 = vmatprep.subr.bf16.mxu1 %v4296_v18  ;;  %v4322_v17 = vcombine.high %v2110_v10, %v2112_v11  ;;  %v4324_v18 = vcombine.high %v2111_v13, %v2113_v14  ;;  %v2136_v4 = vld [vmem:[#allocation4 + $0x860] sm:$0xff]  ;;  %v2137_v5 = vld [vmem:[#allocation4 + $0x868] sm:$0xff] }
 0x21c   :  { %2699 = vmatpush1.bf16.msra.mxu0 %v4293_v26  ;;  %2781 = vmatpush1.bf16.msra.mxu1 %v4295_v28  ;;  %v4321_v26 = vcombine.low %v2110_v10, %v2112_v11  ;;  %v4323_v28 = vcombine.low %v2111_v13, %v2113_v14  ;;  %v2138_v10 = vld [vmem:[#allocation4 + $0x8a0] sm:$0xff]  ;;  %v2139_v13 = vld [vmem:[#allocation4 + $0x8a8] sm:$0xff] }
 0x21d   :  { %2700 = vmatprep.subr.bf16.mxu0 %v4298_v29  ;;  %2782 = vmatprep.subr.bf16.mxu1 %v4300_v30  ;;  %v4326_v29 = vcombine.high %v2114_v19, %v2116_v23  ;;  %v4328_v30 = vcombine.high %v2115_v24, %v2117_v25  ;;  %v2140_v11 = vld [vmem:[#allocation4 + $0x8e0] sm:$0xff]  ;;  %v2141_v14 = vld [vmem:[#allocation4 + $0x8e8] sm:$0xff] }
 0x220   :  { %2701 = vmatpush1.bf16.msra.mxu0 %v4297_v40  ;;  %2783 = vmatpush1.bf16.msra.mxu1 %v4299_v41  ;;  %v4325_v40 = vcombine.low %v2114_v19, %v2116_v23  ;;  %v4327_v41 = vcombine.low %v2115_v24, %v2117_v25  ;;  %v2142_v19 = vld [vmem:[#allocation4 + $0x920] sm:$0xff]  ;;  %v2143_v24 = vld [vmem:[#allocation4 + $0x928] sm:$0xff] }
 0x221   :  { %2702 = vmatprep.subr.bf16.mxu0 %v4302_v42  ;;  %2784 = vmatprep.subr.bf16.mxu1 %v4304_v43  ;;  %v4330_v42 = vcombine.high %v2118_v31, %v2120_v32  ;;  %v4332_v43 = vcombine.high %v2119_v38, %v2121_v39  ;;  %v2144_v23 = vld [vmem:[#allocation4 + $0x960] sm:$0xff]  ;;  %v2145_v25 = vld [vmem:[#allocation4 + $0x968] sm:$0xff] }
 0x224   :  { %2703 = vmatpush1.bf16.msra.mxu0 %v4301_v48  ;;  %2785 = vmatpush1.bf16.msra.mxu1 %v4303_v49  ;;  %v4329_v48 = vcombine.low %v2118_v31, %v2120_v32  ;;  %v4331_v49 = vcombine.low %v2119_v38, %v2121_v39  ;;  %v2146_v31 = vld [vmem:[#allocation4 + $0x9a0] sm:$0xff]  ;;  %v2147_v38 = vld [vmem:[#allocation4 + $0x9a8] sm:$0xff] }
 0x225   :  { %2704 = vmatprep.subr.bf16.mxu0 %v4306_v50  ;;  %2786 = vmatprep.subr.bf16.mxu1 %v4308_v51  ;;  %v4334_v50 = vcombine.high %v2122_v44, %v2124_v45  ;;  %v4336_v51 = vcombine.high %v2123_v46, %v2125_v47  ;;  %v2148_v32 = vld [vmem:[#allocation4 + $0x9e0] sm:$0xff]  ;;  %v2149_v39 = vld [vmem:[#allocation4 + $0x9e8] sm:$0xff] }
 0x228   :  { %2705 = vmatpush1.bf16.msra.mxu0 %v4305_v35  ;;  %2787 = vmatpush1.bf16.msra.mxu1 %v4307_v56  ;;  %v4333_v35 = vcombine.low %v2122_v44, %v2124_v45  ;;  %v4335_v56 = vcombine.low %v2123_v46, %v2125_v47  ;;  %v2150_v44 = vld [vmem:[#allocation4 + $0xa20] sm:$0xff]  ;;  %v2151_v46 = vld [vmem:[#allocation4 + $0xa28] sm:$0xff] }
 0x229   :  { %2706 = vmatprep.subr.bf16.mxu0 %v4310_v58  ;;  %2788 = vmatprep.subr.bf16.mxu1 %v4312_v59  ;;  %v4338_v58 = vcombine.high %v2126_v52, %v2128_v53  ;;  %v4340_v59 = vcombine.high %v2127_v54, %v2129_v55  ;;  %v2152_v45 = vld [vmem:[#allocation4 + $0xa60] sm:$0xff]  ;;  %v2153_v47 = vld [vmem:[#allocation4 + $0xa68] sm:$0xff] }
 0x22c   :  { %2707 = vmatpush1.bf16.msra.mxu0 %v4309_v0  ;;  %2789 = vmatpush1.bf16.msra.mxu1 %v4311_v1  ;;  %v4337_v0 = vcombine.low %v2126_v52, %v2128_v53  ;;  %v4339_v1 = vcombine.low %v2127_v54, %v2129_v55  ;;  %v2154_v52 = vld [vmem:[#allocation4 + $0xaa0] sm:$0xff]  ;;  %v2155_v54 = vld [vmem:[#allocation4 + $0xaa8] sm:$0xff] }
 0x22d   :  { %2708 = vmatprep.subr.bf16.mxu0 %v4314_v20  ;;  %2790 = vmatprep.subr.bf16.mxu1 %v4316_v2  ;;  %v4342_v20 = vcombine.high %v2130_v60, %v2132_v61  ;;  %v4344_v2 = vcombine.high %v2131_v62, %v2133_v63  ;;  %v2156_v53 = vld [vmem:[#allocation4 + $0xae0] sm:$0xff]  ;;  %v2157_v55 = vld [vmem:[#allocation4 + $0xae8] sm:$0xff] }
 0x230   :  { %2709 = vmatpush1.bf16.msra.mxu0 %v4313_v6  ;;  %2791 = vmatpush1.bf16.msra.mxu1 %v4315_v7  ;;  %v4341_v6 = vcombine.low %v2130_v60, %v2132_v61  ;;  %v4343_v7 = vcombine.low %v2131_v62, %v2133_v63  ;;  %v2158_v60 = vld [vmem:[#allocation4 + $0xb20] sm:$0xff]  ;;  %v2159_v62 = vld [vmem:[#allocation4 + $0xb28] sm:$0xff] }
 0x231   :  { %2710 = vmatprep.subr.bf16.mxu0 %v4318_v8  ;;  %2792 = vmatprep.subr.bf16.mxu1 %v4320_v9  ;;  %v4346_v8 = vcombine.high %v2134_v3, %v2136_v4  ;;  %v4348_v9 = vcombine.high %v2135_v21, %v2137_v5  ;;  %v2160_v61 = vld [vmem:[#allocation4 + $0xb60] sm:$0xff]  ;;  %v2161_v63 = vld [vmem:[#allocation4 + $0xb68] sm:$0xff] }
 0x234   :  { %2711 = vmatpush1.bf16.msra.mxu0 %v4317_v15  ;;  %2793 = vmatpush1.bf16.msra.mxu1 %v4319_v16  ;;  %v4345_v15 = vcombine.low %v2134_v3, %v2136_v4  ;;  %v4347_v16 = vcombine.low %v2135_v21, %v2137_v5  ;;  %v2162_v3 = vld [vmem:[#allocation4 + $0xba0] sm:$0xff]  ;;  %v2163_v21 = vld [vmem:[#allocation4 + $0xba8] sm:$0xff] }
 0x235   :  { %2712 = vmatprep.subr.bf16.mxu0 %v4322_v17  ;;  %2794 = vmatprep.subr.bf16.mxu1 %v4324_v18  ;;  %v4350_v17 = vcombine.high %v2138_v10, %v2140_v11  ;;  %v4352_v18 = vcombine.high %v2139_v13, %v2141_v14  ;;  %v2164_v4 = vld [vmem:[#allocation4 + $0xbe0] sm:$0xff]  ;;  %v2165_v5 = vld [vmem:[#allocation4 + $0xbe8] sm:$0xff] }
 0x238   :  { %2713 = vmatpush1.bf16.msra.mxu0 %v4321_v26  ;;  %2795 = vmatpush1.bf16.msra.mxu1 %v4323_v28  ;;  %v4349_v26 = vcombine.low %v2138_v10, %v2140_v11  ;;  %v4351_v28 = vcombine.low %v2139_v13, %v2141_v14  ;;  %v2166_v10 = vld [vmem:[#allocation4 + $0xc20] sm:$0xff]  ;;  %v2167_v13 = vld [vmem:[#allocation4 + $0xc28] sm:$0xff] }
 0x239   :  { %2714 = vmatprep.subr.bf16.mxu0 %v4326_v29  ;;  %2796 = vmatprep.subr.bf16.mxu1 %v4328_v30  ;;  %v4354_v29 = vcombine.high %v2142_v19, %v2144_v23  ;;  %v4356_v30 = vcombine.high %v2143_v24, %v2145_v25  ;;  %v2168_v11 = vld [vmem:[#allocation4 + $0xc60] sm:$0xff]  ;;  %v2169_v14 = vld [vmem:[#allocation4 + $0xc68] sm:$0xff] }
 0x23c   :  { %2715 = vmatpush1.bf16.msra.mxu0 %v4325_v40  ;;  %2797 = vmatpush1.bf16.msra.mxu1 %v4327_v41  ;;  %v4353_v40 = vcombine.low %v2142_v19, %v2144_v23  ;;  %v4355_v41 = vcombine.low %v2143_v24, %v2145_v25  ;;  %v2876_v19 = vld [vmem:[%s6115_s3 + $0x480] sm:$0xff]  ;;  %v2877_v23 = vld [vmem:[%s6115_s3 + $0x488] sm:$0xff] }
 0x23d   :  { %2716 = vmatprep.subr.bf16.mxu0 %v4330_v42  ;;  %2798 = vmatprep.subr.bf16.mxu1 %v4332_v43  ;;  %v4358_v42 = vcombine.high %v2146_v31, %v2148_v32  ;;  %v4360_v43 = vcombine.high %v2147_v38, %v2149_v39  ;;  %v2908_v24 = vld [vmem:[%s6115_s3 + $0x580] sm:$0xff]  ;;  %v2909_v25 = vld [vmem:[%s6115_s3 + $0x588] sm:$0xff] }
 0x240   :  { %2717 = vmatpush1.bf16.msra.mxu0 %v4329_v48  ;;  %2799 = vmatpush1.bf16.msra.mxu1 %v4331_v49  ;;  %v4357_v48 = vcombine.low %v2146_v31, %v2148_v32  ;;  %v4359_v49 = vcombine.low %v2147_v38, %v2149_v39  ;;  %v2861_v31 = vld [vmem:[%s6115_s3 + $0x408] sm:$0xff]  ;;  %v2892_v32 = vld [vmem:[%s6115_s3 + $0x500] sm:$0xff]  ;;  %v4926_v38 = vpack.c.bf16 %v2909_v25, %v2908_v24 }
 0x241   :  { %2718 = vmatprep.subr.bf16.mxu0 %v4334_v50  ;;  %2800 = vmatprep.subr.bf16.mxu1 %v4336_v51  ;;  %v4362_v50 = vcombine.high %v2150_v44, %v2152_v45  ;;  %v4364_v51 = vcombine.high %v2151_v46, %v2153_v47  ;;  %v2893_v39 = vld [vmem:[%s6115_s3 + $0x508] sm:$0xff] }
 0x242   :  { %v2901_v25 = vld [vmem:[%s6115_s3 + $0x548] sm:$0xff] }
 0x244   :  { %2719 = vmatpush1.bf16.msra.mxu0 %v4333_v35  ;;  %2801 = vmatpush1.bf16.msra.mxu1 %v4335_v56  ;;  %v4361_v35 = vcombine.low %v2150_v44, %v2152_v45  ;;  %v4363_v56 = vcombine.low %v2151_v46, %v2153_v47  ;;  %v4928_v45 = vpack.c.bf16 %v2893_v39, %v2892_v32  ;;  %v2862_v47 = vld [vmem:[%s6115_s3 + $0x410] sm:$0xff] }
 0x245   :  { %2720 = vmatprep.subr.bf16.mxu0 %v4338_v58  ;;  %2802 = vmatprep.subr.bf16.mxu1 %v4340_v59  ;;  %v4366_v58 = vcombine.high %v2154_v52, %v2156_v53  ;;  %v4368_v59 = vcombine.high %v2155_v54, %v2157_v55  ;;  %v2870_v39 = vld [vmem:[%s6115_s3 + $0x450] sm:$0xff] }
 0x248   :  { %2721 = vmatpush1.bf16.msra.mxu0 %v4337_v0  ;;  %2803 = vmatpush1.bf16.msra.mxu1 %v4339_v1  ;;  %v4365_v0 = vcombine.low %v2154_v52, %v2156_v53  ;;  %v4367_v1 = vcombine.low %v2155_v54, %v2157_v55  ;;  %v2880_v52 = vld [vmem:[%s6115_s3 + $0x4a0] sm:$0xff]  ;;  %v2881_v53 = vld [vmem:[%s6115_s3 + $0x4a8] sm:$0xff] }
 0x249   :  { %2722 = vmatprep.subr.bf16.mxu0 %v4342_v20  ;;  %2804 = vmatprep.subr.bf16.mxu1 %v4344_v2  ;;  %v4370_v20 = vcombine.high %v2158_v60, %v2160_v61  ;;  %v4372_v2 = vcombine.high %v2159_v62, %v2161_v63  ;;  %v2912_v54 = vld [vmem:[%s6115_s3 + $0x5a0] sm:$0xff]  ;;  %v2913_v55 = vld [vmem:[%s6115_s3 + $0x5a8] sm:$0xff] }
 0x24c   :  { %2723 = vmatpush1.bf16.msra.mxu0 %v4341_v6  ;;  %2805 = vmatpush1.bf16.msra.mxu1 %v4343_v7  ;;  %v4369_v6 = vcombine.low %v2158_v60, %v2160_v61  ;;  %v4371_v7 = vcombine.low %v2159_v62, %v2161_v63  ;;  %v2865_v60 = vld [vmem:[%s6115_s3 + $0x428] sm:$0xff]  ;;  %v2896_v61 = vld [vmem:[%s6115_s3 + $0x520] sm:$0xff]  ;;  %v4934_v62 = vpack.c.bf16 %v2913_v55, %v2912_v54 }
 0x24d   :  { %2733 = vmatprep.subr.bf16.mxu0 %v4346_v8  ;;  %2815 = vmatprep.subr.bf16.mxu1 %v4348_v9  ;;  %v4374_v8 = vcombine.high %v2162_v3, %v2164_v4  ;;  %v4376_v9 = vcombine.high %v2163_v21, %v2165_v5  ;;  %v2897_v63 = vld [vmem:[%s6115_s3 + $0x528] sm:$0xff]  ;;  %v2904_v54 = vld [vmem:[%s6115_s3 + $0x560] sm:$0xff] }
 0x24e   :  { %v2905_v55 = vld [vmem:[%s6115_s3 + $0x568] sm:$0xff] }
 0x24f   :  { %2725 = vmatmul.mubr.bf16.vlgmr.msra.gmra.mrb[12].mxu0 %v5258_v12  ;;  %2807 = vmatmul.mubr.bf16.vlgmr.msra.gmra.mrb[12].mxu1 %v5258_v12 }
 0x250   :  { %2734 = vmatpush1.bf16.msra.mxu0 %v4345_v15  ;;  %2816 = vmatpush1.bf16.msra.mxu1 %v4347_v16  ;;  %v4373_v15 = vcombine.low %v2162_v3, %v2164_v4  ;;  %v4375_v16 = vcombine.low %v2163_v21, %v2165_v5  ;;  %v4936_v4 = vpack.c.bf16 %v2897_v63, %v2896_v61  ;;  %v2866_v5 = vld [vmem:[%s6115_s3 + $0x430] sm:$0xff] }
 0x251   :  { %2735 = vmatprep.subr.bf16.mxu0 %v4350_v17  ;;  %2817 = vmatprep.subr.bf16.mxu1 %v4352_v18  ;;  %v4378_v17 = vcombine.high %v2166_v10, %v2168_v11  ;;  %v4380_v18 = vcombine.high %v2167_v13, %v2169_v14 }
 0x252   :  { %4381 = vmatprep.mubr.msk.bf16.mxu0 %vm700_vm0, %v5260_v22  ;;  %4382 = vmatprep.mubr.msk.bf16.mxu1 %vm700_vm0, %v5260_v22 }
 0x254   :  { %2736 = vmatpush1.bf16.msra.mxu0 %v4349_v26  ;;  %2818 = vmatpush1.bf16.msra.mxu1 %v4351_v28  ;;  %v4377_v26 = vcombine.low %v2166_v10, %v2168_v11  ;;  %v4379_v28 = vcombine.low %v2167_v13, %v2169_v14  ;;  %v2884_v10 = vld [vmem:[%s6115_s3 + $0x4c0] sm:$0xff]  ;;  %v2885_v11 = vld [vmem:[%s6115_s3 + $0x4c8] sm:$0xff] }
 0x255   :  { %2737 = vmatprep.subr.bf16.mxu0 %v4354_v29  ;;  %2819 = vmatprep.subr.bf16.mxu1 %v4356_v30  ;;  %v4894_v29 = vpack.c.bf16 %v2877_v23, %v2876_v19  ;;  %v2860_v30 = vld [vmem:[%s6115_s3 + $0x400] sm:$0xff]  ;;  %v2917_v14 = vld [vmem:[%s6115_s3 + $0x5c8] sm:$0xff] }
 0x256   :  { %v4896_v44 = vpack.c.bf16 %v2861_v31, %v2860_v30  ;;  %v2916_v13 = vld [vmem:[%s6115_s3 + $0x5c0] sm:$0xff]  ;;  %v2869_v19 = vld [vmem:[%s6115_s3 + $0x448] sm:$0xff]  ;;  %v2919_v30 = vld [vmem:[%s6115_s3 + $0x5d8] sm:$0xff] }
 0x257   :  { %v2900_v23 = vld [vmem:[%s6115_s3 + $0x540] sm:$0xff]  ;;  %v4942_v24 = vpack.c.bf16 %v2917_v14, %v2916_v13  ;;  %v3067_v13 = vld [vmem:[#allocation4 + $0x70] sm:$0xff]  ;;  %v3066_v14 = vld [vmem:[#allocation4 + $0x38] sm:$0xff] }
 0x258   :  { %2738 = vmatpush1.bf16.msra.mxu0 %v4353_v40  ;;  %2820 = vmatpush1.bf16.msra.mxu1 %v4355_v41  ;;  %v2878_v40 = vld [vmem:[%s6115_s3 + $0x490] sm:$0xff]  ;;  %v2879_v41 = vld [vmem:[%s6115_s3 + $0x498] sm:$0xff]  ;;  %v4944_v32 = vpack.c.bf16 %v2901_v25, %v2900_v23 }
 0x259   :  { %2739 = vmatprep.subr.bf16.mxu0 %v4358_v42  ;;  %2821 = vmatprep.subr.bf16.mxu1 %v4360_v43  ;;  %v2910_v42 = vld [vmem:[%s6115_s3 + $0x590] sm:$0xff]  ;;  %v2911_v43 = vld [vmem:[%s6115_s3 + $0x598] sm:$0xff]  ;;  %v4898_v46 = vpack.c.bf16 %v2879_v41, %v2878_v40 }
 0x25a   :  { %v2871_v40 = vld [vmem:[%s6115_s3 + $0x458] sm:$0xff]  ;;  %v2902_v41 = vld [vmem:[%s6115_s3 + $0x550] sm:$0xff] }
 0x25c   :  { %2740 = vmatpush1.bf16.msra.mxu0 %v4357_v48  ;;  %2822 = vmatpush1.bf16.msra.mxu1 %v4359_v49  ;;  %v2863_v48 = vld [vmem:[%s6115_s3 + $0x418] sm:$0xff]  ;;  %v2894_v49 = vld [vmem:[%s6115_s3 + $0x510] sm:$0xff] }
 0x25d   :  { %2741 = vmatprep.subr.bf16.mxu0 %v4362_v50  ;;  %2823 = vmatprep.subr.bf16.mxu1 %v4364_v51  ;;  %v4930_v50 = vpack.c.bf16 %v2911_v43, %v2910_v42  ;;  %v2895_v51 = vld [vmem:[%s6115_s3 + $0x518] sm:$0xff] }
 0x25e   :  { %v2903_v43 = vld [vmem:[%s6115_s3 + $0x558] sm:$0xff] }
 0x260   :  { %2742 = vmatpush1.bf16.msra.mxu0 %v4361_v35  ;;  %2824 = vmatpush1.bf16.msra.mxu1 %v4363_v56  ;;  %v4900_v35 = vpack.c.bf16 %v2863_v48, %v2862_v47  ;;  %v4932_v56 = vpack.c.bf16 %v2895_v51, %v2894_v49  ;;  %v2921_v47 = vld [vmem:[%s6115_s3 + $0x5e8] sm:$0xff]  ;;  %v4916_v48 = vpack.c.bf16 %v2871_v40, %v2870_v39  ;;  %v2872_v51 = vld [vmem:[%s6115_s3 + $0x460] sm:$0xff] }
 0x261   :  { %2743 = vmatprep.subr.bf16.mxu0 %v4366_v58  ;;  %2825 = vmatprep.subr.bf16.mxu1 %v4368_v59  ;;  %v4902_v58 = vpack.c.bf16 %v2881_v53, %v2880_v52  ;;  %v2864_v59 = vld [vmem:[%s6115_s3 + $0x420] sm:$0xff]  ;;  %v4948_v49 = vpack.c.bf16 %v2903_v43, %v2902_v41  ;;  %v2873_v52 = vld [vmem:[%s6115_s3 + $0x468] sm:$0xff] }
 0x262   :  { %v4904_v3 = vpack.c.bf16 %v2865_v60, %v2864_v59 }
 0x264   :  { %2744 = vmatpush1.bf16.msra.mxu0 %v4365_v0  ;;  %2826 = vmatpush1.bf16.msra.mxu1 %v4367_v1  ;;  %v2882_v0 = vld [vmem:[%s6115_s3 + $0x4b0] sm:$0xff]  ;;  %v2883_v1 = vld [vmem:[%s6115_s3 + $0x4b8] sm:$0xff] }
 0x265   :  { %2745 = vmatprep.subr.bf16.mxu0 %v4370_v20  ;;  %2827 = vmatprep.subr.bf16.mxu1 %v4372_v2  ;;  %v2914_v20 = vld [vmem:[%s6115_s3 + $0x5b0] sm:$0xff]  ;;  %v2915_v2 = vld [vmem:[%s6115_s3 + $0x5b8] sm:$0xff]  ;;  %v4906_v21 = vpack.c.bf16 %v2883_v1, %v2882_v0 }
 0x266   :  { %v2890_v0 = vld [vmem:[%s6115_s3 + $0x4f0] sm:$0xff]  ;;  %v2891_v1 = vld [vmem:[%s6115_s3 + $0x4f8] sm:$0xff] }
 0x268   :  { %2746 = vmatpush1.bf16.msra.mxu0 %v4369_v6  ;;  %2828 = vmatpush1.bf16.msra.mxu1 %v4371_v7  ;;  %v2867_v6 = vld [vmem:[%s6115_s3 + $0x438] sm:$0xff]  ;;  %v2898_v7 = vld [vmem:[%s6115_s3 + $0x530] sm:$0xff] }
 0x269   :  { %2747 = vmatprep.subr.bf16.mxu0 %v4374_v8  ;;  %2829 = vmatprep.subr.bf16.mxu1 %v4376_v9  ;;  %v4938_v8 = vpack.c.bf16 %v2915_v2, %v2914_v20  ;;  %v2899_v9 = vld [vmem:[%s6115_s3 + $0x538] sm:$0xff]  ;;  %v2922_v20 = vld [vmem:[%s6115_s3 + $0x5f0] sm:$0xff] }
 0x26c   :  { %2748 = vmatpush1.bf16.msra.mxu0 %v4373_v15  ;;  %2830 = vmatpush1.bf16.msra.mxu1 %v4375_v16  ;;  %v4908_v15 = vpack.c.bf16 %v2867_v6, %v2866_v5  ;;  %v4940_v16 = vpack.c.bf16 %v2899_v9, %v2898_v7  ;;  %v2875_v5 = vld [vmem:[%s6115_s3 + $0x478] sm:$0xff] }
 0x26d   :  { %2749 = vmatprep.subr.bf16.mxu0 %v4378_v17  ;;  %2831 = vmatprep.subr.bf16.mxu1 %v4380_v18  ;;  %v4910_v17 = vpack.c.bf16 %v2885_v11, %v2884_v10  ;;  %v2868_v18 = vld [vmem:[%s6115_s3 + $0x440] sm:$0xff]  ;;  %v2907_v9 = vld [vmem:[%s6115_s3 + $0x578] sm:$0xff]  ;;  %v3065_v11 = vld [vmem:[#allocation4 + $0x30] sm:$0xff] }
 0x26e   :  { %v4912_v31 = vpack.c.bf16 %v2869_v19, %v2868_v18 }
 0x270   :  { %2750 = vmatpush1.bf16.msra.mxu0 %v4377_v26  ;;  %2832 = vmatpush1.bf16.msra.mxu1 %v4379_v28  ;;  %v2886_v26 = vld [vmem:[%s6115_s3 + $0x4d0] sm:$0xff]  ;;  %v2887_v28 = vld [vmem:[%s6115_s3 + $0x4d8] sm:$0xff] }
 0x271   :  { %4895 = vmatprep.subr.bf16.mxu0 %v4894_v29  ;;  %4927 = vmatprep.subr.bf16.mxu1 %v4926_v38  ;;  %v2918_v29 = vld [vmem:[%s6115_s3 + $0x5d0] sm:$0xff]  ;;  %v4914_v38 = vpack.c.bf16 %v2887_v28, %v2886_v26 }
 0x272   :  { %v4946_v42 = vpack.c.bf16 %v2919_v30, %v2918_v29 }
 0x273   :  { %2766 = vmatmul.mubr.bf16.vlgmr.msra.gmra.mrb[12].mxu0 %v5268_v27  ;;  %2848 = vmatmul.mubr.bf16.vlgmr.msra.gmra.mrb[12].mxu1 %v5268_v27 }
 0x274   :  { %4897 = vmatpush3.bf16.msra.mxu0 %v4896_v44  ;;  %4929 = vmatpush3.bf16.msra.mxu1 %v4928_v45  ;;  %v2888_v44 = vld [vmem:[%s6115_s3 + $0x4e0] sm:$0xff]  ;;  %v2889_v45 = vld [vmem:[%s6115_s3 + $0x4e8] sm:$0xff] }
 0x275   :  { %4899 = vmatprep.subr.bf16.mxu0 %v4898_v46  ;;  %4931 = vmatprep.subr.bf16.mxu1 %v4930_v50  ;;  %v2920_v46 = vld [vmem:[%s6115_s3 + $0x5e0] sm:$0xff]  ;;  %v4918_v50 = vpack.c.bf16 %v2889_v45, %v2888_v44 }
 0x276   :  { %v4950_v53 = vpack.c.bf16 %v2921_v47, %v2920_v46 }
 0x278   :  { %4901 = vmatpush3.bf16.msra.mxu0 %v4900_v35  ;;  %4933 = vmatpush3.bf16.msra.mxu1 %v4932_v56  ;;  %v4920_v35 = vpack.c.bf16 %v2873_v52, %v2872_v51  ;;  %v4952_v56 = vpack.c.bf16 %v2905_v55, %v2904_v54  ;;  %v3071_v51 = vld [vmem:[#allocation4 + $0xf0] sm:$0xff]  ;;  %v3070_v55 = vld [vmem:[#allocation4 + $0xb8] sm:$0xff] }
 0x279   :  { %4903 = vmatprep.subr.bf16.mxu0 %v4902_v58  ;;  %4935 = vmatprep.subr.bf16.mxu1 %v4934_v62 }
 0x27c   :  { %4905 = vmatpush3.bf16.msra.mxu0 %v4904_v3  ;;  %4937 = vmatpush3.bf16.msra.mxu1 %v4936_v4  ;;  %v4922_v3 = vpack.c.bf16 %v2891_v1, %v2890_v0  ;;  %v2923_v4 = vld [vmem:[%s6115_s3 + $0x5f8] sm:$0xff]  ;;  %v3073_v0 = vld [vmem:[#allocation4 + $0x130] sm:$0xff] }
 0x27d   :  { %4907 = vmatprep.subr.bf16.mxu0 %v4906_v21  ;;  %4939 = vmatprep.subr.bf16.mxu1 %v4938_v8  ;;  %v2874_v21 = vld [vmem:[%s6115_s3 + $0x470] sm:$0xff]  ;;  %v4954_v6 = vpack.c.bf16 %v2923_v4, %v2922_v20  ;;  %v3074_v20 = vld [vmem:[#allocation4 + $0x138] sm:$0xff] }
 0x27e   :  { %v4924_v7 = vpack.c.bf16 %v2875_v5, %v2874_v21  ;;  %v2906_v8 = vld [vmem:[%s6115_s3 + $0x570] sm:$0xff] }
 0x27f   :  { %v4956_v10 = vpack.c.bf16 %v2907_v9, %v2906_v8  ;;  %v3075_v1 = vld [vmem:[#allocation4 + $0x170] sm:$0xff]  ;;  %v3078_v8 = vld [vmem:[#allocation4 + $0x1b8] sm:$0xff] }
 0x280   :  { %4909 = vmatpush3.bf16.msra.mxu0 %v4908_v15  ;;  %4941 = vmatpush3.bf16.msra.mxu1 %v4940_v16  ;;  %v4384_v15 = vcombine.high %v3065_v11, %v3067_v13  ;;  %v3068_v16 = vld [vmem:[#allocation4 + $0x78] sm:$0xff]  ;;  %v4392_v21 = vcombine.high %v3073_v0, %v3075_v1 }
 0x281   :  { %4911 = vmatprep.subr.bf16.mxu0 %v4910_v17  ;;  %4943 = vmatprep.subr.bf16.mxu1 %v4942_v24  ;;  %v4383_v17 = vcombine.low %v3065_v11, %v3067_v13  ;;  %v4385_v18 = vcombine.low %v3066_v14, %v3068_v16  ;;  %v4386_v19 = vcombine.high %v3066_v14, %v3068_v16  ;;  %v3080_v9 = vld [vmem:[#allocation4 + $0x1f8] sm:$0xff]  ;;  %v3083_v16 = vld [vmem:[#allocation4 + $0x270] sm:$0xff] }
 0x282   :  { %v4398_v14 = vcombine.high %v3078_v8, %v3080_v9 }
 0x284   :  { %4913 = vmatpush3.bf16.msra.mxu0 %v4912_v31  ;;  %4945 = vmatpush3.bf16.msra.mxu1 %v4944_v32  ;;  %v2170_v32 = vld [vmem:[#allocation6 + $0x8] sm:$0xf] }
 0x285   :  { %4915 = vmatprep.subr.bf16.mxu0 %v4914_v38  ;;  %4947 = vmatprep.subr.bf16.mxu1 %v4946_v42  ;;  %v2175_v38 = vrot.slane %v2170_v32, %v5490_v33  ;;  %v2183_v39 = vrot.slane %v2170_v32, %v5496_v36  ;;  %v2179_v40 = vrot.slane %v2170_v32, %v5492_v34 }
 0x286   :  { %v2187_v41 = vrot.slane %v2170_v32, %v5498_v37 }
 0x288   :  { %4917 = vmatpush3.bf16.msra.mxu0 %v4916_v48  ;;  %4949 = vmatpush3.bf16.msra.mxu1 %v4948_v49 }
 0x289   :  { %4919 = vmatprep.subr.bf16.mxu0 %v4918_v50  ;;  %4951 = vmatprep.subr.bf16.mxu1 %v4950_v53  ;;  %v3069_v50 = vld [vmem:[#allocation4 + $0xb0] sm:$0xff] }
 0x28c   :  { %4921 = vmatpush3.bf16.msra.mxu0 %v4920_v35  ;;  %4953 = vmatpush3.bf16.msra.mxu1 %v4952_v56  ;;  %v3072_v35 = vld [vmem:[#allocation4 + $0xf8] sm:$0xff] }
 0x28d   :  { %4923 = vmatprep.subr.bf16.mxu0 %v4922_v3  ;;  %4955 = vmatprep.subr.bf16.mxu1 %v4954_v6  ;;  %v4387_v3 = vcombine.low %v3069_v50, %v3071_v51  ;;  %v4389_v4 = vcombine.low %v3070_v55, %v3072_v35  ;;  %v3077_v6 = vld [vmem:[#allocation4 + $0x1b0] sm:$0xff] }
 0x290   :  { %4925 = vmatpush3.bf16.msra.mxu0 %v4924_v7  ;;  %4957 = vmatpush3.bf16.msra.mxu1 %v4956_v10  ;;  %v3079_v7 = vld [vmem:[#allocation4 + $0x1f0] sm:$0xff]  ;;  %v4391_v10 = vcombine.low %v3073_v0, %v3075_v1 }
 0x291   :  { %3687 = vmatprep.subr.bf16.mxu0 %v4384_v15  ;;  %3769 = vmatprep.subr.bf16.mxu1 %v4386_v19  ;;  %v4396_v13 = vcombine.high %v3077_v6, %v3079_v7  ;;  %v3081_v15 = vld [vmem:[#allocation4 + $0x230] sm:$0xff]  ;;  %v4395_v19 = vcombine.low %v3077_v6, %v3079_v7 }
 0x292   :  { %v3101_v0 = vld [vmem:[#allocation4 + $0x4b0] sm:$0xff] }
 0x293   :  { %v3103_v1 = vld [vmem:[#allocation4 + $0x4f0] sm:$0xff] }
 0x294   :  { %v3105_v6 = vld [vmem:[#allocation4 + $0x530] sm:$0xff] }
 0x295   :  { %v3107_v7 = vld [vmem:[#allocation4 + $0x570] sm:$0xff] }
 0x2c2   :  { %v4518_v58 = vpop.f32.mrb[8].mxu0  ;;  %v4553_v59 = vpop.f32.mrb[8].mxu1 }
 0x2c3   :  { %v4519_v60 = vpop.f32.mrb[9].mxu0  ;;  %v4554_v62 = vpop.f32.mrb[9].mxu1 }
 0x2c4   :  { %v4520_v61 = vadd.f32 %v4519_v60, %v4518_v58  ;;  %v4555_v63 = vadd.f32 %v4554_v62, %v4553_v59 }
 0x2c6   :  { %v1927_v2 = vadd.f32 %v4555_v63, %v4520_v61  ;;  %v4388_v61 = vcombine.high %v3069_v50, %v3071_v51  ;;  %v4390_v63 = vcombine.high %v3070_v55, %v3072_v35  ;;  %v3094_v50 = vld [vmem:[#allocation4 + $0x3b8] sm:$0xff]  ;;  %v3097_v35 = vld [vmem:[#allocation4 + $0x430] sm:$0xff] }
 0x2c7   :  { %v3096_v51 = vld [vmem:[#allocation4 + $0x3f8] sm:$0xff] }
 0x2c8   :  { %v4414_v55 = vcombine.high %v3094_v50, %v3096_v51 }
 0x2e2   :  { %v4588_v23 = vpop.f32.mrb[10].mxu0  ;;  %v4623_v24 = vpop.f32.mrb[10].mxu1 }
 0x2e3   :  { %v4589_v25 = vpop.f32.mrb[11].mxu0  ;;  %v4624_v28 = vpop.f32.mrb[11].mxu1 }
 0x2e4   :  { %v4590_v26 = vadd.f32 %v4589_v25, %v4588_v23  ;;  %v4625_v29 = vadd.f32 %v4624_v28, %v4623_v24  ;;  %v4397_v23 = vcombine.low %v3078_v8, %v3080_v9  ;;  %v4400_v24 = vcombine.high %v3081_v15, %v3083_v16  ;;  %v3085_v25 = vld [vmem:[#allocation4 + $0x2b0] sm:$0xff]  ;;  %v3086_v28 = vld [vmem:[#allocation4 + $0x2b8] sm:$0xff] }
 0x2e5   :  { %v3106_v8 = vld [vmem:[#allocation4 + $0x538] sm:$0xff] }
 0x2e6   :  { %v1997_v30 = vadd.f32 %v4590_v26, %v1927_v2  ;;  %v3076_v2 = vld [vmem:[#allocation4 + $0x178] sm:$0xff]  ;;  %v3087_v26 = vld [vmem:[#allocation4 + $0x2f0] sm:$0xff] }
 0x2e7   :  { %v4394_v5 = vcombine.high %v3074_v20, %v3076_v2  ;;  %v4393_v11 = vcombine.low %v3074_v20, %v3076_v2  ;;  %v3102_v20 = vld [vmem:[#allocation4 + $0x4b8] sm:$0xff] }
 0x2e8   :  { %v5896_v31 = vadd.f32 %v4625_v29, %v1997_v30  ;;  %v3088_v29 = vld [vmem:[#allocation4 + $0x2f8] sm:$0xff]  ;;  %v4399_v30 = vcombine.low %v3081_v15, %v3083_v16  ;;  %v3109_v15 = vld [vmem:[#allocation4 + $0x5b0] sm:$0xff] }
 0x2e9   :  { %v3104_v2 = vld [vmem:[#allocation4 + $0x4f8] sm:$0xff]  ;;  %v3111_v16 = vld [vmem:[#allocation4 + $0x5f0] sm:$0xff] }
 0x2ea   :  { %v3108_v9 = vld [vmem:[#allocation4 + $0x578] sm:$0xff] }
 0x346   :  { %v2767_v42 = vpop.f32.mrb[12].mxu0  ;;  %v2849_v44 = vpop.f32.mrb[12].mxu1 }
 0x347   :  { %v5030_v43 = vadd.f32 %v2767_v42, %v2175_v38  ;;  %v2769_v45 = vpop.f32.mrb[13].mxu0  ;;  %v5032_v46 = vadd.f32 %v2849_v44, %v2183_v39  ;;  %v2851_v48 = vpop.f32.mrb[13].mxu1  ;;  %v4404_v38 = vcombine.high %v3085_v25, %v3087_v26  ;;  %v4406_v39 = vcombine.high %v3086_v28, %v3088_v29  ;;  %v3090_v42 = vld [vmem:[#allocation4 + $0x338] sm:$0xff] }
 0x348   :  { %v5031_v47 = vadd.f32 %v2769_v45, %v2179_v40  ;;  %v2771_v49 = vpop.f32.mrb[14].mxu0  ;;  %v5033_v52 = vadd.f32 %v2851_v48, %v2187_v41  ;;  %v2853_v53 = vpop.f32.mrb[14].mxu1  ;;  %v3089_v40 = vld [vmem:[#allocation4 + $0x330] sm:$0xff]  ;;  %v4403_v44 = vcombine.low %v3085_v25, %v3087_v26  ;;  %v4405_v45 = vcombine.low %v3086_v28, %v3088_v29  ;;  %v3114_v28 = vld [vmem:[#allocation4 + $0x638] sm:$0xff] }
 0x349   :  { %v2772_v54 = vpop.f32.mrb[15].mxu0  ;;  %v2854_v58 = vpop.f32.mrb[15].mxu1  ;;  %v2856_v59 = vmax.f32 %v5030_v43, 0.0  ;;  %v2858_v62 = vmax.f32 %v5032_v46, 0.0  ;;  %v3091_v41 = vld [vmem:[#allocation4 + $0x370] sm:$0xff]  ;;  %v3092_v43 = vld [vmem:[#allocation4 + $0x378] sm:$0xff] }
 0x34a   :  { %v2857_v56 = vmax.f32 %v5031_v47, 0.0  ;;  %v2859_v60 = vmax.f32 %v5033_v52, 0.0  ;;  %v4408_v46 = vcombine.high %v3089_v40, %v3091_v41  ;;  %v4410_v47 = vcombine.high %v3090_v42, %v3092_v43  ;;  %v3093_v48 = vld [vmem:[#allocation4 + $0x3b0] sm:$0xff]  ;;  %v3098_v58 = vld [vmem:[#allocation4 + $0x438] sm:$0xff] }
 0x34b   :  { %v3095_v49 = vld [vmem:[#allocation4 + $0x3f0] sm:$0xff]  ;;  %v4407_v52 = vcombine.low %v3089_v40, %v3091_v41  ;;  %v4409_v53 = vcombine.low %v3090_v42, %v3092_v43  ;;  %v3116_v29 = vld [vmem:[#allocation4 + $0x678] sm:$0xff] }
 0x34c   :  { %2988 = vmatprep.mubr.f32.mxu0 %v2857_v56  ;;  %3058 = vmatprep.mubr.f32.mxu1 %v2859_v60  ;;  %v4412_v54 = vcombine.high %v3093_v48, %v3095_v49  ;;  %v3099_v56 = vld [vmem:[#allocation4 + $0x470] sm:$0xff]  ;;  %v4411_v60 = vcombine.low %v3093_v48, %v3095_v49  ;;  %v3118_v42 = vld [vmem:[#allocation4 + $0x6b8] sm:$0xff] }
 0x34d   :  { %2989 = vmatmul.mubr.f32.vlgmr.msra.gmra.mrb[16].mxu0 %v2856_v59  ;;  %3059 = vmatmul.mubr.f32.vlgmr.msra.gmra.mrb[16].mxu1 %v2858_v62  ;;  %v3100_v59 = vld [vmem:[#allocation4 + $0x478] sm:$0xff]  ;;  %v4416_v62 = vcombine.high %v3097_v35, %v3099_v56  ;;  %v3113_v25 = vld [vmem:[#allocation4 + $0x630] sm:$0xff] }
 0x34e   :  { %3688 = vmatpush1.bf16.msra.mxu0 %v4383_v17  ;;  %3770 = vmatpush1.bf16.msra.mxu1 %v4385_v18  ;;  %v3082_v17 = vld [vmem:[#allocation4 + $0x238] sm:$0xff]  ;;  %v3115_v26 = vld [vmem:[#allocation4 + $0x670] sm:$0xff] }
 0x34f   :  { %3689 = vmatprep.subr.bf16.mxu0 %v4388_v61  ;;  %3771 = vmatprep.subr.bf16.mxu1 %v4390_v63  ;;  %v3084_v18 = vld [vmem:[#allocation4 + $0x278] sm:$0xff]  ;;  %v4413_v61 = vcombine.low %v3094_v50, %v3096_v51  ;;  %v4418_v63 = vcombine.high %v3098_v58, %v3100_v59  ;;  %v3117_v40 = vld [vmem:[#allocation4 + $0x6b0] sm:$0xff] }
 0x350   :  { %3719 = vmatprep.mubr.bf16.mxu0 %v5254_v57  ;;  %3801 = vmatprep.mubr.bf16.mxu1 %v5254_v57  ;;  %v4402_v57 = vcombine.high %v3082_v17, %v3084_v18  ;;  %v4401_v32 = vcombine.low %v3082_v17, %v3084_v18  ;;  %v3110_v17 = vld [vmem:[#allocation4 + $0x5b8] sm:$0xff]  ;;  %v3119_v41 = vld [vmem:[#allocation4 + $0x6f0] sm:$0xff] }
 0x351   :  { %v3112_v18 = vld [vmem:[#allocation4 + $0x5f8] sm:$0xff]  ;;  %v3121_v48 = vld [vmem:[#allocation4 + $0x730] sm:$0xff] }
 0x352   :  { %3690 = vmatpush1.bf16.msra.mxu0 %v4387_v3  ;;  %3772 = vmatpush1.bf16.msra.mxu1 %v4389_v4  ;;  %v4415_v3 = vcombine.low %v3097_v35, %v3099_v56  ;;  %v4417_v4 = vcombine.low %v3098_v58, %v3100_v59  ;;  %v3120_v43 = vld [vmem:[#allocation4 + $0x6f8] sm:$0xff]  ;;  %v3123_v49 = vld [vmem:[#allocation4 + $0x770] sm:$0xff] }
 0x353   :  { %3691 = vmatprep.subr.bf16.mxu0 %v4392_v21  ;;  %3773 = vmatprep.subr.bf16.mxu1 %v4394_v5  ;;  %v4420_v21 = vcombine.high %v3101_v0, %v3103_v1  ;;  %v4422_v5 = vcombine.high %v3102_v20, %v3104_v2  ;;  %v3122_v50 = vld [vmem:[#allocation4 + $0x738] sm:$0xff]  ;;  %v3125_v35 = vld [vmem:[#allocation4 + $0x7b0] sm:$0xff] }
 0x354   :  { %v3124_v51 = vld [vmem:[#allocation4 + $0x778] sm:$0xff]  ;;  %v3127_v56 = vld [vmem:[#allocation4 + $0x7f0] sm:$0xff] }
 0x355   :  { %v3126_v58 = vld [vmem:[#allocation4 + $0x7b8] sm:$0xff] }
 0x356   :  { %3692 = vmatpush1.bf16.msra.mxu0 %v4391_v10  ;;  %3774 = vmatpush1.bf16.msra.mxu1 %v4393_v11  ;;  %v4419_v10 = vcombine.low %v3101_v0, %v3103_v1  ;;  %v4421_v11 = vcombine.low %v3102_v20, %v3104_v2  ;;  %v3128_v59 = vld [vmem:[#allocation4 + $0x7f8] sm:$0xff]  ;;  %v3129_v0 = vld [vmem:[#allocation4 + $0x830] sm:$0xff] }
 0x357   :  { %3693 = vmatprep.subr.bf16.mxu0 %v4396_v13  ;;  %3775 = vmatprep.subr.bf16.mxu1 %v4398_v14  ;;  %v4424_v13 = vcombine.high %v3105_v6, %v3107_v7  ;;  %v4426_v14 = vcombine.high %v3106_v8, %v3108_v9  ;;  %v3131_v1 = vld [vmem:[#allocation4 + $0x870] sm:$0xff]  ;;  %v3130_v20 = vld [vmem:[#allocation4 + $0x838] sm:$0xff] }
 0x358   :  { %v3132_v2 = vld [vmem:[#allocation4 + $0x878] sm:$0xff] }
 0x35a   :  { %3694 = vmatpush1.bf16.msra.mxu0 %v4395_v19  ;;  %3776 = vmatpush1.bf16.msra.mxu1 %v4397_v23  ;;  %v4423_v19 = vcombine.low %v3105_v6, %v3107_v7  ;;  %v4425_v23 = vcombine.low %v3106_v8, %v3108_v9  ;;  %v3133_v6 = vld [vmem:[#allocation4 + $0x8b0] sm:$0xff]  ;;  %v3134_v8 = vld [vmem:[#allocation4 + $0x8b8] sm:$0xff] }
 0x35b   :  { %3695 = vmatprep.subr.bf16.mxu0 %v4400_v24  ;;  %3777 = vmatprep.subr.bf16.mxu1 %v4402_v57  ;;  %v4428_v24 = vcombine.high %v3109_v15, %v3111_v16  ;;  %v4430_v57 = vcombine.high %v3110_v17, %v3112_v18  ;;  %v3135_v7 = vld [vmem:[#allocation4 + $0x8f0] sm:$0xff]  ;;  %v3136_v9 = vld [vmem:[#allocation4 + $0x8f8] sm:$0xff] }
 0x35e   :  { %3696 = vmatpush1.bf16.msra.mxu0 %v4399_v30  ;;  %3778 = vmatpush1.bf16.msra.mxu1 %v4401_v32  ;;  %v4427_v30 = vcombine.low %v3109_v15, %v3111_v16  ;;  %v4429_v32 = vcombine.low %v3110_v17, %v3112_v18  ;;  %v3137_v15 = vld [vmem:[#allocation4 + $0x930] sm:$0xff]  ;;  %v3138_v17 = vld [vmem:[#allocation4 + $0x938] sm:$0xff] }
 0x35f   :  { %3697 = vmatprep.subr.bf16.mxu0 %v4404_v38  ;;  %3779 = vmatprep.subr.bf16.mxu1 %v4406_v39  ;;  %v4432_v38 = vcombine.high %v3113_v25, %v3115_v26  ;;  %v4434_v39 = vcombine.high %v3114_v28, %v3116_v29  ;;  %v3139_v16 = vld [vmem:[#allocation4 + $0x970] sm:$0xff]  ;;  %v3140_v18 = vld [vmem:[#allocation4 + $0x978] sm:$0xff] }
 0x362   :  { %3698 = vmatpush1.bf16.msra.mxu0 %v4403_v44  ;;  %3780 = vmatpush1.bf16.msra.mxu1 %v4405_v45  ;;  %v4431_v44 = vcombine.low %v3113_v25, %v3115_v26  ;;  %v4433_v45 = vcombine.low %v3114_v28, %v3116_v29  ;;  %v3141_v25 = vld [vmem:[#allocation4 + $0x9b0] sm:$0xff]  ;;  %v3142_v28 = vld [vmem:[#allocation4 + $0x9b8] sm:$0xff] }
 0x363   :  { %3699 = vmatprep.subr.bf16.mxu0 %v4408_v46  ;;  %3781 = vmatprep.subr.bf16.mxu1 %v4410_v47  ;;  %v4436_v46 = vcombine.high %v3117_v40, %v3119_v41  ;;  %v4438_v47 = vcombine.high %v3118_v42, %v3120_v43  ;;  %v3143_v26 = vld [vmem:[#allocation4 + $0x9f0] sm:$0xff]  ;;  %v3144_v29 = vld [vmem:[#allocation4 + $0x9f8] sm:$0xff] }
 0x366   :  { %3700 = vmatpush1.bf16.msra.mxu0 %v4407_v52  ;;  %3782 = vmatpush1.bf16.msra.mxu1 %v4409_v53  ;;  %v4435_v52 = vcombine.low %v3117_v40, %v3119_v41  ;;  %v4437_v53 = vcombine.low %v3118_v42, %v3120_v43  ;;  %v3147_v40 = vld [vmem:[#allocation4 + $0xa70] sm:$0xff]  ;;  %v3146_v41 = vld [vmem:[#allocation4 + $0xa38] sm:$0xff]  ;;  %v4459_v43 = vcombine.low %v3141_v25, %v3143_v26 }
 0x367   :  { %3701 = vmatprep.subr.bf16.mxu0 %v4412_v54  ;;  %3783 = vmatprep.subr.bf16.mxu1 %v4414_v55  ;;  %v4440_v54 = vcombine.high %v3121_v48, %v3123_v49  ;;  %v4442_v55 = vcombine.high %v3122_v50, %v3124_v51  ;;  %v3148_v42 = vld [vmem:[#allocation4 + $0xa78] sm:$0xff] }
 0x36a   :  { %3702 = vmatpush1.bf16.msra.mxu0 %v4411_v60  ;;  %3784 = vmatpush1.bf16.msra.mxu1 %v4413_v61  ;;  %v4439_v60 = vcombine.low %v3121_v48, %v3123_v49  ;;  %v4441_v61 = vcombine.low %v3122_v50, %v3124_v51  ;;  %v3150_v48 = vld [vmem:[#allocation4 + $0xab8] sm:$0xff]  ;;  %v4465_v51 = vcombine.low %v3146_v41, %v3148_v42 }
 0x36b   :  { %3703 = vmatprep.subr.bf16.mxu0 %v4416_v62  ;;  %3785 = vmatprep.subr.bf16.mxu1 %v4418_v63  ;;  %v4444_v62 = vcombine.high %v3125_v35, %v3127_v56  ;;  %v4446_v63 = vcombine.high %v3126_v58, %v3128_v59  ;;  %v3152_v49 = vld [vmem:[#allocation4 + $0xaf8] sm:$0xff] }
 0x36e   :  { %3704 = vmatpush1.bf16.msra.mxu0 %v4415_v3  ;;  %3786 = vmatpush1.bf16.msra.mxu1 %v4417_v4  ;;  %v4443_v3 = vcombine.low %v3125_v35, %v3127_v56  ;;  %v4445_v4 = vcombine.low %v3126_v58, %v3128_v59  ;;  %v3154_v35 = vld [vmem:[#allocation4 + $0xb38] sm:$0xff]  ;;  %v4469_v59 = vcombine.low %v3150_v48, %v3152_v49 }
 0x36f   :  { %3705 = vmatprep.subr.bf16.mxu0 %v4420_v21  ;;  %3787 = vmatprep.subr.bf16.mxu1 %v4422_v5  ;;  %v4448_v21 = vcombine.high %v3129_v0, %v3131_v1  ;;  %v4450_v5 = vcombine.high %v3130_v20, %v3132_v2  ;;  %v3156_v56 = vld [vmem:[#allocation4 + $0xb78] sm:$0xff] }
 0x372   :  { %3706 = vmatpush1.bf16.msra.mxu0 %v4419_v10  ;;  %3788 = vmatpush1.bf16.msra.mxu1 %v4421_v11  ;;  %v4447_v10 = vcombine.low %v3129_v0, %v3131_v1  ;;  %v4449_v11 = vcombine.low %v3130_v20, %v3132_v2  ;;  %v3158_v0 = vld [vmem:[#allocation4 + $0xbb8] sm:$0xff]  ;;  %v4473_v2 = vcombine.low %v3154_v35, %v3156_v56 }
 0x373   :  { %3707 = vmatprep.subr.bf16.mxu0 %v4424_v13  ;;  %3789 = vmatprep.subr.bf16.mxu1 %v4426_v14  ;;  %v4452_v13 = vcombine.high %v3133_v6, %v3135_v7  ;;  %v4454_v14 = vcombine.high %v3134_v8, %v3136_v9  ;;  %v3160_v1 = vld [vmem:[#allocation4 + $0xbf8] sm:$0xff] }
 0x376   :  { %3708 = vmatpush1.bf16.msra.mxu0 %v4423_v19  ;;  %3790 = vmatpush1.bf16.msra.mxu1 %v4425_v23  ;;  %v4451_v19 = vcombine.low %v3133_v6, %v3135_v7  ;;  %v4453_v23 = vcombine.low %v3134_v8, %v3136_v9  ;;  %v3162_v6 = vld [vmem:[#allocation4 + $0xc38] sm:$0xff]  ;;  %v4477_v9 = vcombine.low %v3158_v0, %v3160_v1 }
 0x377   :  { %3709 = vmatprep.subr.bf16.mxu0 %v4428_v24  ;;  %3791 = vmatprep.subr.bf16.mxu1 %v4430_v57  ;;  %v4456_v24 = vcombine.high %v3137_v15, %v3139_v16  ;;  %v4458_v57 = vcombine.high %v3138_v17, %v3140_v18  ;;  %v3164_v7 = vld [vmem:[#allocation4 + $0xc78] sm:$0xff] }
 0x37a   :  { %3710 = vmatpush1.bf16.msra.mxu0 %v4427_v30  ;;  %3792 = vmatpush1.bf16.msra.mxu1 %v4429_v32  ;;  %v4455_v30 = vcombine.low %v3137_v15, %v3139_v16  ;;  %v4460_v32 = vcombine.high %v3141_v25, %v3143_v26  ;;  %v3903_v15 = vld [vmem:[%s6115_s3 + $0x780] sm:$0xff]  ;;  %v3904_v16 = vld [vmem:[%s6115_s3 + $0x788] sm:$0xff] }
 0x37b   :  { %3711 = vmatprep.subr.bf16.mxu0 %v4432_v38  ;;  %3793 = vmatprep.subr.bf16.mxu1 %v4434_v39  ;;  %v4462_v38 = vcombine.high %v3142_v28, %v3144_v29  ;;  %v3145_v39 = vld [vmem:[#allocation4 + $0xa30] sm:$0xff]  ;;  %v4990_v25 = vpack.c.bf16 %v3904_v16, %v3903_v15  ;;  %v3888_v26 = vld [vmem:[%s6115_s3 + $0x708] sm:$0xff]  ;;  %v3882_v15 = vld [vmem:[%s6115_s3 + $0x6d8] sm:$0xff] }
 0x37c   :  { %v4463_v50 = vcombine.low %v3145_v39, %v3147_v40  ;;  %v3913_v16 = vld [vmem:[%s6115_s3 + $0x7d0] sm:$0xff] }
 0x37e   :  { %3712 = vmatpush1.bf16.msra.mxu0 %v4431_v44  ;;  %3794 = vmatpush1.bf16.msra.mxu1 %v4433_v45  ;;  %v4461_v44 = vcombine.low %v3142_v28, %v3144_v29  ;;  %v4464_v45 = vcombine.high %v3145_v39, %v3147_v40  ;;  %v3873_v28 = vld [vmem:[%s6115_s3 + $0x690] sm:$0xff]  ;;  %v3874_v29 = vld [vmem:[%s6115_s3 + $0x698] sm:$0xff] }
 0x37f   :  { %3713 = vmatprep.subr.bf16.mxu0 %v4436_v46  ;;  %3795 = vmatprep.subr.bf16.mxu1 %v4438_v47  ;;  %v3149_v46 = vld [vmem:[#allocation4 + $0xab0] sm:$0xff]  ;;  %v4962_v39 = vpack.c.bf16 %v3874_v29, %v3873_v28  ;;  %v3898_v28 = vld [vmem:[%s6115_s3 + $0x758] sm:$0xff]  ;;  %v3883_v29 = vld [vmem:[%s6115_s3 + $0x6e0] sm:$0xff] }
 0x380   :  { %v3151_v47 = vld [vmem:[#allocation4 + $0xaf0] sm:$0xff] }
 0x381   :  { %v4467_v58 = vcombine.low %v3149_v46, %v3151_v47  ;;  %v3857_v40 = vld [vmem:[%s6115_s3 + $0x610] sm:$0xff] }
 0x382   :  { %3714 = vmatpush1.bf16.msra.mxu0 %v4435_v52  ;;  %3796 = vmatpush1.bf16.msra.mxu1 %v4437_v53  ;;  %v4468_v52 = vcombine.high %v3149_v46, %v3151_v47  ;;  %v4470_v53 = vcombine.high %v3150_v48, %v3152_v49  ;;  %v3907_v46 = vld [vmem:[%s6115_s3 + $0x7a0] sm:$0xff]  ;;  %v3908_v47 = vld [vmem:[%s6115_s3 + $0x7a8] sm:$0xff] }
 0x383   :  { %3715 = vmatprep.subr.bf16.mxu0 %v4440_v54  ;;  %3797 = vmatprep.subr.bf16.mxu1 %v4442_v55  ;;  %v3153_v54 = vld [vmem:[#allocation4 + $0xb30] sm:$0xff] }
 0x384   :  { %v3155_v55 = vld [vmem:[#allocation4 + $0xb70] sm:$0xff] }
 0x385   :  { %v4471_v20 = vcombine.low %v3153_v54, %v3155_v55 }
 0x386   :  { %3716 = vmatpush1.bf16.msra.mxu0 %v4439_v60  ;;  %3798 = vmatpush1.bf16.msra.mxu1 %v4441_v61  ;;  %v4472_v60 = vcombine.high %v3153_v54, %v3155_v55  ;;  %v4474_v61 = vcombine.high %v3154_v35, %v3156_v56  ;;  %v3892_v54 = vld [vmem:[%s6115_s3 + $0x728] sm:$0xff]  ;;  %v3877_v55 = vld [vmem:[%s6115_s3 + $0x6b0] sm:$0xff]  ;;  %v3878_v35 = vld [vmem:[%s6115_s3 + $0x6b8] sm:$0xff] }
 0x387   :  { %3717 = vmatprep.subr.bf16.mxu0 %v4444_v62  ;;  %3799 = vmatprep.subr.bf16.mxu1 %v4446_v63  ;;  %v3157_v62 = vld [vmem:[#allocation4 + $0xbb0] sm:$0xff] }
 0x388   :  { %v3159_v63 = vld [vmem:[#allocation4 + $0xbf0] sm:$0xff] }
 0x389   :  { %v4475_v8 = vcombine.low %v3157_v62, %v3159_v63  ;;  %v3909_v56 = vld [vmem:[%s6115_s3 + $0x7b0] sm:$0xff] }
 0x38a   :  { %3718 = vmatpush1.bf16.msra.mxu0 %v4443_v3  ;;  %3800 = vmatpush1.bf16.msra.mxu1 %v4445_v4  ;;  %v4476_v3 = vcombine.high %v3157_v62, %v3159_v63  ;;  %v4478_v4 = vcombine.high %v3158_v0, %v3160_v1  ;;  %v3861_v62 = vld [vmem:[%s6115_s3 + $0x630] sm:$0xff]  ;;  %v3862_v63 = vld [vmem:[%s6115_s3 + $0x638] sm:$0xff] }
 0x38b   :  { %3728 = vmatprep.subr.bf16.mxu0 %v4448_v21  ;;  %3810 = vmatprep.subr.bf16.mxu1 %v4450_v5  ;;  %v3161_v21 = vld [vmem:[#allocation4 + $0xc30] sm:$0xff] }
 0x38c   :  { %v3163_v5 = vld [vmem:[#allocation4 + $0xc70] sm:$0xff] }
 0x38d   :  { %3720 = vmatmul.mubr.bf16.vlgmr.msra.gmra.mrb[20].mxu0 %v5258_v12  ;;  %3802 = vmatmul.mubr.bf16.vlgmr.msra.gmra.mrb[20].mxu1 %v5258_v12  ;;  %v4457_v12 = vcombine.low %v3138_v17, %v3140_v18  ;;  %v4479_v17 = vcombine.low %v3161_v21, %v3163_v5  ;;  %v4481_v18 = vcombine.low %v3162_v6, %v3164_v7  ;;  %v3893_v0 = vld [vmem:[%s6115_s3 + $0x730] sm:$0xff] }
 0x38e   :  { %3729 = vmatpush1.bf16.msra.mxu0 %v4447_v10  ;;  %3811 = vmatpush1.bf16.msra.mxu1 %v4449_v11  ;;  %v4480_v10 = vcombine.high %v3161_v21, %v3163_v5  ;;  %v4482_v11 = vcombine.high %v3162_v6, %v3164_v7  ;;  %v3912_v21 = vld [vmem:[%s6115_s3 + $0x7c8] sm:$0xff]  ;;  %v4972_v5 = vpack.c.bf16 %v3862_v63, %v3861_v62 }
 0x38f   :  { %3730 = vmatprep.subr.bf16.mxu0 %v4452_v13  ;;  %3812 = vmatprep.subr.bf16.mxu1 %v4454_v14  ;;  %v3871_v13 = vld [vmem:[%s6115_s3 + $0x680] sm:$0xff]  ;;  %v3872_v14 = vld [vmem:[%s6115_s3 + $0x688] sm:$0xff] }
 0x390   :  { %4483 = vmatprep.mubr.msk.bf16.mxu0 %vm700_vm0, %v5260_v22  ;;  %4484 = vmatprep.mubr.msk.bf16.mxu1 %vm700_vm0, %v5260_v22  ;;  %v4466_v22 = vcombine.high %v3146_v41, %v3148_v42  ;;  %v3858_v41 = vld [vmem:[%s6115_s3 + $0x618] sm:$0xff]  ;;  %v3889_v42 = vld [vmem:[%s6115_s3 + $0x710] sm:$0xff] }
 0x391   :  { %v4964_v48 = vpack.c.bf16 %v3858_v41, %v3857_v40 }
 0x392   :  { %3731 = vmatpush1.bf16.msra.mxu0 %v4451_v19  ;;  %3813 = vmatpush1.bf16.msra.mxu1 %v4453_v23  ;;  %v4958_v19 = vpack.c.bf16 %v3872_v14, %v3871_v13  ;;  %v3855_v23 = vld [vmem:[%s6115_s3 + $0x600] sm:$0xff]  ;;  %v3896_v13 = vld [vmem:[%s6115_s3 + $0x748] sm:$0xff]  ;;  %v3881_v14 = vld [vmem:[%s6115_s3 + $0x6d0] sm:$0xff] }
 0x393   :  { %3732 = vmatprep.subr.bf16.mxu0 %v4456_v24  ;;  %3814 = vmatprep.subr.bf16.mxu1 %v4458_v57  ;;  %v3856_v24 = vld [vmem:[%s6115_s3 + $0x608] sm:$0xff]  ;;  %v3887_v57 = vld [vmem:[%s6115_s3 + $0x700] sm:$0xff] }
 0x396   :  { %3733 = vmatpush1.bf16.msra.mxu0 %v4455_v30  ;;  %3815 = vmatpush1.bf16.msra.mxu1 %v4457_v12  ;;  %v3905_v30 = vld [vmem:[%s6115_s3 + $0x790] sm:$0xff]  ;;  %v3906_v12 = vld [vmem:[%s6115_s3 + $0x798] sm:$0xff] }
 0x397   :  { %3734 = vmatprep.subr.bf16.mxu0 %v4460_v32  ;;  %3816 = vmatprep.subr.bf16.mxu1 %v4462_v38  ;;  %v4960_v32 = vpack.c.bf16 %v3856_v24, %v3855_v23  ;;  %v4992_v38 = vpack.c.bf16 %v3888_v26, %v3887_v57  ;;  %v4978_v23 = vpack.c.bf16 %v3882_v15, %v3881_v14  ;;  %v3865_v24 = vld [vmem:[%s6115_s3 + $0x650] sm:$0xff]  ;;  %v3866_v57 = vld [vmem:[%s6115_s3 + $0x658] sm:$0xff] }
 0x39a   :  { %3735 = vmatpush1.bf16.msra.mxu0 %v4459_v43  ;;  %3817 = vmatpush1.bf16.msra.mxu1 %v4461_v44  ;;  %v4994_v43 = vpack.c.bf16 %v3906_v12, %v3905_v30  ;;  %v3890_v44 = vld [vmem:[%s6115_s3 + $0x718] sm:$0xff]  ;;  %v3884_v30 = vld [vmem:[%s6115_s3 + $0x6e8] sm:$0xff]  ;;  %v3915_v12 = vld [vmem:[%s6115_s3 + $0x7e0] sm:$0xff] }
 0x39b   :  { %3736 = vmatprep.subr.bf16.mxu0 %v4464_v45  ;;  %3818 = vmatprep.subr.bf16.mxu1 %v4466_v22  ;;  %v3875_v45 = vld [vmem:[%s6115_s3 + $0x6a0] sm:$0xff]  ;;  %v3876_v22 = vld [vmem:[%s6115_s3 + $0x6a8] sm:$0xff]  ;;  %v4996_v49 = vpack.c.bf16 %v3890_v44, %v3889_v42  ;;  %v4982_v40 = vpack.c.bf16 %v3884_v30, %v3883_v29 }
 0x39c   :  { %v3867_v42 = vld [vmem:[%s6115_s3 + $0x660] sm:$0xff] }
 0x39d   :  { %v3899_v44 = vld [vmem:[%s6115_s3 + $0x760] sm:$0xff] }
 0x39e   :  { %3737 = vmatpush1.bf16.msra.mxu0 %v4463_v50  ;;  %3819 = vmatpush1.bf16.msra.mxu1 %v4465_v51  ;;  %v4966_v50 = vpack.c.bf16 %v3876_v22, %v3875_v45  ;;  %v3859_v51 = vld [vmem:[%s6115_s3 + $0x620] sm:$0xff]  ;;  %v3900_v22 = vld [vmem:[%s6115_s3 + $0x768] sm:$0xff] }
 0x39f   :  { %3738 = vmatprep.subr.bf16.mxu0 %v4468_v52  ;;  %3820 = vmatprep.subr.bf16.mxu1 %v4470_v53  ;;  %v3860_v52 = vld [vmem:[%s6115_s3 + $0x628] sm:$0xff]  ;;  %v3891_v53 = vld [vmem:[%s6115_s3 + $0x720] sm:$0xff] }
 0x3a2   :  { %3739 = vmatpush1.bf16.msra.mxu0 %v4467_v58  ;;  %3821 = vmatpush1.bf16.msra.mxu1 %v4469_v59  ;;  %v3910_v58 = vld [vmem:[%s6115_s3 + $0x7b8] sm:$0xff]  ;;  %v4968_v59 = vpack.c.bf16 %v3860_v52, %v3859_v51  ;;  %v3869_v52 = vld [vmem:[%s6115_s3 + $0x670] sm:$0xff] }
 0x3a3   :  { %3740 = vmatprep.subr.bf16.mxu0 %v4472_v60  ;;  %3822 = vmatprep.subr.bf16.mxu1 %v4474_v61  ;;  %v5000_v60 = vpack.c.bf16 %v3892_v54, %v3891_v53  ;;  %v4970_v61 = vpack.c.bf16 %v3878_v35, %v3877_v55  ;;  %v5002_v1 = vpack.c.bf16 %v3910_v58, %v3909_v56  ;;  %v3918_v51 = vld [vmem:[%s6115_s3 + $0x7f8] sm:$0xff]  ;;  %v3901_v55 = vld [vmem:[%s6115_s3 + $0x770] sm:$0xff] }
 0x3a4   :  { %v3870_v53 = vld [vmem:[%s6115_s3 + $0x678] sm:$0xff] }
 0x3a5   :  { %v4988_v54 = vpack.c.bf16 %v3870_v53, %v3869_v52  ;;  %v3902_v35 = vld [vmem:[%s6115_s3 + $0x778] sm:$0xff] }
 0x3a6   :  { %3741 = vmatpush1.bf16.msra.mxu0 %v4471_v20  ;;  %3823 = vmatpush1.bf16.msra.mxu1 %v4473_v2  ;;  %v3894_v20 = vld [vmem:[%s6115_s3 + $0x738] sm:$0xff]  ;;  %v3879_v2 = vld [vmem:[%s6115_s3 + $0x6c0] sm:$0xff]  ;;  %v5020_v56 = vpack.c.bf16 %v3902_v35, %v3901_v55 }
 0x3a7   :  { %3742 = vmatprep.subr.bf16.mxu0 %v4476_v3  ;;  %3824 = vmatprep.subr.bf16.mxu1 %v4478_v4  ;;  %v3880_v3 = vld [vmem:[%s6115_s3 + $0x6c8] sm:$0xff]  ;;  %v3911_v4 = vld [vmem:[%s6115_s3 + $0x7c0] sm:$0xff]  ;;  %v5004_v6 = vpack.c.bf16 %v3894_v20, %v3893_v0 }
 0x3a8   :  { %v4974_v7 = vpack.c.bf16 %v3880_v3, %v3879_v2  ;;  %v3165_v20 = vld [vmem:[#allocation6 + $0xc] sm:$0xf] }
 0x3a9   :  { %v3170_v2 = vrot.slane %v3165_v20, %v5490_v33  ;;  %v3178_v3 = vrot.slane %v3165_v20, %v5496_v36 }
 0x3aa   :  { %3743 = vmatpush1.bf16.msra.mxu0 %v4475_v8  ;;  %3825 = vmatpush1.bf16.msra.mxu1 %v4477_v9  ;;  %v3863_v8 = vld [vmem:[%s6115_s3 + $0x640] sm:$0xff]  ;;  %v3864_v9 = vld [vmem:[%s6115_s3 + $0x648] sm:$0xff] }
 0x3ab   :  { %3744 = vmatprep.subr.bf16.mxu0 %v4480_v10  ;;  %3826 = vmatprep.subr.bf16.mxu1 %v4482_v11  ;;  %v3895_v10 = vld [vmem:[%s6115_s3 + $0x740] sm:$0xff]  ;;  %v5006_v11 = vpack.c.bf16 %v3912_v21, %v3911_v4  ;;  %v3174_v4 = vrot.slane %v3165_v20, %v5492_v34  ;;  %v3182_v21 = vrot.slane %v3165_v20, %v5498_v37 }
 0x3ae   :  { %3745 = vmatpush1.bf16.msra.mxu0 %v4479_v17  ;;  %3827 = vmatpush1.bf16.msra.mxu1 %v4481_v18  ;;  %v3914_v17 = vld [vmem:[%s6115_s3 + $0x7d8] sm:$0xff]  ;;  %v4976_v18 = vpack.c.bf16 %v3864_v9, %v3863_v8 }
 0x3af   :  { %4959 = vmatprep.subr.bf16.mxu0 %v4958_v19  ;;  %4991 = vmatprep.subr.bf16.mxu1 %v4990_v25  ;;  %v5008_v19 = vpack.c.bf16 %v3896_v13, %v3895_v10  ;;  %v3897_v25 = vld [vmem:[%s6115_s3 + $0x750] sm:$0xff]  ;;  %v5010_v26 = vpack.c.bf16 %v3914_v17, %v3913_v16 }
 0x3b1   :  { %3761 = vmatmul.mubr.bf16.vlgmr.msra.gmra.mrb[20].mxu0 %v5268_v27  ;;  %3843 = vmatmul.mubr.bf16.vlgmr.msra.gmra.mrb[20].mxu1 %v5268_v27  ;;  %v4998_v27 = vpack.c.bf16 %v3908_v47, %v3907_v46  ;;  %v5016_v46 = vpack.c.bf16 %v3900_v22, %v3899_v44  ;;  %v3885_v47 = vld [vmem:[%s6115_s3 + $0x6f0] sm:$0xff] }
 0x3b2   :  { %4961 = vmatpush3.bf16.msra.mxu0 %v4960_v32  ;;  %4993 = vmatpush3.bf16.msra.mxu1 %v4992_v38  ;;  %v3916_v32 = vld [vmem:[%s6115_s3 + $0x7e8] sm:$0xff]  ;;  %v4980_v38 = vpack.c.bf16 %v3866_v57, %v3865_v24 }
 0x3b3   :  { %4963 = vmatprep.subr.bf16.mxu0 %v4962_v39  ;;  %4995 = vmatprep.subr.bf16.mxu1 %v4994_v43  ;;  %v5012_v39 = vpack.c.bf16 %v3898_v28, %v3897_v25  ;;  %v5014_v41 = vpack.c.bf16 %v3916_v32, %v3915_v12  ;;  %v3868_v43 = vld [vmem:[%s6115_s3 + $0x668] sm:$0xff] }
 0x3b4   :  { %v4984_v45 = vpack.c.bf16 %v3868_v43, %v3867_v42 }
 0x3b6   :  { %4965 = vmatpush3.bf16.msra.mxu0 %v4964_v48  ;;  %4997 = vmatpush3.bf16.msra.mxu1 %v4996_v49  ;;  %v3886_v48 = vld [vmem:[%s6115_s3 + $0x6f8] sm:$0xff]  ;;  %v3917_v49 = vld [vmem:[%s6115_s3 + $0x7f0] sm:$0xff] }
 0x3b7   :  { %4967 = vmatprep.subr.bf16.mxu0 %v4966_v50  ;;  %4999 = vmatprep.subr.bf16.mxu1 %v4998_v27  ;;  %v4986_v50 = vpack.c.bf16 %v3886_v48, %v3885_v47  ;;  %v5018_v27 = vpack.c.bf16 %v3918_v51, %v3917_v49 }
 0x3ba   :  { %4969 = vmatpush3.bf16.msra.mxu0 %v4968_v59  ;;  %5001 = vmatpush3.bf16.msra.mxu1 %v5000_v60 }
 0x3bb   :  { %4971 = vmatprep.subr.bf16.mxu0 %v4970_v61  ;;  %5003 = vmatprep.subr.bf16.mxu1 %v5002_v1 }
 0x3be   :  { %4973 = vmatpush3.bf16.msra.mxu0 %v4972_v5  ;;  %5005 = vmatpush3.bf16.msra.mxu1 %v5004_v6 }
 0x3bf   :  { %4975 = vmatprep.subr.bf16.mxu0 %v4974_v7  ;;  %5007 = vmatprep.subr.bf16.mxu1 %v5006_v11 }
 0x3c2   :  { %4977 = vmatpush3.bf16.msra.mxu0 %v4976_v18  ;;  %5009 = vmatpush3.bf16.msra.mxu1 %v5008_v19 }
 0x3c3   :  { %4979 = vmatprep.subr.bf16.mxu0 %v4978_v23  ;;  %5011 = vmatprep.subr.bf16.mxu1 %v5010_v26  ;;  %v4485_v26 = vld [vmem:[#allocation7] ss:$0 sm:$0xff] }
 0x3c6   :  { %4981 = vmatpush3.bf16.msra.mxu0 %v4980_v38  ;;  %5013 = vmatpush3.bf16.msra.mxu1 %v5012_v39 }
 0x3c7   :  { %4983 = vmatprep.subr.bf16.mxu0 %v4982_v40  ;;  %5015 = vmatprep.subr.bf16.mxu1 %v5014_v41 }
 0x3ca   :  { %4985 = vmatpush3.bf16.msra.mxu0 %v4984_v45  ;;  %5017 = vmatpush3.bf16.msra.mxu1 %v5016_v46 }
 0x3cb   :  { %4987 = vmatprep.subr.bf16.mxu0 %v4986_v50  ;;  %5019 = vmatprep.subr.bf16.mxu1 %v5018_v27 }
 0x3ce   :  { %4989 = vmatpush3.bf16.msra.mxu0 %v4988_v54  ;;  %5021 = vmatpush3.bf16.msra.mxu1 %v5020_v56 }
 0x420   :  { %v4658_v58 = vpop.f32.mrb[16].mxu0  ;;  %v4693_v59 = vpop.f32.mrb[16].mxu1 }
 0x421   :  { %v4659_v60 = vpop.f32.mrb[17].mxu0  ;;  %v4694_v62 = vpop.f32.mrb[17].mxu1 }
 0x422   :  { %v4660_v61 = vadd.f32 %v4659_v60, %v4658_v58  ;;  %v4695_v63 = vadd.f32 %v4694_v62, %v4693_v59 }
 0x424   :  { %v3061_v0 = vadd.f32 %v4695_v63, %v4660_v61 }
 0x426   :  { %v3064_v1 = vadd.f32 %v3061_v0, %v5896_v31 }
 0x484   :  { %v3762_v5 = vpop.f32.mrb[20].mxu0  ;;  %v3844_v7 = vpop.f32.mrb[20].mxu1 }
 0x485   :  { %v5034_v6 = vadd.f32 %v3762_v5, %v3170_v2  ;;  %v3764_v8 = vpop.f32.mrb[21].mxu0  ;;  %v5036_v9 = vadd.f32 %v3844_v7, %v3178_v3  ;;  %v3846_v11 = vpop.f32.mrb[21].mxu1 }
 0x486   :  { %v5035_v10 = vadd.f32 %v3764_v8, %v3174_v4  ;;  %v3766_v13 = vpop.f32.mrb[22].mxu0  ;;  %v5037_v14 = vadd.f32 %v3846_v11, %v3182_v21  ;;  %v3848_v15 = vpop.f32.mrb[22].mxu1 }
 0x487   :  { %v3767_v31 = vpop.f32.mrb[23].mxu0  ;;  %v3849_v17 = vpop.f32.mrb[23].mxu1  ;;  %v3851_v33 = vmax.f32 %v5034_v6, 0.0  ;;  %v3853_v36 = vmax.f32 %v5036_v9, 0.0 }
 0x488   :  { %v3852_v16 = vmax.f32 %v5035_v10, 0.0  ;;  %v3854_v18 = vmax.f32 %v5037_v14, 0.0 }
 0x48a   :  { %3983 = vmatprep.mubr.f32.mxu0 %v3852_v16  ;;  %4053 = vmatprep.mubr.f32.mxu1 %v3854_v18 }
 0x48b   :  { %3984 = vmatmul.mubr.f32.vlgmr.msra.gmra.mrb[18].mxu0 %v3851_v33  ;;  %4054 = vmatmul.mubr.f32.vlgmr.msra.gmra.mrb[18].mxu1 %v3853_v36 }
 0x55e   :  { %v4728_v34 = vpop.f32.mrb[18].mxu0  ;;  %v4763_v37 = vpop.f32.mrb[18].mxu1 }
 0x55f   :  { %v4729_v19 = vpop.f32.mrb[19].mxu0  ;;  %v4764_v24 = vpop.f32.mrb[19].mxu1 }
 0x560   :  { %v4730_v23 = vadd.f32 %v4729_v19, %v4728_v34  ;;  %v4765_v57 = vadd.f32 %v4764_v24, %v4763_v37 }
 0x562   :  { %v4056_v25 = vadd.f32 %v4765_v57, %v4730_v23 }
 0x564   :  { %v4059_v28 = vadd.f32 %v4056_v25, %v3064_v1 }
 0x566   :  { %v4067_v29 = vadd.f32 %v4485_v26, %v4059_v28 }
 0x568   :  { %4069 = vst.msk [vmem:[%s6117_s5] sm:$0xff] %vm4068_vm1, %v4067_v29 }
 0x569   :  { %4074 = vsyncpa [#allocation3], 1 }
 0x56a   :  { %4075 = vsyncpa [#allocation5], 1 }
 0x56b   :  { %4076 = vsyncpa [#allocation8], 1 }

</bundles_post_ra>
